<compile_context>
chip_gen: v7x
topology: tpu7x:2x2x1
jax: 0.10.0
libtpu: 0.0.40
codegen_flags: <defaults>
</compile_context>

<pallas_src>
import functools

import jax
import jax.numpy as jnp
from jax.experimental import pallas as pl
from jax.experimental.pallas import tpu as pltpu


def _ugroup_kernel(x_ref, mask_ref,
                   w1_ref, b1_ref, w2_ref, b2_ref, wd_ref, bd_ref,
                   w3_ref, b3_ref, w4_ref, b4_ref,
                   o_ref,
                   wide_ref, col_ref,
                   *, k_size, wp, s_pad, b_blk, off0, dil):
    """Fused UGroup forward for b_blk images laid side-by-side on the lane axis.

    x_ref    : (b_blk, in_cp, s_pad)   flat zero-padded input canvases (f32)
    mask_ref : (1, b_blk*s_pad)        1.0 on valid HxW pixels, 0.0 on ring/tail
    w*_ref   : (Cout, k*k*Cin)         tap-major flattened conv weights (compute dtype)
    b*_ref   : (Cout, 1)               biases (f32)
    o_ref    : (b_blk, out_c, s_pad)   output canvases (f32)
    wide_ref : (C, lanes + 2*off0)     canvas + 128-lane halo, compute dtype
    col_ref  : (k*k*C, lanes)          im2col slab, compute dtype
    """
    in_cp = x_ref.shape[1]
    dim = b1_ref.shape[0]
    c = (k_size - 1) // 2
    lanes = b_blk * s_pad
    cdt = wide_ref.dtype
    mask = mask_ref[...]                                     # (1, lanes) f32

    # Only the halo lanes must read as zero; the interior is always rewritten
    # before each layer.  Unconditional (see header comment re v7x megacore).
    if off0:
        rows = wide_ref.shape[0]
        wide_ref[:, 0:off0] = jnp.zeros((rows, off0), cdt)
        wide_ref[:, off0 + lanes:off0 + lanes + off0] = jnp.zeros((rows, off0), cdt)

    def set_canvas(row0, act):
        # Channel "concat" == writing into adjacent channel rows.  The single
        # activation -> compute-dtype cast per layer happens here.
        wide_ref[row0:row0 + act.shape[0], off0:off0 + lanes] = act.astype(cdt)

    def conv_relu(cin, w_ref, b_ref, dilation):
        # Build the im2col slab from shifted in-VMEM views of the canvas.
        # Destination rows are sublane-aligned (cin % 8 == 0) and lane-dense.
        t = 0
        for ky in range(k_size):
            for kx in range(k_size):
                start = off0 + dilation * ((ky - c) * wp + (kx - c))
                col_ref[t * cin:(t + 1) * cin, :] = wide_ref[0:cin, start:start + lanes]
                t += 1
        k = k_size * k_size * cin
        prec = (jax.lax.Precision.HIGHEST if cdt == jnp.float32 else None)
        acc = jnp.dot(w_ref[...], col_ref[0:k, :],
                      preferred_element_type=jnp.float32, precision=prec)
        acc = jnp.maximum(acc + b_ref[...], 0.0)             # fused bias + ReLU (f32)
        # Re-zero the padding ring (and the s..s_pad tail lanes) so the next
        # layer sees 'same' zero padding.
        return acc * mask                                    # (cout, lanes) f32

    # Load the b_blk input canvases into their lane blocks (already zero-padded
    # on the host, so the ring / tail / extra channel rows are zero).
    for b in range(b_blk):
        wide_ref[0:in_cp, off0 + b * s_pad:off0 + (b + 1) * s_pad] = (
            x_ref[b].astype(cdt))

    f1 = conv_relu(in_cp, w1_ref, b1_ref, 1)                 # conv_1 ; ds = Identity
    set_canvas(0, f1)
    f2 = conv_relu(dim, w2_ref, b2_ref, 1)                   # conv_2
    set_canvas(0, f2)
    fd = conv_relu(dim, wd_ref, bd_ref, dil)                 # conv_dil (dilation=2)
    set_canvas(dim, fd)                                      # cat((f_2, f_d), C)
    f3 = conv_relu(2 * dim, w3_ref, b3_ref, 1)               # conv_3 ; us = Identity
    set_canvas(0, f1)                                        # cat((f_1, f_3), C)
    set_canvas(dim, f3)
    f4 = conv_relu(2 * dim, w4_ref, b4_ref, 1)               # conv_4

    for b in range(b_blk):
        o_ref[b] = f4[:, b * s_pad:(b + 1) * s_pad].astype(o_ref.dtype)


@functools.partial(jax.jit, static_argnames=("dil", "compute_dtype", "b_blk"))
def ugroup_forward(params, x_nchw, *, dil=2, compute_dtype=jnp.bfloat16, b_blk=None):
    """UGroup.forward with use_bn=False, use_rs=False (ds/us are Identity).

    NCHW in/out like the PyTorch module.  `compute_dtype` selects the MXU
    operand / VMEM scratch dtype (bf16 default; f32 = accuracy-only mode with
    Precision.HIGHEST).  Accumulation / bias / ReLU are always f32.
    """
    N, in_c, H, W = x_nchw.shape
    kh, kw, _, dim = params["conv_1"][0].shape
    out_c = params["conv_4"][0].shape[-1]
    assert kh == kw, "square kernels only"
    k_size = kh
    assert k_size % 2 == 1, "odd k_size only"  # see TODO(synk) above

    pad = (k_size - 1) // 2 * dil               # max halo over all layers (conv_dil)
    hp, wp = H + 2 * pad, W + 2 * pad
    s = hp * wp
    s_pad = ((s + 127) // 128) * 128            # lane-dense spatial extent
    off_req = pad * (wp + 1)                    # max |flat tap offset|
    off0 = ((off_req + 127) // 128) * 128 if off_req else 0

    in_cp = ((max(in_c, 8) + 7) // 8) * 8       # sublane-align conv_1's tap rows

    if b_blk is None:                           # images per grid step (lane axis)
        b_blk = 1
        for cand in range(min(N, 8), 0, -1):
            if N % cand == 0:
                b_blk = cand
                break
    assert N % b_blk == 0, "b_blk must divide the batch"
    lanes = b_blk * s_pad

    # Flat zero-padded input canvas (pad + reshape only; no host-side im2col).
    xc = jnp.pad(x_nchw, ((0, 0), (0, in_cp - in_c), (pad, pad), (pad, pad)))
    xc = xc.reshape(N, in_cp, s)
    xc = jnp.pad(xc, ((0, 0), (0, 0), (0, s_pad - s)))

    mask1 = (jnp.zeros((hp, wp), jnp.float32)
             .at[pad:pad + H, pad:pad + W].set(1.0)).reshape(s)
    mask = jnp.tile(jnp.pad(mask1, (0, s_pad - s)), (b_blk,)).reshape(1, lanes)

    def prep(name, cin_pad=None):
        w, b = params[name]
        _, _, cin, cout = w.shape
        if cin_pad is not None and cin_pad > cin:
            w = jnp.pad(w, ((0, 0), (0, 0), (0, cin_pad - cin), (0, 0)))
            cin = cin_pad
        wf = jnp.transpose(w, (3, 0, 1, 2)).reshape(cout, k_size * k_size * cin)
        return wf.astype(compute_dtype), b.reshape(cout, 1).astype(jnp.float32)

    w1, b1 = prep("conv_1", cin_pad=in_cp)
    w2, b2 = prep("conv_2")
    wd, bd = prep("conv_dil")
    w3, b3 = prep("conv_3")
    w4, b4 = prep("conv_4")

    def resident(arr):
        # Whole (small) array, same block every grid step -> stays VMEM-resident.
        zeros = (0,) * arr.ndim
        return pl.BlockSpec(arr.shape, lambda n: zeros)

    rows_c = max(2 * dim, in_cp)                # canvas channel rows

    kernel = functools.partial(_ugroup_kernel, k_size=k_size, wp=wp, s_pad=s_pad,
                               b_blk=b_blk, off0=off0, dil=dil)

    out = pl.pallas_call(
        kernel,
        out_shape=jax.ShapeDtypeStruct((N, out_c, s_pad), jnp.float32),
        grid=(N // b_blk,),
        in_specs=[
            pl.BlockSpec((b_blk, in_cp, s_pad), lambda n: (n, 0, 0)),
            resident(mask),
            resident(w1), resident(b1),
            resident(w2), resident(b2),
            resident(wd), resident(bd),
            resident(w3), resident(b3),
            resident(w4), resident(b4),
        ],
        out_specs=pl.BlockSpec((b_blk, out_c, s_pad), lambda n: (n, 0, 0)),
        scratch_shapes=[
            pltpu.VMEM((rows_c, lanes + 2 * off0), compute_dtype),          # canvas + halo
            pltpu.VMEM((k_size * k_size * rows_c, lanes), compute_dtype),   # im2col slab
        ],
        compiler_params=pltpu.CompilerParams(
            dimension_semantics=("parallel",)),
    )(xc, mask, w1, b1, w2, b2, wd, bd, w3, b3, w4, b4)

    # Crop the valid HxW region out of the (lane-padded) output canvas.
    out = out[:, :, :s].reshape(N, out_c, hp, wp)
    return out[:, :, pad:pad + H, pad:pad + W]


def init_ugroup_params(key, in_c, out_c, dim, k_size):
    def conv_init(k, cin, cout):
        kw_, kb = jax.random.split(k)
        w = jax.random.normal(kw_, (k_size, k_size, cin, cout), jnp.float32) * 0.1
        b = jax.random.normal(kb, (cout,), jnp.float32) * 0.05
        return w, b

    keys = jax.random.split(key, 5)
    return {
        "conv_1":   conv_init(keys[0], in_c, dim),
        "conv_2":   conv_init(keys[1], dim, dim),
        "conv_dil": conv_init(keys[2], dim, dim),
        "conv_3":   conv_init(keys[3], 2 * dim, dim),
        "conv_4":   conv_init(keys[4], 2 * dim, out_c),
    }


# ---- pure-JAX reference (for sanity checking the Pallas path) ----
def _ref_conv(x_nchw, w_hwio, b, dilation=1):
    y = jax.lax.conv_general_dilated(
        x_nchw, w_hwio, window_strides=(1, 1), padding="SAME",
        rhs_dilation=(dilation, dilation),
        dimension_numbers=("NCHW", "HWIO", "NCHW"),
        precision=jax.lax.Precision.HIGHEST)
    return jnp.maximum(y + b.reshape(1, -1, 1, 1), 0.0)


def ugroup_ref(params, x_nchw):
    f_1 = _ref_conv(x_nchw, *params["conv_1"])
    f_2 = _ref_conv(f_1, *params["conv_2"])
    f_d = _ref_conv(f_2, *params["conv_dil"], dilation=2)
    f_3 = _ref_conv(jnp.concatenate([f_2, f_d], axis=1), *params["conv_3"])
    return _ref_conv(jnp.concatenate([f_1, f_3], axis=1), *params["conv_4"])


if __name__ == "__main__":
    key = jax.random.PRNGKey(0)
    k_x, k_p = jax.random.split(key)

    in_c, out_c, dim, k_size = 4, 4, 8, 3
    x = jax.random.normal(k_x, (2, in_c, 16, 16), jnp.float32)   # NCHW, like PyTorch
    params = init_ugroup_params(k_p, in_c, out_c, dim, k_size)

    ref = jax.block_until_ready(ugroup_ref(params, x))

    # Default path: bf16 MXU operands / bf16 VMEM scratch, f32 accumulation.
    out = jax.block_until_ready(ugroup_forward(params, x))
    assert out.shape == (2, out_c, 16, 16), out.shape
    err = float(jnp.max(jnp.abs(out - ref)))
    assert err < 1.5e-1, f"bf16 max abs error vs reference: {err}"

    # Accuracy-only mode: f32 operands with Precision.HIGHEST.
    out_f32 = jax.block_until_ready(
        ugroup_forward(params, x, compute_dtype=jnp.float32))
    err_f32 = float(jnp.max(jnp.abs(out_f32 - ref)))
    assert err_f32 < 5e-3, f"f32 max abs error vs reference: {err_f32}"

    print("KERNEL_OK")
</pallas_src>

<mosaic_0001>
module attributes {stable_mosaic.version = 11 : i64} {
  func.func @_ugroup_kernel(%arg0: i32, %arg1: memref<2x8x512xf32, #tpu.memory_space<vmem>>, %arg2: memref<1x1024xf32, #tpu.memory_space<vmem>>, %arg3: memref<8x72xbf16, #tpu.memory_space<vmem>>, %arg4: memref<8x1xf32, #tpu.memory_space<vmem>>, %arg5: memref<8x72xbf16, #tpu.memory_space<vmem>>, %arg6: memref<8x1xf32, #tpu.memory_space<vmem>>, %arg7: memref<8x72xbf16, #tpu.memory_space<vmem>>, %arg8: memref<8x1xf32, #tpu.memory_space<vmem>>, %arg9: memref<8x144xbf16, #tpu.memory_space<vmem>>, %arg10: memref<8x1xf32, #tpu.memory_space<vmem>>, %arg11: memref<4x144xbf16, #tpu.memory_space<vmem>>, %arg12: memref<4x1xf32, #tpu.memory_space<vmem>>, %arg13: memref<2x4x512xf32, #tpu.memory_space<vmem>>, %arg14: memref<16x1280xbf16, #tpu.memory_space<vmem>>, %arg15: memref<144x1024xbf16, #tpu.memory_space<vmem>>) attributes {dimension_semantics = [#tpu.dimension_semantics<parallel>], iteration_bounds = array<i64: 1>, scalar_prefetch = 0 : i64, scratch_operands = 2 : i64, tpu.core_type = #tpu.core_type<tc>, window_params = [{transform_indices = @transform_0, window_bounds = array<i64: 2, 8, 512>}, {pipeline_mode = #tpu.pipeline_mode<synchronous>, transform_indices = @transform_1, window_bounds = array<i64: 1, 1024>}, {pipeline_mode = #tpu.pipeline_mode<synchronous>, transform_indices = @transform_2, window_bounds = array<i64: 8, 72>}, {pipeline_mode = #tpu.pipeline_mode<synchronous>, transform_indices = @transform_3, window_bounds = array<i64: 8, 1>}, {pipeline_mode = #tpu.pipeline_mode<synchronous>, transform_indices = @transform_4, window_bounds = array<i64: 8, 72>}, {pipeline_mode = #tpu.pipeline_mode<synchronous>, transform_indices = @transform_5, window_bounds = array<i64: 8, 1>}, {pipeline_mode = #tpu.pipeline_mode<synchronous>, transform_indices = @transform_6, window_bounds = array<i64: 8, 72>}, {pipeline_mode = #tpu.pipeline_mode<synchronous>, transform_indices = @transform_7, window_bounds = array<i64: 8, 1>}, {pipeline_mode = #tpu.pipeline_mode<synchronous>, transform_indices = @transform_8, window_bounds = array<i64: 8, 144>}, {pipeline_mode = #tpu.pipeline_mode<synchronous>, transform_indices = @transform_9, window_bounds = array<i64: 8, 1>}, {pipeline_mode = #tpu.pipeline_mode<synchronous>, transform_indices = @transform_10, window_bounds = array<i64: 4, 144>}, {pipeline_mode = #tpu.pipeline_mode<synchronous>, transform_indices = @transform_11, window_bounds = array<i64: 4, 1>}, {transform_indices = @transform_12, window_bounds = array<i64: 2, 4, 512>}]} {
    %c0 = arith.constant 0 : index
    %c0_0 = arith.constant 0 : index
    %0 = vector.load %arg2[%c0, %c0_0] : memref<1x1024xf32, #tpu.memory_space<vmem>>, vector<1x1024xf32>
    %cst = arith.constant 0.000000e+00 : bf16
    %1 = vector.broadcast %cst : bf16 to vector<16x128xbf16>
    %c0_1 = arith.constant 0 : index
    %c0_2 = arith.constant 0 : index
    %2 = vector.load %arg14[%c0_1, %c0_2] : memref<16x1280xbf16, #tpu.memory_space<vmem>>, vector<16x128xbf16>
    tpu.vector_store %arg14[%c0_1, %c0_2], %1 {strides = array<i32>} : memref<16x1280xbf16, #tpu.memory_space<vmem>>, vector<16x128xbf16>,
    %cst_3 = arith.constant 0.000000e+00 : bf16
    %3 = vector.broadcast %cst_3 : bf16 to vector<16x128xbf16>
    %c0_4 = arith.constant 0 : index
    %c1152 = arith.constant 1152 : index
    %4 = vector.load %arg14[%c0_4, %c1152] : memref<16x1280xbf16, #tpu.memory_space<vmem>>, vector<16x128xbf16>
    tpu.vector_store %arg14[%c0_4, %c1152], %3 {strides = array<i32>} : memref<16x1280xbf16, #tpu.memory_space<vmem>>, vector<16x128xbf16>,
    %c0_5 = arith.constant 0 : index
    %c0_6 = arith.constant 0 : index
    %c0_7 = arith.constant 0 : index
    %5 = vector.load %arg1[%c0_5, %c0_6, %c0_7] : memref<2x8x512xf32, #tpu.memory_space<vmem>>, vector<1x8x512xf32>
    %6 = vector.shape_cast %5 : vector<1x8x512xf32> to vector<8x512xf32>
    %7 = arith.truncf %6 : vector<8x512xf32> to vector<8x512xbf16>
    %c0_8 = arith.constant 0 : index
    %c128 = arith.constant 128 : index
    %8 = vector.load %arg14[%c0_8, %c128] : memref<16x1280xbf16, #tpu.memory_space<vmem>>, vector<8x512xbf16>
    tpu.vector_store %arg14[%c0_8, %c128], %7 {strides = array<i32>} : memref<16x1280xbf16, #tpu.memory_space<vmem>>, vector<8x512xbf16>,
    %c1 = arith.constant 1 : index
    %c0_9 = arith.constant 0 : index
    %c0_10 = arith.constant 0 : index
    %9 = vector.load %arg1[%c1, %c0_9, %c0_10] : memref<2x8x512xf32, #tpu.memory_space<vmem>>, vector<1x8x512xf32>
    %10 = vector.shape_cast %9 : vector<1x8x512xf32> to vector<8x512xf32>
    %11 = arith.truncf %10 : vector<8x512xf32> to vector<8x512xbf16>
    %c0_11 = arith.constant 0 : index
    %c640 = arith.constant 640 : index
    %12 = vector.load %arg14[%c0_11, %c640] : memref<16x1280xbf16, #tpu.memory_space<vmem>>, vector<8x512xbf16>
    tpu.vector_store %arg14[%c0_11, %c640], %11 {strides = array<i32>} : memref<16x1280xbf16, #tpu.memory_space<vmem>>, vector<8x512xbf16>,
    %c0_12 = arith.constant 0 : index
    %c107 = arith.constant 107 : index
    %13 = vector.load %arg14[%c0_12, %c107] : memref<16x1280xbf16, #tpu.memory_space<vmem>>, vector<8x1024xbf16>
    %c0_13 = arith.constant 0 : index
    %c0_14 = arith.constant 0 : index
    %14 = vector.load %arg15[%c0_13, %c0_14] : memref<144x1024xbf16, #tpu.memory_space<vmem>>, vector<8x1024xbf16>
    tpu.vector_store %arg15[%c0_13, %c0_14], %13 {strides = array<i32>} : memref<144x1024xbf16, #tpu.memory_space<vmem>>, vector<8x1024xbf16>,
    %c0_15 = arith.constant 0 : index
    %c108 = arith.constant 108 : index
    %15 = vector.load %arg14[%c0_15, %c108] : memref<16x1280xbf16, #tpu.memory_space<vmem>>, vector<8x1024xbf16>
    %c8 = arith.constant 8 : index
    %c0_16 = arith.constant 0 : index
    %16 = vector.load %arg15[%c8, %c0_16] : memref<144x1024xbf16, #tpu.memory_space<vmem>>, vector<8x1024xbf16>
    tpu.vector_store %arg15[%c8, %c0_16], %15 {strides = array<i32>} : memref<144x1024xbf16, #tpu.memory_space<vmem>>, vector<8x1024xbf16>,
    %c0_17 = arith.constant 0 : index
    %c109 = arith.constant 109 : index
    %17 = vector.load %arg14[%c0_17, %c109] : memref<16x1280xbf16, #tpu.memory_space<vmem>>, vector<8x1024xbf16>
    %c16 = arith.constant 16 : index
    %c0_18 = arith.constant 0 : index
    %18 = vector.load %arg15[%c16, %c0_18] : memref<144x1024xbf16, #tpu.memory_space<vmem>>, vector<8x1024xbf16>
    tpu.vector_store %arg15[%c16, %c0_18], %17 {strides = array<i32>} : memref<144x1024xbf16, #tpu.memory_space<vmem>>, vector<8x1024xbf16>,
    %c0_19 = arith.constant 0 : index
    %c127 = arith.constant 127 : index
    %19 = vector.load %arg14[%c0_19, %c127] : memref<16x1280xbf16, #tpu.memory_space<vmem>>, vector<8x1024xbf16>
    %c24 = arith.constant 24 : index
    %c0_20 = arith.constant 0 : index
    %20 = vector.load %arg15[%c24, %c0_20] : memref<144x1024xbf16, #tpu.memory_space<vmem>>, vector<8x1024xbf16>
    tpu.vector_store %arg15[%c24, %c0_20], %19 {strides = array<i32>} : memref<144x1024xbf16, #tpu.memory_space<vmem>>, vector<8x1024xbf16>,
    %c0_21 = arith.constant 0 : index
    %c128_22 = arith.constant 128 : index
    %21 = vector.load %arg14[%c0_21, %c128_22] : memref<16x1280xbf16, #tpu.memory_space<vmem>>, vector<8x1024xbf16>
    %c32 = arith.constant 32 : index
    %c0_23 = arith.constant 0 : index
    %22 = vector.load %arg15[%c32, %c0_23] : memref<144x1024xbf16, #tpu.memory_space<vmem>>, vector<8x1024xbf16>
    tpu.vector_store %arg15[%c32, %c0_23], %21 {strides = array<i32>} : memref<144x1024xbf16, #tpu.memory_space<vmem>>, vector<8x1024xbf16>,
    %c0_24 = arith.constant 0 : index
    %c129 = arith.constant 129 : index
    %23 = vector.load %arg14[%c0_24, %c129] : memref<16x1280xbf16, #tpu.memory_space<vmem>>, vector<8x1024xbf16>
    %c40 = arith.constant 40 : index
    %c0_25 = arith.constant 0 : index
    %24 = vector.load %arg15[%c40, %c0_25] : memref<144x1024xbf16, #tpu.memory_space<vmem>>, vector<8x1024xbf16>
    tpu.vector_store %arg15[%c40, %c0_25], %23 {strides = array<i32>} : memref<144x1024xbf16, #tpu.memory_space<vmem>>, vector<8x1024xbf16>,
    %c0_26 = arith.constant 0 : index
    %c147 = arith.constant 147 : index
    %25 = vector.load %arg14[%c0_26, %c147] : memref<16x1280xbf16, #tpu.memory_space<vmem>>, vector<8x1024xbf16>
    %c48 = arith.constant 48 : index
    %c0_27 = arith.constant 0 : index
    %26 = vector.load %arg15[%c48, %c0_27] : memref<144x1024xbf16, #tpu.memory_space<vmem>>, vector<8x1024xbf16>
    tpu.vector_store %arg15[%c48, %c0_27], %25 {strides = array<i32>} : memref<144x1024xbf16, #tpu.memory_space<vmem>>, vector<8x1024xbf16>,
    %c0_28 = arith.constant 0 : index
    %c148 = arith.constant 148 : index
    %27 = vector.load %arg14[%c0_28, %c148] : memref<16x1280xbf16, #tpu.memory_space<vmem>>, vector<8x1024xbf16>
    %c56 = arith.constant 56 : index
    %c0_29 = arith.constant 0 : index
    %28 = vector.load %arg15[%c56, %c0_29] : memref<144x1024xbf16, #tpu.memory_space<vmem>>, vector<8x1024xbf16>
    tpu.vector_store %arg15[%c56, %c0_29], %27 {strides = array<i32>} : memref<144x1024xbf16, #tpu.memory_space<vmem>>, vector<8x1024xbf16>,
    %c0_30 = arith.constant 0 : index
    %c149 = arith.constant 149 : index
    %29 = vector.load %arg14[%c0_30, %c149] : memref<16x1280xbf16, #tpu.memory_space<vmem>>, vector<8x1024xbf16>
    %c64 = arith.constant 64 : index
    %c0_31 = arith.constant 0 : index
    %30 = vector.load %arg15[%c64, %c0_31] : memref<144x1024xbf16, #tpu.memory_space<vmem>>, vector<8x1024xbf16>
    tpu.vector_store %arg15[%c64, %c0_31], %29 {strides = array<i32>} : memref<144x1024xbf16, #tpu.memory_space<vmem>>, vector<8x1024xbf16>,
    %c0_32 = arith.constant 0 : index
    %c0_33 = arith.constant 0 : index
    %31 = vector.load %arg3[%c0_32, %c0_33] : memref<8x72xbf16, #tpu.memory_space<vmem>>, vector<8x72xbf16>
    %c0_34 = arith.constant 0 : index
    %c0_35 = arith.constant 0 : index
    %32 = vector.load %arg15[%c0_34, %c0_35] : memref<144x1024xbf16, #tpu.memory_space<vmem>>, vector<72x1024xbf16>
    %cst_36 = arith.constant dense<0.000000e+00> : vector<8x1024xf32>
    %33 = tpu.matmul %31, %32, %cst_36 {dimension_numbers = #tpu.dot_dimension_numbers<[1], [0], [0], [1], [0, 0, 1, 1], [], []>} : vector<8x72xbf16>, vector<72x1024xbf16>, vector<8x1024xf32> -> vector<8x1024xf32>
    %c0_37 = arith.constant 0 : index
    %c0_38 = arith.constant 0 : index
    %34 = vector.load %arg4[%c0_37, %c0_38] : memref<8x1xf32, #tpu.memory_space<vmem>>, vector<8x1xf32>
    %35 = vector.broadcast %34 : vector<8x1xf32> to vector<8x1024xf32>
    %36 = arith.addf %33, %35 : vector<8x1024xf32>
    %cst_39 = arith.constant 0.000000e+00 : f32
    %37 = vector.broadcast %cst_39 : f32 to vector<8x1024xf32>
    %38 = arith.maximumf %36, %37 : vector<8x1024xf32>
    %39 = vector.broadcast %0 : vector<1x1024xf32> to vector<8x1024xf32>
    %40 = arith.mulf %38, %39 : vector<8x1024xf32>
    %41 = arith.truncf %40 : vector<8x1024xf32> to vector<8x1024xbf16>
    %c0_40 = arith.constant 0 : index
    %c128_41 = arith.constant 128 : index
    %42 = vector.load %arg14[%c0_40, %c128_41] : memref<16x1280xbf16, #tpu.memory_space<vmem>>, vector<8x1024xbf16>
    tpu.vector_store %arg14[%c0_40, %c128_41], %41 {strides = array<i32>} : memref<16x1280xbf16, #tpu.memory_space<vmem>>, vector<8x1024xbf16>,
    %c0_42 = arith.constant 0 : index
    %c107_43 = arith.constant 107 : index
    %43 = vector.load %arg14[%c0_42, %c107_43] : memref<16x1280xbf16, #tpu.memory_space<vmem>>, vector<8x1024xbf16>
    %c0_44 = arith.constant 0 : index
    %c0_45 = arith.constant 0 : index
    %44 = vector.load %arg15[%c0_44, %c0_45] : memref<144x1024xbf16, #tpu.memory_space<vmem>>, vector<8x1024xbf16>
    tpu.vector_store %arg15[%c0_44, %c0_45], %43 {strides = array<i32>} : memref<144x1024xbf16, #tpu.memory_space<vmem>>, vector<8x1024xbf16>,
    %c0_46 = arith.constant 0 : index
    %c108_47 = arith.constant 108 : index
    %45 = vector.load %arg14[%c0_46, %c108_47] : memref<16x1280xbf16, #tpu.memory_space<vmem>>, vector<8x1024xbf16>
    %c8_48 = arith.constant 8 : index
    %c0_49 = arith.constant 0 : index
    %46 = vector.load %arg15[%c8_48, %c0_49] : memref<144x1024xbf16, #tpu.memory_space<vmem>>, vector<8x1024xbf16>
    tpu.vector_store %arg15[%c8_48, %c0_49], %45 {strides = array<i32>} : memref<144x1024xbf16, #tpu.memory_space<vmem>>, vector<8x1024xbf16>,
    %c0_50 = arith.constant 0 : index
    %c109_51 = arith.constant 109 : index
    %47 = vector.load %arg14[%c0_50, %c109_51] : memref<16x1280xbf16, #tpu.memory_space<vmem>>, vector<8x1024xbf16>
    %c16_52 = arith.constant 16 : index
    %c0_53 = arith.constant 0 : index
    %48 = vector.load %arg15[%c16_52, %c0_53] : memref<144x1024xbf16, #tpu.memory_space<vmem>>, vector<8x1024xbf16>
    tpu.vector_store %arg15[%c16_52, %c0_53], %47 {strides = array<i32>} : memref<144x1024xbf16, #tpu.memory_space<vmem>>, vector<8x1024xbf16>,
    %c0_54 = arith.constant 0 : index
    %c127_55 = arith.constant 127 : index
    %49 = vector.load %arg14[%c0_54, %c127_55] : memref<16x1280xbf16, #tpu.memory_space<vmem>>, vector<8x1024xbf16>
    %c24_56 = arith.constant 24 : index
    %c0_57 = arith.constant 0 : index
    %50 = vector.load %arg15[%c24_56, %c0_57] : memref<144x1024xbf16, #tpu.memory_space<vmem>>, vector<8x1024xbf16>
    tpu.vector_store %arg15[%c24_56, %c0_57], %49 {strides = array<i32>} : memref<144x1024xbf16, #tpu.memory_space<vmem>>, vector<8x1024xbf16>,
    %c0_58 = arith.constant 0 : index
    %c128_59 = arith.constant 128 : index
    %51 = vector.load %arg14[%c0_58, %c128_59] : memref<16x1280xbf16, #tpu.memory_space<vmem>>, vector<8x1024xbf16>
    %c32_60 = arith.constant 32 : index
    %c0_61 = arith.constant 0 : index
    %52 = vector.load %arg15[%c32_60, %c0_61] : memref<144x1024xbf16, #tpu.memory_space<vmem>>, vector<8x1024xbf16>
    tpu.vector_store %arg15[%c32_60, %c0_61], %51 {strides = array<i32>} : memref<144x1024xbf16, #tpu.memory_space<vmem>>, vector<8x1024xbf16>,
    %c0_62 = arith.constant 0 : index
    %c129_63 = arith.constant 129 : index
    %53 = vector.load %arg14[%c0_62, %c129_63] : memref<16x1280xbf16, #tpu.memory_space<vmem>>, vector<8x1024xbf16>
    %c40_64 = arith.constant 40 : index
    %c0_65 = arith.constant 0 : index
    %54 = vector.load %arg15[%c40_64, %c0_65] : memref<144x1024xbf16, #tpu.memory_space<vmem>>, vector<8x1024xbf16>
    tpu.vector_store %arg15[%c40_64, %c0_65], %53 {strides = array<i32>} : memref<144x1024xbf16, #tpu.memory_space<vmem>>, vector<8x1024xbf16>,
    %c0_66 = arith.constant 0 : index
    %c147_67 = arith.constant 147 : index
    %55 = vector.load %arg14[%c0_66, %c147_67] : memref<16x1280xbf16, #tpu.memory_space<vmem>>, vector<8x1024xbf16>
    %c48_68 = arith.constant 48 : index
    %c0_69 = arith.constant 0 : index
    %56 = vector.load %arg15[%c48_68, %c0_69] : memref<144x1024xbf16, #tpu.memory_space<vmem>>, vector<8x1024xbf16>
    tpu.vector_store %arg15[%c48_68, %c0_69], %55 {strides = array<i32>} : memref<144x1024xbf16, #tpu.memory_space<vmem>>, vector<8x1024xbf16>,
    %c0_70 = arith.constant 0 : index
    %c148_71 = arith.constant 148 : index
    %57 = vector.load %arg14[%c0_70, %c148_71] : memref<16x1280xbf16, #tpu.memory_space<vmem>>, vector<8x1024xbf16>
    %c56_72 = arith.constant 56 : index
    %c0_73 = arith.constant 0 : index
    %58 = vector.load %arg15[%c56_72, %c0_73] : memref<144x1024xbf16, #tpu.memory_space<vmem>>, vector<8x1024xbf16>
    tpu.vector_store %arg15[%c56_72, %c0_73], %57 {strides = array<i32>} : memref<144x1024xbf16, #tpu.memory_space<vmem>>, vector<8x1024xbf16>,
    %c0_74 = arith.constant 0 : index
    %c149_75 = arith.constant 149 : index
    %59 = vector.load %arg14[%c0_74, %c149_75] : memref<16x1280xbf16, #tpu.memory_space<vmem>>, vector<8x1024xbf16>
    %c64_76 = arith.constant 64 : index
    %c0_77 = arith.constant 0 : index
    %60 = vector.load %arg15[%c64_76, %c0_77] : memref<144x1024xbf16, #tpu.memory_space<vmem>>, vector<8x1024xbf16>
    tpu.vector_store %arg15[%c64_76, %c0_77], %59 {strides = array<i32>} : memref<144x1024xbf16, #tpu.memory_space<vmem>>, vector<8x1024xbf16>,
    %c0_78 = arith.constant 0 : index
    %c0_79 = arith.constant 0 : index
    %61 = vector.load %arg5[%c0_78, %c0_79] : memref<8x72xbf16, #tpu.memory_space<vmem>>, vector<8x72xbf16>
    %c0_80 = arith.constant 0 : index
    %c0_81 = arith.constant 0 : index
    %62 = vector.load %arg15[%c0_80, %c0_81] : memref<144x1024xbf16, #tpu.memory_space<vmem>>, vector<72x1024xbf16>
    %cst_82 = arith.constant dense<0.000000e+00> : vector<8x1024xf32>
    %63 = tpu.matmul %61, %62, %cst_82 {dimension_numbers = #tpu.dot_dimension_numbers<[1], [0], [0], [1], [0, 0, 1, 1], [], []>} : vector<8x72xbf16>, vector<72x1024xbf16>, vector<8x1024xf32> -> vector<8x1024xf32>
    %c0_83 = arith.constant 0 : index
    %c0_84 = arith.constant 0 : index
    %64 = vector.load %arg6[%c0_83, %c0_84] : memref<8x1xf32, #tpu.memory_space<vmem>>, vector<8x1xf32>
    %65 = vector.broadcast %64 : vector<8x1xf32> to vector<8x1024xf32>
    %66 = arith.addf %63, %65 : vector<8x1024xf32>
    %cst_85 = arith.constant 0.000000e+00 : f32
    %67 = vector.broadcast %cst_85 : f32 to vector<8x1024xf32>
    %68 = arith.maximumf %66, %67 : vector<8x1024xf32>
    %69 = vector.broadcast %0 : vector<1x1024xf32> to vector<8x1024xf32>
    %70 = arith.mulf %68, %69 : vector<8x1024xf32>
    %71 = arith.truncf %70 : vector<8x1024xf32> to vector<8x1024xbf16>
    %c0_86 = arith.constant 0 : index
    %c128_87 = arith.constant 128 : index
    %72 = vector.load %arg14[%c0_86, %c128_87] : memref<16x1280xbf16, #tpu.memory_space<vmem>>, vector<8x1024xbf16>
    tpu.vector_store %arg14[%c0_86, %c128_87], %71 {strides = array<i32>} : memref<16x1280xbf16, #tpu.memory_space<vmem>>, vector<8x1024xbf16>,
    %c0_88 = arith.constant 0 : index
    %c86 = arith.constant 86 : index
    %73 = vector.load %arg14[%c0_88, %c86] : memref<16x1280xbf16, #tpu.memory_space<vmem>>, vector<8x1024xbf16>
    %c0_89 = arith.constant 0 : index
    %c0_90 = arith.constant 0 : index
    %74 = vector.load %arg15[%c0_89, %c0_90] : memref<144x1024xbf16, #tpu.memory_space<vmem>>, vector<8x1024xbf16>
    tpu.vector_store %arg15[%c0_89, %c0_90], %73 {strides = array<i32>} : memref<144x1024xbf16, #tpu.memory_space<vmem>>, vector<8x1024xbf16>,
    %c0_91 = arith.constant 0 : index
    %c88 = arith.constant 88 : index
    %75 = vector.load %arg14[%c0_91, %c88] : memref<16x1280xbf16, #tpu.memory_space<vmem>>, vector<8x1024xbf16>
    %c8_92 = arith.constant 8 : index
    %c0_93 = arith.constant 0 : index
    %76 = vector.load %arg15[%c8_92, %c0_93] : memref<144x1024xbf16, #tpu.memory_space<vmem>>, vector<8x1024xbf16>
    tpu.vector_store %arg15[%c8_92, %c0_93], %75 {strides = array<i32>} : memref<144x1024xbf16, #tpu.memory_space<vmem>>, vector<8x1024xbf16>,
    %c0_94 = arith.constant 0 : index
    %c90 = arith.constant 90 : index
    %77 = vector.load %arg14[%c0_94, %c90] : memref<16x1280xbf16, #tpu.memory_space<vmem>>, vector<8x1024xbf16>
    %c16_95 = arith.constant 16 : index
    %c0_96 = arith.constant 0 : index
    %78 = vector.load %arg15[%c16_95, %c0_96] : memref<144x1024xbf16, #tpu.memory_space<vmem>>, vector<8x1024xbf16>
    tpu.vector_store %arg15[%c16_95, %c0_96], %77 {strides = array<i32>} : memref<144x1024xbf16, #tpu.memory_space<vmem>>, vector<8x1024xbf16>,
    %c0_97 = arith.constant 0 : index
    %c126 = arith.constant 126 : index
    %79 = vector.load %arg14[%c0_97, %c126] : memref<16x1280xbf16, #tpu.memory_space<vmem>>, vector<8x1024xbf16>
    %c24_98 = arith.constant 24 : index
    %c0_99 = arith.constant 0 : index
    %80 = vector.load %arg15[%c24_98, %c0_99] : memref<144x1024xbf16, #tpu.memory_space<vmem>>, vector<8x1024xbf16>
    tpu.vector_store %arg15[%c24_98, %c0_99], %79 {strides = array<i32>} : memref<144x1024xbf16, #tpu.memory_space<vmem>>, vector<8x1024xbf16>,
    %c0_100 = arith.constant 0 : index
    %c128_101 = arith.constant 128 : index
    %81 = vector.load %arg14[%c0_100, %c128_101] : memref<16x1280xbf16, #tpu.memory_space<vmem>>, vector<8x1024xbf16>
    %c32_102 = arith.constant 32 : index
    %c0_103 = arith.constant 0 : index
    %82 = vector.load %arg15[%c32_102, %c0_103] : memref<144x1024xbf16, #tpu.memory_space<vmem>>, vector<8x1024xbf16>
    tpu.vector_store %arg15[%c32_102, %c0_103], %81 {strides = array<i32>} : memref<144x1024xbf16, #tpu.memory_space<vmem>>, vector<8x1024xbf16>,
    %c0_104 = arith.constant 0 : index
    %c130 = arith.constant 130 : index
    %83 = vector.load %arg14[%c0_104, %c130] : memref<16x1280xbf16, #tpu.memory_space<vmem>>, vector<8x1024xbf16>
    %c40_105 = arith.constant 40 : index
    %c0_106 = arith.constant 0 : index
    %84 = vector.load %arg15[%c40_105, %c0_106] : memref<144x1024xbf16, #tpu.memory_space<vmem>>, vector<8x1024xbf16>
    tpu.vector_store %arg15[%c40_105, %c0_106], %83 {strides = array<i32>} : memref<144x1024xbf16, #tpu.memory_space<vmem>>, vector<8x1024xbf16>,
    %c0_107 = arith.constant 0 : index
    %c166 = arith.constant 166 : index
    %85 = vector.load %arg14[%c0_107, %c166] : memref<16x1280xbf16, #tpu.memory_space<vmem>>, vector<8x1024xbf16>
    %c48_108 = arith.constant 48 : index
    %c0_109 = arith.constant 0 : index
    %86 = vector.load %arg15[%c48_108, %c0_109] : memref<144x1024xbf16, #tpu.memory_space<vmem>>, vector<8x1024xbf16>
    tpu.vector_store %arg15[%c48_108, %c0_109], %85 {strides = array<i32>} : memref<144x1024xbf16, #tpu.memory_space<vmem>>, vector<8x1024xbf16>,
    %c0_110 = arith.constant 0 : index
    %c168 = arith.constant 168 : index
    %87 = vector.load %arg14[%c0_110, %c168] : memref<16x1280xbf16, #tpu.memory_space<vmem>>, vector<8x1024xbf16>
    %c56_111 = arith.constant 56 : index
    %c0_112 = arith.constant 0 : index
    %88 = vector.load %arg15[%c56_111, %c0_112] : memref<144x1024xbf16, #tpu.memory_space<vmem>>, vector<8x1024xbf16>
    tpu.vector_store %arg15[%c56_111, %c0_112], %87 {strides = array<i32>} : memref<144x1024xbf16, #tpu.memory_space<vmem>>, vector<8x1024xbf16>,
    %c0_113 = arith.constant 0 : index
    %c170 = arith.constant 170 : index
    %89 = vector.load %arg14[%c0_113, %c170] : memref<16x1280xbf16, #tpu.memory_space<vmem>>, vector<8x1024xbf16>
    %c64_114 = arith.constant 64 : index
    %c0_115 = arith.constant 0 : index
    %90 = vector.load %arg15[%c64_114, %c0_115] : memref<144x1024xbf16, #tpu.memory_space<vmem>>, vector<8x1024xbf16>
    tpu.vector_store %arg15[%c64_114, %c0_115], %89 {strides = array<i32>} : memref<144x1024xbf16, #tpu.memory_space<vmem>>, vector<8x1024xbf16>,
    %c0_116 = arith.constant 0 : index
    %c0_117 = arith.constant 0 : index
    %91 = vector.load %arg7[%c0_116, %c0_117] : memref<8x72xbf16, #tpu.memory_space<vmem>>, vector<8x72xbf16>
    %c0_118 = arith.constant 0 : index
    %c0_119 = arith.constant 0 : index
    %92 = vector.load %arg15[%c0_118, %c0_119] : memref<144x1024xbf16, #tpu.memory_space<vmem>>, vector<72x1024xbf16>
    %cst_120 = arith.constant dense<0.000000e+00> : vector<8x1024xf32>
    %93 = tpu.matmul %91, %92, %cst_120 {dimension_numbers = #tpu.dot_dimension_numbers<[1], [0], [0], [1], [0, 0, 1, 1], [], []>} : vector<8x72xbf16>, vector<72x1024xbf16>, vector<8x1024xf32> -> vector<8x1024xf32>
    %c0_121 = arith.constant 0 : index
    %c0_122 = arith.constant 0 : index
    %94 = vector.load %arg8[%c0_121, %c0_122] : memref<8x1xf32, #tpu.memory_space<vmem>>, vector<8x1xf32>
    %95 = vector.broadcast %94 : vector<8x1xf32> to vector<8x1024xf32>
    %96 = arith.addf %93, %95 : vector<8x1024xf32>
    %cst_123 = arith.constant 0.000000e+00 : f32
    %97 = vector.broadcast %cst_123 : f32 to vector<8x1024xf32>
    %98 = arith.maximumf %96, %97 : vector<8x1024xf32>
    %99 = vector.broadcast %0 : vector<1x1024xf32> to vector<8x1024xf32>
    %100 = arith.mulf %98, %99 : vector<8x1024xf32>
    %101 = arith.truncf %100 : vector<8x1024xf32> to vector<8x1024xbf16>
    %c8_124 = arith.constant 8 : index
    %c128_125 = arith.constant 128 : index
    %102 = vector.load %arg14[%c8_124, %c128_125] : memref<16x1280xbf16, #tpu.memory_space<vmem>>, vector<8x1024xbf16>
    tpu.vector_store %arg14[%c8_124, %c128_125], %101 {strides = array<i32>} : memref<16x1280xbf16, #tpu.memory_space<vmem>>, vector<8x1024xbf16>,
    %c0_126 = arith.constant 0 : index
    %c107_127 = arith.constant 107 : index
    %103 = vector.load %arg14[%c0_126, %c107_127] : memref<16x1280xbf16, #tpu.memory_space<vmem>>, vector<16x1024xbf16>
    %c0_128 = arith.constant 0 : index
    %c0_129 = arith.constant 0 : index
    %104 = vector.load %arg15[%c0_128, %c0_129] : memref<144x1024xbf16, #tpu.memory_space<vmem>>, vector<16x1024xbf16>
    tpu.vector_store %arg15[%c0_128, %c0_129], %103 {strides = array<i32>} : memref<144x1024xbf16, #tpu.memory_space<vmem>>, vector<16x1024xbf16>,
    %c0_130 = arith.constant 0 : index
    %c108_131 = arith.constant 108 : index
    %105 = vector.load %arg14[%c0_130, %c108_131] : memref<16x1280xbf16, #tpu.memory_space<vmem>>, vector<16x1024xbf16>
    %c16_132 = arith.constant 16 : index
    %c0_133 = arith.constant 0 : index
    %106 = vector.load %arg15[%c16_132, %c0_133] : memref<144x1024xbf16, #tpu.memory_space<vmem>>, vector<16x1024xbf16>
    tpu.vector_store %arg15[%c16_132, %c0_133], %105 {strides = array<i32>} : memref<144x1024xbf16, #tpu.memory_space<vmem>>, vector<16x1024xbf16>,
    %c0_134 = arith.constant 0 : index
    %c109_135 = arith.constant 109 : index
    %107 = vector.load %arg14[%c0_134, %c109_135] : memref<16x1280xbf16, #tpu.memory_space<vmem>>, vector<16x1024xbf16>
    %c32_136 = arith.constant 32 : index
    %c0_137 = arith.constant 0 : index
    %108 = vector.load %arg15[%c32_136, %c0_137] : memref<144x1024xbf16, #tpu.memory_space<vmem>>, vector<16x1024xbf16>
    tpu.vector_store %arg15[%c32_136, %c0_137], %107 {strides = array<i32>} : memref<144x1024xbf16, #tpu.memory_space<vmem>>, vector<16x1024xbf16>,
    %c0_138 = arith.constant 0 : index
    %c127_139 = arith.constant 127 : index
    %109 = vector.load %arg14[%c0_138, %c127_139] : memref<16x1280xbf16, #tpu.memory_space<vmem>>, vector<16x1024xbf16>
    %c48_140 = arith.constant 48 : index
    %c0_141 = arith.constant 0 : index
    %110 = vector.load %arg15[%c48_140, %c0_141] : memref<144x1024xbf16, #tpu.memory_space<vmem>>, vector<16x1024xbf16>
    tpu.vector_store %arg15[%c48_140, %c0_141], %109 {strides = array<i32>} : memref<144x1024xbf16, #tpu.memory_space<vmem>>, vector<16x1024xbf16>,
    %c0_142 = arith.constant 0 : index
    %c128_143 = arith.constant 128 : index
    %111 = vector.load %arg14[%c0_142, %c128_143] : memref<16x1280xbf16, #tpu.memory_space<vmem>>, vector<16x1024xbf16>
    %c64_144 = arith.constant 64 : index
    %c0_145 = arith.constant 0 : index
    %112 = vector.load %arg15[%c64_144, %c0_145] : memref<144x1024xbf16, #tpu.memory_space<vmem>>, vector<16x1024xbf16>
    tpu.vector_store %arg15[%c64_144, %c0_145], %111 {strides = array<i32>} : memref<144x1024xbf16, #tpu.memory_space<vmem>>, vector<16x1024xbf16>,
    %c0_146 = arith.constant 0 : index
    %c129_147 = arith.constant 129 : index
    %113 = vector.load %arg14[%c0_146, %c129_147] : memref<16x1280xbf16, #tpu.memory_space<vmem>>, vector<16x1024xbf16>
    %c80 = arith.constant 80 : index
    %c0_148 = arith.constant 0 : index
    %114 = vector.load %arg15[%c80, %c0_148] : memref<144x1024xbf16, #tpu.memory_space<vmem>>, vector<16x1024xbf16>
    tpu.vector_store %arg15[%c80, %c0_148], %113 {strides = array<i32>} : memref<144x1024xbf16, #tpu.memory_space<vmem>>, vector<16x1024xbf16>,
    %c0_149 = arith.constant 0 : index
    %c147_150 = arith.constant 147 : index
    %115 = vector.load %arg14[%c0_149, %c147_150] : memref<16x1280xbf16, #tpu.memory_space<vmem>>, vector<16x1024xbf16>
    %c96 = arith.constant 96 : index
    %c0_151 = arith.constant 0 : index
    %116 = vector.load %arg15[%c96, %c0_151] : memref<144x1024xbf16, #tpu.memory_space<vmem>>, vector<16x1024xbf16>
    tpu.vector_store %arg15[%c96, %c0_151], %115 {strides = array<i32>} : memref<144x1024xbf16, #tpu.memory_space<vmem>>, vector<16x1024xbf16>,
    %c0_152 = arith.constant 0 : index
    %c148_153 = arith.constant 148 : index
    %117 = vector.load %arg14[%c0_152, %c148_153] : memref<16x1280xbf16, #tpu.memory_space<vmem>>, vector<16x1024xbf16>
    %c112 = arith.constant 112 : index
    %c0_154 = arith.constant 0 : index
    %118 = vector.load %arg15[%c112, %c0_154] : memref<144x1024xbf16, #tpu.memory_space<vmem>>, vector<16x1024xbf16>
    tpu.vector_store %arg15[%c112, %c0_154], %117 {strides = array<i32>} : memref<144x1024xbf16, #tpu.memory_space<vmem>>, vector<16x1024xbf16>,
    %c0_155 = arith.constant 0 : index
    %c149_156 = arith.constant 149 : index
    %119 = vector.load %arg14[%c0_155, %c149_156] : memref<16x1280xbf16, #tpu.memory_space<vmem>>, vector<16x1024xbf16>
    %c128_157 = arith.constant 128 : index
    %c0_158 = arith.constant 0 : index
    %120 = vector.load %arg15[%c128_157, %c0_158] : memref<144x1024xbf16, #tpu.memory_space<vmem>>, vector<16x1024xbf16>
    tpu.vector_store %arg15[%c128_157, %c0_158], %119 {strides = array<i32>} : memref<144x1024xbf16, #tpu.memory_space<vmem>>, vector<16x1024xbf16>,
    %c0_159 = arith.constant 0 : index
    %c0_160 = arith.constant 0 : index
    %121 = vector.load %arg9[%c0_159, %c0_160] : memref<8x144xbf16, #tpu.memory_space<vmem>>, vector<8x144xbf16>
    %c0_161 = arith.constant 0 : index
    %c0_162 = arith.constant 0 : index
    %122 = vector.load %arg15[%c0_161, %c0_162] : memref<144x1024xbf16, #tpu.memory_space<vmem>>, vector<144x1024xbf16>
    %cst_163 = arith.constant dense<0.000000e+00> : vector<8x1024xf32>
    %123 = tpu.matmul %121, %122, %cst_163 {dimension_numbers = #tpu.dot_dimension_numbers<[1], [0], [0], [1], [0, 0, 1, 1], [], []>} : vector<8x144xbf16>, vector<144x1024xbf16>, vector<8x1024xf32> -> vector<8x1024xf32>
    %c0_164 = arith.constant 0 : index
    %c0_165 = arith.constant 0 : index
    %124 = vector.load %arg10[%c0_164, %c0_165] : memref<8x1xf32, #tpu.memory_space<vmem>>, vector<8x1xf32>
    %125 = vector.broadcast %124 : vector<8x1xf32> to vector<8x1024xf32>
    %126 = arith.addf %123, %125 : vector<8x1024xf32>
    %cst_166 = arith.constant 0.000000e+00 : f32
    %127 = vector.broadcast %cst_166 : f32 to vector<8x1024xf32>
    %128 = arith.maximumf %126, %127 : vector<8x1024xf32>
    %129 = vector.broadcast %0 : vector<1x1024xf32> to vector<8x1024xf32>
    %130 = arith.mulf %128, %129 : vector<8x1024xf32>
    %131 = arith.truncf %40 : vector<8x1024xf32> to vector<8x1024xbf16>
    %c0_167 = arith.constant 0 : index
    %c128_168 = arith.constant 128 : index
    %132 = vector.load %arg14[%c0_167, %c128_168] : memref<16x1280xbf16, #tpu.memory_space<vmem>>, vector<8x1024xbf16>
    tpu.vector_store %arg14[%c0_167, %c128_168], %131 {strides = array<i32>} : memref<16x1280xbf16, #tpu.memory_space<vmem>>, vector<8x1024xbf16>,
    %133 = arith.truncf %130 : vector<8x1024xf32> to vector<8x1024xbf16>
    %c8_169 = arith.constant 8 : index
    %c128_170 = arith.constant 128 : index
    %134 = vector.load %arg14[%c8_169, %c128_170] : memref<16x1280xbf16, #tpu.memory_space<vmem>>, vector<8x1024xbf16>
    tpu.vector_store %arg14[%c8_169, %c128_170], %133 {strides = array<i32>} : memref<16x1280xbf16, #tpu.memory_space<vmem>>, vector<8x1024xbf16>,
    %c0_171 = arith.constant 0 : index
    %c107_172 = arith.constant 107 : index
    %135 = vector.load %arg14[%c0_171, %c107_172] : memref<16x1280xbf16, #tpu.memory_space<vmem>>, vector<16x1024xbf16>
    %c0_173 = arith.constant 0 : index
    %c0_174 = arith.constant 0 : index
    %136 = vector.load %arg15[%c0_173, %c0_174] : memref<144x1024xbf16, #tpu.memory_space<vmem>>, vector<16x1024xbf16>
    tpu.vector_store %arg15[%c0_173, %c0_174], %135 {strides = array<i32>} : memref<144x1024xbf16, #tpu.memory_space<vmem>>, vector<16x1024xbf16>,
    %c0_175 = arith.constant 0 : index
    %c108_176 = arith.constant 108 : index
    %137 = vector.load %arg14[%c0_175, %c108_176] : memref<16x1280xbf16, #tpu.memory_space<vmem>>, vector<16x1024xbf16>
    %c16_177 = arith.constant 16 : index
    %c0_178 = arith.constant 0 : index
    %138 = vector.load %arg15[%c16_177, %c0_178] : memref<144x1024xbf16, #tpu.memory_space<vmem>>, vector<16x1024xbf16>
    tpu.vector_store %arg15[%c16_177, %c0_178], %137 {strides = array<i32>} : memref<144x1024xbf16, #tpu.memory_space<vmem>>, vector<16x1024xbf16>,
    %c0_179 = arith.constant 0 : index
    %c109_180 = arith.constant 109 : index
    %139 = vector.load %arg14[%c0_179, %c109_180] : memref<16x1280xbf16, #tpu.memory_space<vmem>>, vector<16x1024xbf16>
    %c32_181 = arith.constant 32 : index
    %c0_182 = arith.constant 0 : index
    %140 = vector.load %arg15[%c32_181, %c0_182] : memref<144x1024xbf16, #tpu.memory_space<vmem>>, vector<16x1024xbf16>
    tpu.vector_store %arg15[%c32_181, %c0_182], %139 {strides = array<i32>} : memref<144x1024xbf16, #tpu.memory_space<vmem>>, vector<16x1024xbf16>,
    %c0_183 = arith.constant 0 : index
    %c127_184 = arith.constant 127 : index
    %141 = vector.load %arg14[%c0_183, %c127_184] : memref<16x1280xbf16, #tpu.memory_space<vmem>>, vector<16x1024xbf16>
    %c48_185 = arith.constant 48 : index
    %c0_186 = arith.constant 0 : index
    %142 = vector.load %arg15[%c48_185, %c0_186] : memref<144x1024xbf16, #tpu.memory_space<vmem>>, vector<16x1024xbf16>
    tpu.vector_store %arg15[%c48_185, %c0_186], %141 {strides = array<i32>} : memref<144x1024xbf16, #tpu.memory_space<vmem>>, vector<16x1024xbf16>,
    %c0_187 = arith.constant 0 : index
    %c128_188 = arith.constant 128 : index
    %143 = vector.load %arg14[%c0_187, %c128_188] : memref<16x1280xbf16, #tpu.memory_space<vmem>>, vector<16x1024xbf16>
    %c64_189 = arith.constant 64 : index
    %c0_190 = arith.constant 0 : index
    %144 = vector.load %arg15[%c64_189, %c0_190] : memref<144x1024xbf16, #tpu.memory_space<vmem>>, vector<16x1024xbf16>
    tpu.vector_store %arg15[%c64_189, %c0_190], %143 {strides = array<i32>} : memref<144x1024xbf16, #tpu.memory_space<vmem>>, vector<16x1024xbf16>,
    %c0_191 = arith.constant 0 : index
    %c129_192 = arith.constant 129 : index
    %145 = vector.load %arg14[%c0_191, %c129_192] : memref<16x1280xbf16, #tpu.memory_space<vmem>>, vector<16x1024xbf16>
    %c80_193 = arith.constant 80 : index
    %c0_194 = arith.constant 0 : index
    %146 = vector.load %arg15[%c80_193, %c0_194] : memref<144x1024xbf16, #tpu.memory_space<vmem>>, vector<16x1024xbf16>
    tpu.vector_store %arg15[%c80_193, %c0_194], %145 {strides = array<i32>} : memref<144x1024xbf16, #tpu.memory_space<vmem>>, vector<16x1024xbf16>,
    %c0_195 = arith.constant 0 : index
    %c147_196 = arith.constant 147 : index
    %147 = vector.load %arg14[%c0_195, %c147_196] : memref<16x1280xbf16, #tpu.memory_space<vmem>>, vector<16x1024xbf16>
    %c96_197 = arith.constant 96 : index
    %c0_198 = arith.constant 0 : index
    %148 = vector.load %arg15[%c96_197, %c0_198] : memref<144x1024xbf16, #tpu.memory_space<vmem>>, vector<16x1024xbf16>
    tpu.vector_store %arg15[%c96_197, %c0_198], %147 {strides = array<i32>} : memref<144x1024xbf16, #tpu.memory_space<vmem>>, vector<16x1024xbf16>,
    %c0_199 = arith.constant 0 : index
    %c148_200 = arith.constant 148 : index
    %149 = vector.load %arg14[%c0_199, %c148_200] : memref<16x1280xbf16, #tpu.memory_space<vmem>>, vector<16x1024xbf16>
    %c112_201 = arith.constant 112 : index
    %c0_202 = arith.constant 0 : index
    %150 = vector.load %arg15[%c112_201, %c0_202] : memref<144x1024xbf16, #tpu.memory_space<vmem>>, vector<16x1024xbf16>
    tpu.vector_store %arg15[%c112_201, %c0_202], %149 {strides = array<i32>} : memref<144x1024xbf16, #tpu.memory_space<vmem>>, vector<16x1024xbf16>,
    %c0_203 = arith.constant 0 : index
    %c149_204 = arith.constant 149 : index
    %151 = vector.load %arg14[%c0_203, %c149_204] : memref<16x1280xbf16, #tpu.memory_space<vmem>>, vector<16x1024xbf16>
    %c128_205 = arith.constant 128 : index
    %c0_206 = arith.constant 0 : index
    %152 = vector.load %arg15[%c128_205, %c0_206] : memref<144x1024xbf16, #tpu.memory_space<vmem>>, vector<16x1024xbf16>
    tpu.vector_store %arg15[%c128_205, %c0_206], %151 {strides = array<i32>} : memref<144x1024xbf16, #tpu.memory_space<vmem>>, vector<16x1024xbf16>,
    %c0_207 = arith.constant 0 : index
    %c0_208 = arith.constant 0 : index
    %153 = vector.load %arg11[%c0_207, %c0_208] : memref<4x144xbf16, #tpu.memory_space<vmem>>, vector<4x144xbf16>
    %c0_209 = arith.constant 0 : index
    %c0_210 = arith.constant 0 : index
    %154 = vector.load %arg15[%c0_209, %c0_210] : memref<144x1024xbf16, #tpu.memory_space<vmem>>, vector<144x1024xbf16>
    %cst_211 = arith.constant dense<0.000000e+00> : vector<4x1024xf32>
    %155 = tpu.matmul %153, %154, %cst_211 {dimension_numbers = #tpu.dot_dimension_numbers<[1], [0], [0], [1], [0, 0, 1, 1], [], []>} : vector<4x144xbf16>, vector<144x1024xbf16>, vector<4x1024xf32> -> vector<4x1024xf32>
    %c0_212 = arith.constant 0 : index
    %c0_213 = arith.constant 0 : index
    %156 = vector.load %arg12[%c0_212, %c0_213] : memref<4x1xf32, #tpu.memory_space<vmem>>, vector<4x1xf32>
    %157 = vector.broadcast %156 : vector<4x1xf32> to vector<4x1024xf32>
    %158 = arith.addf %155, %157 : vector<4x1024xf32>
    %cst_214 = arith.constant 0.000000e+00 : f32
    %159 = vector.broadcast %cst_214 : f32 to vector<4x1024xf32>
    %160 = arith.maximumf %158, %159 : vector<4x1024xf32>
    %161 = vector.broadcast %0 : vector<1x1024xf32> to vector<4x1024xf32>
    %162 = arith.mulf %160, %161 : vector<4x1024xf32>
    %163 = vector.extract_strided_slice %162 {offsets = [0, 0], sizes = [4, 512], strides = [1, 1]} : vector<4x1024xf32> to vector<4x512xf32>
    %c0_215 = arith.constant 0 : index
    %c0_216 = arith.constant 0 : index
    %c0_217 = arith.constant 0 : index
    %164 = vector.load %arg13[%c0_215, %c0_216, %c0_217] : memref<2x4x512xf32, #tpu.memory_space<vmem>>, vector<1x4x512xf32>
    %165 = vector.shape_cast %164 : vector<1x4x512xf32> to vector<4x512xf32>
    %166 = vector.shape_cast %163 : vector<4x512xf32> to vector<1x4x512xf32>
    tpu.vector_store %arg13[%c0_215, %c0_216, %c0_217], %166 {strides = array<i32>} : memref<2x4x512xf32, #tpu.memory_space<vmem>>, vector<1x4x512xf32>,
    %167 = vector.extract_strided_slice %162 {offsets = [0, 512], sizes = [4, 512], strides = [1, 1]} : vector<4x1024xf32> to vector<4x512xf32>
    %c1_218 = arith.constant 1 : index
    %c0_219 = arith.constant 0 : index
    %c0_220 = arith.constant 0 : index
    %168 = vector.load %arg13[%c1_218, %c0_219, %c0_220] : memref<2x4x512xf32, #tpu.memory_space<vmem>>, vector<1x4x512xf32>
    %169 = vector.shape_cast %168 : vector<1x4x512xf32> to vector<4x512xf32>
    %170 = vector.shape_cast %167 : vector<4x512xf32> to vector<1x4x512xf32>
    tpu.vector_store %arg13[%c1_218, %c0_219, %c0_220], %170 {strides = array<i32>} : memref<2x4x512xf32, #tpu.memory_space<vmem>>, vector<1x4x512xf32>,
    return
  }
  func.func @transform_0(%arg0: i32) -> (i32, i32, i32) {
    %c0_i32 = arith.constant 0 : i32
    %c0_i32_0 = arith.constant 0 : i32
    %c0_i32_1 = arith.constant 0 : i32
    return %arg0, %c0_i32, %c0_i32_0 : i32, i32, i32
  }
  func.func @transform_1(%arg0: i32) -> (i32, i32) {
    %c0_i32 = arith.constant 0 : i32
    %c0_i32_0 = arith.constant 0 : i32
    %c0_i32_1 = arith.constant 0 : i32
    return %c0_i32, %c0_i32_0 : i32, i32
  }
  func.func @transform_2(%arg0: i32) -> (i32, i32) {
    %c0_i32 = arith.constant 0 : i32
    %c0_i32_0 = arith.constant 0 : i32
    %c0_i32_1 = arith.constant 0 : i32
    return %c0_i32, %c0_i32_0 : i32, i32
  }
  func.func @transform_3(%arg0: i32) -> (i32, i32) {
    %c0_i32 = arith.constant 0 : i32
    %c0_i32_0 = arith.constant 0 : i32
    %c0_i32_1 = arith.constant 0 : i32
    return %c0_i32, %c0_i32_0 : i32, i32
  }
  func.func @transform_4(%arg0: i32) -> (i32, i32) {
    %c0_i32 = arith.constant 0 : i32
    %c0_i32_0 = arith.constant 0 : i32
    %c0_i32_1 = arith.constant 0 : i32
    return %c0_i32, %c0_i32_0 : i32, i32
  }
  func.func @transform_5(%arg0: i32) -> (i32, i32) {
    %c0_i32 = arith.constant 0 : i32
    %c0_i32_0 = arith.constant 0 : i32
    %c0_i32_1 = arith.constant 0 : i32
    return %c0_i32, %c0_i32_0 : i32, i32
  }
  func.func @transform_6(%arg0: i32) -> (i32, i32) {
    %c0_i32 = arith.constant 0 : i32
    %c0_i32_0 = arith.constant 0 : i32
    %c0_i32_1 = arith.constant 0 : i32
    return %c0_i32, %c0_i32_0 : i32, i32
  }
  func.func @transform_7(%arg0: i32) -> (i32, i32) {
    %c0_i32 = arith.constant 0 : i32
    %c0_i32_0 = arith.constant 0 : i32
    %c0_i32_1 = arith.constant 0 : i32
    return %c0_i32, %c0_i32_0 : i32, i32
  }
  func.func @transform_8(%arg0: i32) -> (i32, i32) {
    %c0_i32 = arith.constant 0 : i32
    %c0_i32_0 = arith.constant 0 : i32
    %c0_i32_1 = arith.constant 0 : i32
    return %c0_i32, %c0_i32_0 : i32, i32
  }
  func.func @transform_9(%arg0: i32) -> (i32, i32) {
    %c0_i32 = arith.constant 0 : i32
    %c0_i32_0 = arith.constant 0 : i32
    %c0_i32_1 = arith.constant 0 : i32
    return %c0_i32, %c0_i32_0 : i32, i32
  }
  func.func @transform_10(%arg0: i32) -> (i32, i32) {
    %c0_i32 = arith.constant 0 : i32
    %c0_i32_0 = arith.constant 0 : i32
    %c0_i32_1 = arith.constant 0 : i32
    return %c0_i32, %c0_i32_0 : i32, i32
  }
  func.func @transform_11(%arg0: i32) -> (i32, i32) {
    %c0_i32 = arith.constant 0 : i32
    %c0_i32_0 = arith.constant 0 : i32
    %c0_i32_1 = arith.constant 0 : i32
    return %c0_i32, %c0_i32_0 : i32, i32
  }
  func.func @transform_12(%arg0: i32) -> (i32, i32, i32) {
    %c0_i32 = arith.constant 0 : i32
    %c0_i32_0 = arith.constant 0 : i32
    %c0_i32_1 = arith.constant 0 : i32
    return %arg0, %c0_i32, %c0_i32_0 : i32, i32, i32
  }
}

</mosaic_0001>

<bundles_post_ra>
// kernel: ugroup_forward.1
= control target key start
LH: loop header
LB: loop body
LE: loop exit
PB: predicated region body
PF: predicated region fallthrough
CT: control target
= control target key end

     0   :  { %v4230_v0 = vmov 0   ;;  %s4231_s19 = smov 21   ;;  %s4232_s20 = smov 20   ;;  %vm106_vm0 = vcmask 171008   ;;  %vm176_vm1 = vcmask 162816   ;;  %vm237_vm2 = vcmask 154624   ;;  %s5758_s0 = inlined_call_operand.vmem [shape: f32[2,8,512], index: 0, kind: input, shape index: {}]   ;;  %s5759_s3 = inlined_call_operand.vmem [shape: f32[8,1], index: 3, kind: input, shape index: {}]   ;;  %s5760_s2 = inlined_call_operand.vmem [shape: bf16[8,72], index: 2, kind: input, shape index: {}]   ;;  %s5761_s1 = inlined_call_operand.vmem [shape: f32[1,1024], index: 1, kind: input, shape index: {}]   ;;  %s5762_s5 = inlined_call_operand.vmem [shape: f32[8,1], index: 5, kind: input, shape index: {}]   ;;  %s5763_s4 = inlined_call_operand.vmem [shape: bf16[8,72], index: 4, kind: input, shape index: {}]   ;;  %s5764_s7 = inlined_call_operand.vmem [shape: f32[8,1], index: 7, kind: input, shape index: {}]   ;;  %s5765_s6 = inlined_call_operand.vmem [shape: bf16[8,72], index: 6, kind: input, shape index: {}]   ;;  %s5766_s8 = inlined_call_operand.vmem [shape: bf16[8,144], index: 8, kind: input, shape index: {}]   ;;  %s5767_s9 = inlined_call_operand.vmem [shape: f32[8,1], index: 9, kind: input, shape index: {}]   ;;  %s5768_s10 = inlined_call_operand.vmem [shape: bf16[4,144], index: 10, kind: input, shape index: {}]   ;;  %s5769_s11 = inlined_call_operand.vmem [shape: f32[4,1], index: 11, kind: input, shape index: {}]   ;;  %s5770_s12 = inlined_call_operand.vmem [shape: f32[2,4,512], index: 12, kind: output, shape index: {}]  }
   0x1   :  { %43 = vst [vmem:[#allocation2] sm:$0xff] %v4230_v0  ;;  %44 = vst [vmem:[#allocation2 + $0x48] sm:$0xff] %v4230_v0  ;;  %v45_v1 = vld [vmem:[%s5758_s0] sm:$0xff]  ;;  %v46_v2 = vld [vmem:[%s5758_s0 + $0x8] sm:$0xff]  ;;  %718 = vmatprep.mubr.bf16.mxu0 %v4230_v0  ;;  %759 = vmatprep.mubr.bf16.mxu1 %v4230_v0  ;;  %s4234_s21 = smov 1   ;;  %s4235_s22 = smov 127  }
   0x2   :  { %v47_v3 = vld [vmem:[%s5758_s0 + $0x10] sm:$0xff]  ;;  %v49_v4 = vpack.c.bf16 %v45_v1, %v45_v1  ;;  %v50_v5 = vpack.c.bf16 %v46_v2, %v46_v2  ;;  %v48_v7 = vld [vmem:[%s5758_s0 + $0x18] sm:$0xff]  ;;  %v4165_v8 = vld [vmem:[%s5758_s0 + $0x20] sm:$0xff]  ;;  %4223 = vset.pattern.permute.xlu0 %v4230_v0  ;;  %4224 = vset.pattern.permute.xlu1 %v4230_v0  ;;  %s4236_s23 = smov 109   ;;  %s4237_s24 = smov 108   ;;  %vm307_vm3 = vcmask 7168  }
   0x3   :  { %v51_v6 = vpack.c.bf16 %v47_v3, %v47_v3  ;;  %v4166_v9 = vld [vmem:[%s5758_s0 + $0x28] sm:$0xff]  ;;  %v52_v10 = vpack.c.bf16 %v48_v7, %v48_v7  ;;  %v62_v11 = vpack.c.bf16 %v4165_v8, %v4165_v8  ;;  %v4167_v13 = vld [vmem:[%s5758_s0 + $0x30] sm:$0xff]  ;;  %v4168_v14 = vld [vmem:[%s5758_s0 + $0x38] sm:$0xff]  ;;  %s4233_s0 = smov 19   ;;  %s4238_s25 = smov 107   ;;  %vm393_vm4 = vcmask 1039360  }
   0x4   :  { %v63_v12 = vpack.c.bf16 %v4166_v9, %v4166_v9  ;;  %53 = vst [vmem:[#allocation2 + $0x8] sm:$0xf] %v49_v4  ;;  %54 = vst [vmem:[#allocation2 + $0x10] sm:$0xf] %v50_v5  ;;  %v64_v15 = vpack.c.bf16 %v4167_v13, %v4167_v13  ;;  %v65_v16 = vpack.c.bf16 %v4168_v14, %v4168_v14  ;;  %vm454_vm5 = vcmask 891904   ;;  %s4240_s14 = smov 40  }
   0x5   :  { %55 = vst [vmem:[#allocation2 + $0x18] sm:$0xf] %v51_v6  ;;  %56 = vst [vmem:[#allocation2 + $0x20] sm:$0xf] %v52_v10  ;;  %vm5772_vm6 = vcmask 883712   ;;  %vm5771_vm7 = vcmask 875520  }
   0x6   :  { %66 = vst [vmem:[#allocation2 + $0x28] sm:$0xf] %v62_v11  ;;  %67 = vst [vmem:[#allocation2 + $0x30] sm:$0xf] %v63_v12  ;;  %vm661_vm8 = vcmask 1043456   ;;  %vm657_vm9 = vcmask 588800  }
   0x7   :  { %68 = vst [vmem:[#allocation2 + $0x38] sm:$0xf] %v64_v15  ;;  %69 = vst [vmem:[#allocation2 + $0x40] sm:$0xf] %v65_v16  ;;  %s4241_s15 = smov 38   ;;  %s4242_s16 = smov 2  }
   0x8   :  { %v70_v17 = vld [vmem:[#allocation2] sm:$0xf]  ;;  %s4243_s17 = smov 126   ;;  %s4244_s18 = smov 90   ;;  %vm1761_vm10 = vcmask 343040   ;;  %vm1892_vm11 = vcmask 310272  }
   0x9   :  { %v131_v18 = vld [vmem:[#allocation2] sm:$0xf]  ;;  %88 = vrot.lane.b32.xlu0 %v70_v17, %s4231_s19  ;;  %s4245_s26 = smov 86   ;;  %s4246_s27 = smov 88   ;;  %vm2240_vm12 = vcmask 703488   ;;  %vm1831_vm13 = vcmask 326656  }
   0xa   :  { %v149_v19 = vrot.slane %v131_v18, 4  ;;  %v262_v32 = vld [vmem:[#allocation2] sm:$0xf]  ;;  %vm1962_vm14 = vcmask 15360   ;;  %vm2109_vm15 = vcmask 736256  }
   0xb   :  { %v71_v20 = vld [vmem:[#allocation2 + $0x8] sm:$0xf]  ;;  %v203_v21 = vld [vmem:[#allocation2 + $0x10] sm:$0xf]  ;;  %v201_v33 = vld [vmem:[#allocation2] sm:$0xf] }
   0xc   :  { %158 = vrot.lane.b32.xlu1 %v149_v19, %s4232_s20  ;;  %v132_v22 = vld [vmem:[#allocation2 + $0x8] sm:$0xf]  ;;  %v72_v23 = vld [vmem:[#allocation2 + $0x10] sm:$0xf]  ;;  %v280_v35 = vrot.slane %v262_v32, 4 }
   0xd   :  { %90 = vrot.lane.b32.xlu0 %v71_v20, %s4231_s19  ;;  %v150_v24 = vrot.slane %v132_v22, 4  ;;  %v133_v25 = vld [vmem:[#allocation2 + $0x10] sm:$0xf]  ;;  %v202_v26 = vld [vmem:[#allocation2 + $0x8] sm:$0xf] }
   0xe   :  { %v263_v27 = vld [vmem:[#allocation2 + $0x8] sm:$0xf]  ;;  %v151_v28 = vrot.slane %v133_v25, 4  ;;  %v264_v29 = vld [vmem:[#allocation2 + $0x10] sm:$0xf] }
   0xf   :  { %v281_v30 = vrot.slane %v263_v27, 4  ;;  %v282_v31 = vrot.slane %v264_v29, 4  ;;  %v349_v34 = vld [vmem:[#allocation2 + $0x10] sm:$0xf]  ;;  %v350_v36 = vld [vmem:[#allocation2 + $0x18] sm:$0xf] }
  0x10   :  { %223 = vrot.lane.b32.xlu1 %v203_v21, %s4233_s0  ;;  %v367_v37 = vrot.slane %v349_v34, 4  ;;  %v348_v38 = vld [vmem:[#allocation2 + $0x8] sm:$0xf]  ;;  %v368_v39 = vrot.slane %v350_v36, 4  ;;  %v73_v41 = vld [vmem:[#allocation2 + $0x18] sm:$0xf] }
  0x11   :  { %92 = vrot.lane.b32.xlu0 %v72_v23, %s4231_s19  ;;  %v366_v40 = vrot.slane %v348_v38, 4  ;;  %v134_v42 = vld [vmem:[#allocation2 + $0x18] sm:$0xf]  ;;  %v74_v43 = vld [vmem:[#allocation2 + $0x20] sm:$0xf] }
  0x12   :  { %v135_v44 = vld [vmem:[#allocation2 + $0x20] sm:$0xf]  ;;  %v152_v45 = vrot.slane %v134_v42, 4  ;;  %v333_v47 = vld [vmem:[#allocation2 + $0x10] sm:$0xf] }
  0x13   :  { %v153_v46 = vrot.slane %v135_v44, 4  ;;  %341 = vst [vmem:[#allocation3 + $0x88] sm:$0xf] %v333_v47  ;;  %v332_v48 = vld [vmem:[#allocation2 + $0x8] sm:$0xf] }
  0x14   :  { %160 = vrot.lane.b32.xlu1 %v150_v24, %s4232_s20  ;;  %v419_v49 = vld [vmem:[#allocation2 + $0x10] sm:$0xf]  ;;  %340 = vst [vmem:[#allocation3 + $0x80] sm:$0xf] %v332_v48  ;;  %v420_v51 = vld [vmem:[#allocation2 + $0x18] sm:$0xf] }
  0x15   :  { %221 = vrot.lane.b32.xlu0 %v202_v26, %s4233_s0  ;;  %v480_v50 = vld [vmem:[#allocation2 + $0x10] sm:$0xf]  ;;  %v481_v52 = vld [vmem:[#allocation2 + $0x18] sm:$0xf]  ;;  %v479_v55 = vld [vmem:[#allocation2 + $0x8] sm:$0xf] }
  0x16   :  { %v498_v53 = vrot.slane %v480_v50, 4  ;;  %v499_v54 = vrot.slane %v481_v52, 4  ;;  %v418_v56 = vld [vmem:[#allocation2 + $0x8] sm:$0xf]  ;;  %v497_v57 = vrot.slane %v479_v55, 4 }
  0x17   :  { %v204_v58 = vld [vmem:[#allocation2 + $0x18] sm:$0xf]  ;;  %v205_v60 = vld [vmem:[#allocation2 + $0x20] sm:$0xf]  ;;  %v549_v3 = vld [vmem:[#allocation2 + $0x8] sm:$0xf] }
  0x18   :  { %162 = vrot.lane.b32.xlu1 %v151_v28, %s4232_s20  ;;  %v265_v59 = vld [vmem:[#allocation2 + $0x18] sm:$0xf]  ;;  %v266_v61 = vld [vmem:[#allocation2 + $0x20] sm:$0xf]  ;;  %v550_v4 = vld [vmem:[#allocation2 + $0x10] sm:$0xf] }
  0x19   :  { %291 = vrot.lane.b32.xlu0 %v281_v30, %s4234_s21  ;;  %v283_v62 = vrot.slane %v265_v59, 4  ;;  %v334_v63 = vld [vmem:[#allocation2 + $0x18] sm:$0xf]  ;;  %v284_v1 = vrot.slane %v266_v61, 4  ;;  %v335_v2 = vld [vmem:[#allocation2 + $0x20] sm:$0xf] }
  0x1a   :  { %342 = vst [vmem:[#allocation3 + $0x90] sm:$0xf] %v334_v63  ;;  %343 = vst [vmem:[#allocation3 + $0x98] sm:$0xf] %v335_v2  ;;  %v351_v5 = vld [vmem:[#allocation2 + $0x20] sm:$0xf] }
  0x1b   :  { %v551_v6 = vld [vmem:[#allocation2 + $0x18] sm:$0xf]  ;;  %v352_v7 = vld [vmem:[#allocation2 + $0x28] sm:$0xf]  ;;  %v369_v8 = vrot.slane %v351_v5, 4 }
  0x1c   :  { %293 = vrot.lane.b32.xlu1 %v282_v31, %s4234_s21  ;;  %v370_v9 = vrot.slane %v352_v7, 4  ;;  %v75_v10 = vld [vmem:[#allocation2 + $0x28] sm:$0xf]  ;;  %v76_v12 = vld [vmem:[#allocation2 + $0x30] sm:$0xf] }
  0x1d   :  { %219 = vrot.lane.b32.xlu0 %v201_v33, %s4233_s0  ;;  %v136_v11 = vld [vmem:[#allocation2 + $0x28] sm:$0xf]  ;;  %v137_v13 = vld [vmem:[#allocation2 + $0x30] sm:$0xf]  ;;  %v421_v16 = vld [vmem:[#allocation2 + $0x20] sm:$0xf] }
  0x1e   :  { %v154_v14 = vrot.slane %v136_v11, 4  ;;  %v155_v15 = vrot.slane %v137_v13, 4  ;;  %v482_v17 = vld [vmem:[#allocation2 + $0x20] sm:$0xf]  ;;  %v422_v18 = vld [vmem:[#allocation2 + $0x28] sm:$0xf] }
  0x1f   :  { %v483_v19 = vld [vmem:[#allocation2 + $0x28] sm:$0xf]  ;;  %v500_v20 = vrot.slane %v482_v17, 4  ;;  %v207_v24 = vld [vmem:[#allocation2 + $0x30] sm:$0xf] }
  0x20   :  { %289 = vrot.lane.b32.xlu1 %v280_v35, %s4234_s21  ;;  %v501_v21 = vrot.slane %v483_v19, 4  ;;  %v206_v22 = vld [vmem:[#allocation2 + $0x28] sm:$0xf]  ;;  %v268_v25 = vld [vmem:[#allocation2 + $0x30] sm:$0xf] }
  0x21   :  { %377 = vrot.lane.b32.xlu0 %v367_v37, %s4235_s22  ;;  %v267_v23 = vld [vmem:[#allocation2 + $0x28] sm:$0xf]  ;;  %v337_v28 = vld [vmem:[#allocation2 + $0x30] sm:$0xf]  ;;  %v286_v29 = vrot.slane %v268_v25, 4 }
  0x22   :  { %v336_v26 = vld [vmem:[#allocation2 + $0x28] sm:$0xf]  ;;  %v285_v27 = vrot.slane %v267_v23, 4  ;;  %345 = vst [vmem:[#allocation3 + $0xa8] sm:$0xf] %v337_v28 }
  0x23   :  { %344 = vst [vmem:[#allocation3 + $0xa0] sm:$0xf] %v336_v26  ;;  %v552_v30 = vld [vmem:[#allocation2 + $0x20] sm:$0xf]  ;;  %v353_v31 = vld [vmem:[#allocation2 + $0x30] sm:$0xf] }
  0x24   :  { %379 = vrot.lane.b32.xlu1 %v368_v39, %s4235_s22  ;;  %v553_v32 = vld [vmem:[#allocation2 + $0x28] sm:$0xf]  ;;  %v354_v33 = vld [vmem:[#allocation2 + $0x38] sm:$0xf]  ;;  %v371_v34 = vrot.slane %v353_v31, 4 }
  0x25   :  { %375 = vrot.lane.b32.xlu0 %v366_v40, %s4235_s22  ;;  %v372_v35 = vrot.slane %v354_v33, 4  ;;  %v423_v36 = vld [vmem:[#allocation2 + $0x30] sm:$0xf]  ;;  %v424_v38 = vld [vmem:[#allocation2 + $0x38] sm:$0xf] }
  0x26   :  { %v484_v37 = vld [vmem:[#allocation2 + $0x30] sm:$0xf]  ;;  %v485_v39 = vld [vmem:[#allocation2 + $0x38] sm:$0xf]  ;;  %v78_v44 = vld [vmem:[#allocation2 + $0x40] sm:$0xf] }
  0x27   :  { %v502_v40 = vrot.slane %v484_v37, 4  ;;  %v77_v42 = vld [vmem:[#allocation2 + $0x38] sm:$0xf]  ;;  %v554_v48 = vld [vmem:[#allocation2 + $0x30] sm:$0xf] }
  0x28   :  { %94 = vrot.lane.b32.xlu1 %v73_v41, %s4231_s19  ;;  %v503_v41 = vrot.slane %v485_v39, 4  ;;  %v555_v50 = vld [vmem:[#allocation2 + $0x38] sm:$0xf]  ;;  %v339_v55 = vld [vmem:[#allocation2 + $0x40] sm:$0xf] }
  0x29   :  { %96 = vrot.lane.b32.xlu0 %v74_v43, %s4231_s19  ;;  %v138_v43 = vld [vmem:[#allocation2 + $0x38] sm:$0xf]  ;;  %347 = vst [vmem:[#allocation3 + $0xb8] sm:$0xf] %v339_v55  ;;  %v270_v59 = vld [vmem:[#allocation2 + $0x40] sm:$0xf] }
  0x2a   :  { %v486_v13 = vld [vmem:[#allocation2 + $0x40] sm:$0xf] }
  0x2b   :  { %v556_v26 = vld [vmem:[#allocation2 + $0x40] sm:$0xf] }
  0x2c   :  { %164 = vrot.lane.b32.xlu1 %v152_v45, %s4232_s20  ;;  %v139_v45 = vld [vmem:[#allocation2 + $0x40] sm:$0xf] }
  0x2d   :  { %166 = vrot.lane.b32.xlu0 %v153_v46, %s4232_s20  ;;  %v156_v46 = vrot.slane %v138_v43, 4  ;;  %v157_v47 = vrot.slane %v139_v45, 4 }
  0x30   :  { %438 = vrot.lane.b32.xlu1 %v419_v49, %s4236_s23 }
  0x31   :  { %440 = vrot.lane.b32.xlu0 %v420_v51, %s4236_s23  ;;  %v338_v51 = vld [vmem:[#allocation2 + $0x38] sm:$0xf] }
  0x32   :  { %346 = vst [vmem:[#allocation3 + $0xb0] sm:$0xf] %v338_v51 }
  0x34   :  { %508 = vrot.lane.b32.xlu1 %v498_v53, %s4237_s24  ;;  %v208_v53 = vld [vmem:[#allocation2 + $0x38] sm:$0xf] }
  0x35   :  { %510 = vrot.lane.b32.xlu0 %v499_v54, %s4237_s24  ;;  %v269_v54 = vld [vmem:[#allocation2 + $0x38] sm:$0xf] }
  0x36   :  { %v287_v61 = vrot.slane %v269_v54, 4 }
  0x38   :  { %436 = vrot.lane.b32.xlu1 %v418_v56, %s4236_s23 }
  0x39   :  { %506 = vrot.lane.b32.xlu0 %v497_v57, %s4237_s24 }
  0x3c   :  { %225 = vrot.lane.b32.xlu1 %v204_v58, %s4233_s0  ;;  %v209_v58 = vld [vmem:[#allocation2 + $0x40] sm:$0xf] }
  0x3d   :  { %227 = vrot.lane.b32.xlu0 %v205_v60, %s4233_s0 }
  0x40   :  { %295 = vrot.lane.b32.xlu1 %v283_v62, %s4234_s21  ;;  %v355_v62 = vld [vmem:[#allocation2 + $0x40] sm:$0xf] }
  0x41   :  { %297 = vrot.lane.b32.xlu0 %v284_v1, %s4234_s21  ;;  %v288_v1 = vrot.slane %v270_v59, 4  ;;  %v373_v5 = vrot.slane %v355_v62, 4 }
  0x44   :  { %567 = vrot.lane.b32.xlu1 %v549_v3, %s4238_s25  ;;  %v356_v3 = vld [vmem:[#allocation2 + $0x48] sm:$0xf] }
  0x45   :  { %569 = vrot.lane.b32.xlu0 %v550_v4, %s4238_s25 }
  0x48   :  { %571 = vrot.lane.b32.xlu1 %v551_v6, %s4238_s25 }
  0x49   :  { %381 = vrot.lane.b32.xlu0 %v369_v8, %s4235_s22  ;;  %v374_v8 = vrot.slane %v356_v3, 4 }
  0x4c   :  { %383 = vrot.lane.b32.xlu1 %v370_v9, %s4235_s22 }
  0x4d   :  { %98 = vrot.lane.b32.xlu0 %v75_v10, %s4231_s19 }
  0x50   :  { %100 = vrot.lane.b32.xlu1 %v76_v12, %s4231_s19  ;;  %v425_v12 = vld [vmem:[#allocation2 + $0x40] sm:$0xf] }
  0x51   :  { %168 = vrot.lane.b32.xlu0 %v154_v14, %s4232_s20 }
  0x54   :  { %170 = vrot.lane.b32.xlu1 %v155_v15, %s4232_s20  ;;  %v426_v15 = vld [vmem:[#allocation2 + $0x48] sm:$0xf] }
  0x55   :  { %442 = vrot.lane.b32.xlu0 %v421_v16, %s4236_s23  ;;  %v487_v16 = vld [vmem:[#allocation2 + $0x48] sm:$0xf] }
  0x58   :  { %444 = vrot.lane.b32.xlu1 %v422_v18, %s4236_s23  ;;  %v504_v18 = vrot.slane %v486_v13, 4 }
  0x59   :  { %512 = vrot.lane.b32.xlu0 %v500_v20, %s4237_s24 }
  0x5c   :  { %514 = vrot.lane.b32.xlu1 %v501_v21, %s4237_s24  ;;  %v505_v21 = vrot.slane %v487_v16, 4 }
  0x5d   :  { %229 = vrot.lane.b32.xlu0 %v206_v22, %s4233_s0 }
  0x60   :  { %231 = vrot.lane.b32.xlu1 %v207_v24, %s4233_s0 }
  0x61   :  { %299 = vrot.lane.b32.xlu0 %v285_v27, %s4234_s21 }
  0x64   :  { %301 = vrot.lane.b32.xlu1 %v286_v29, %s4234_s21  ;;  %v557_v29 = vld [vmem:[#allocation2 + $0x48] sm:$0xf] }
  0x65   :  { %573 = vrot.lane.b32.xlu0 %v552_v30, %s4238_s25 }
  0x68   :  { %575 = vrot.lane.b32.xlu1 %v553_v32, %s4238_s25 }
  0x69   :  { %385 = vrot.lane.b32.xlu0 %v371_v34, %s4235_s22 }
  0x6c   :  { %387 = vrot.lane.b32.xlu1 %v372_v35, %s4235_s22  ;;  %v651_v35 = vld [vmem:[%s5759_s3] sm:$0xff] }
  0x6d   :  { %446 = vrot.lane.b32.xlu0 %v423_v36, %s4236_s23 }
  0x70   :  { %448 = vrot.lane.b32.xlu1 %v424_v38, %s4236_s23 }
  0x71   :  { %516 = vrot.lane.b32.xlu0 %v502_v40, %s4237_s24 }
  0x74   :  { %518 = vrot.lane.b32.xlu1 %v503_v41, %s4237_s24 }
  0x75   :  { %102 = vrot.lane.b32.xlu0 %v77_v42, %s4231_s19 }
  0x78   :  { %104 = vrot.lane.b32.xlu1 %v78_v44, %s4231_s19 }
  0x79   :  { %172 = vrot.lane.b32.xlu0 %v156_v46, %s4232_s20 }
  0x7b   :  { %v89_v49 = vpop.permute.xlu0 %88 }
  0x7c   :  { %174 = vrot.lane.b32.xlu1 %v157_v47, %s4232_s20 }
  0x7d   :  { %577 = vrot.lane.b32.xlu0 %v554_v48, %s4238_s25 }
  0x7e   :  { %v159_v52 = vpop.permute.xlu1 %158 }
  0x7f   :  { %v91_v56 = vpop.permute.xlu0 %90 }
  0x80   :  { %579 = vrot.lane.b32.xlu1 %v555_v50, %s4238_s25  ;;  %v107_v57 = vsel %vm106_vm0, %v89_v49, %v91_v56 }
  0x81   :  { %123 = vst [vmem:[#allocation3] sm:$0xf] %v107_v57  ;;  %233 = vrot.lane.b32.xlu0 %v208_v53, %s4233_s0 }
  0x82   :  { %v4403_v60 = vpop.permute.xlu1 %223 }
  0x83   :  { %v4407_v63 = vpop.permute.xlu0 %92 }
  0x84   :  { %235 = vrot.lane.b32.xlu1 %v209_v58, %s4233_s0  ;;  %v108_v2 = vsel %vm106_vm0, %v91_v56, %v4407_v63 }
  0x85   :  { %124 = vst [vmem:[#allocation3 + $0x8] sm:$0xf] %v108_v2  ;;  %303 = vrot.lane.b32.xlu0 %v287_v61, %s4234_s21 }
  0x86   :  { %v161_v4 = vpop.permute.xlu1 %160 }
  0x87   :  { %v177_v6 = vsel %vm176_vm1, %v159_v52, %v161_v4  ;;  %v222_v7 = vpop.permute.xlu0 %221 }
  0x88   :  { %193 = vst [vmem:[#allocation3] sm:$0xf0] %v177_v6  ;;  %305 = vrot.lane.b32.xlu1 %v288_v1, %s4234_s21  ;;  %v239_v9 = vsel %vm237_vm2, %v222_v7, %v4403_v60 }
  0x89   :  { %255 = vst [vmem:[#allocation3 + $0x48] sm:$0xf] %v239_v9  ;;  %389 = vrot.lane.b32.xlu0 %v373_v5, %s4235_s22 }
  0x8a   :  { %v163_v10 = vpop.permute.xlu1 %162 }
  0x8b   :  { %v178_v11 = vsel %vm176_vm1, %v161_v4, %v163_v10  ;;  %v292_v14 = vpop.permute.xlu0 %291 }
  0x8c   :  { %194 = vst [vmem:[#allocation3 + $0x8] sm:$0xf0] %v178_v11  ;;  %391 = vrot.lane.b32.xlu1 %v374_v8, %s4235_s22 }
  0x8d   :  { %450 = vrot.lane.b32.xlu0 %v425_v12, %s4236_s23 }
  0x8e   :  { %v4419_v17 = vpop.permute.xlu1 %293 }
  0x8f   :  { %v309_v19 = vsel %vm307_vm3, %v292_v14, %v4419_v17  ;;  %v220_v20 = vpop.permute.xlu0 %219  ;;  %v611_v28 = vld [vmem:[#allocation3] sm:$0xff] }
  0x90   :  { %325 = vst [vmem:[#allocation3 + $0x48] sm:$0xf0] %v309_v19  ;;  %452 = vrot.lane.b32.xlu1 %v426_v15, %s4236_s23  ;;  %v238_v22 = vsel %vm237_vm2, %v220_v20, %v222_v7 }
  0x91   :  { %254 = vst [vmem:[#allocation3 + $0x40] sm:$0xf] %v238_v22  ;;  %520 = vrot.lane.b32.xlu0 %v504_v18, %s4237_s24 }
  0x92   :  { %v290_v23 = vpop.permute.xlu1 %289 }
  0x93   :  { %v308_v24 = vsel %vm307_vm3, %v290_v23, %v292_v14  ;;  %v612_v25 = vld [vmem:[#allocation3 + $0x8] sm:$0xff]  ;;  %v378_v27 = vpop.permute.xlu0 %377 }
  0x94   :  { %324 = vst [vmem:[#allocation3 + $0x40] sm:$0xf0] %v308_v24  ;;  %522 = vrot.lane.b32.xlu1 %v505_v21, %s4237_s24  ;;  %686 = vmatprep.subr.bf16.mxu0 %v612_v25 }
  0x95   :  { %687 = vmatpush1.bf16.msra.mxu0 %v611_v28  ;;  %581 = vrot.lane.b32.xlu0 %v556_v26, %s4238_s25  ;;  %v4496_v26 = vld [vmem:[%s5760_s2] sm:$0xf] }
  0x96   :  { %v4429_v30 = vpop.permute.xlu1 %379 }
  0x97   :  { %v395_v31 = vsel %vm393_vm4, %v378_v27, %v4429_v30  ;;  %v620_v32 = vld [vmem:[#allocation3 + $0x48] sm:$0xff]  ;;  %v376_v33 = vpop.permute.xlu0 %375 }
  0x98   :  { %411 = vst [vmem:[#allocation3 + $0x88] sm:$0xf0] %v395_v31  ;;  %583 = vrot.lane.b32.xlu1 %v557_v29, %s4238_s25  ;;  %688 = vmatprep.subr.bf16.mxu0 %v620_v32  ;;  %v394_v34 = vsel %vm393_vm4, %v376_v33, %v378_v27 }
  0x99   :  { %410 = vst [vmem:[#allocation3 + $0x80] sm:$0xf0] %v394_v34  ;;  %654 = vperm.xlu0 %4223, %v651_v35  }
  0x9a   :  { %v95_v36 = vpop.permute.xlu1 %94 }
  0x9b   :  { %v109_v37 = vsel %vm106_vm0, %v4407_v63, %v95_v36  ;;  %v619_v38 = vld [vmem:[#allocation3 + $0x40] sm:$0xff]  ;;  %v4441_v39 = vpop.permute.xlu0 %96 }
  0x9c   :  { %125 = vst [vmem:[#allocation3 + $0x10] sm:$0xf] %v109_v37  ;;  %689 = vmatpush1.bf16.msra.mxu0 %v619_v38  ;;  %v110_v40 = vsel %vm106_vm0, %v95_v36, %v4441_v39 }
  0x9d   :  { %126 = vst [vmem:[#allocation3 + $0x18] sm:$0xf] %v110_v40 }
  0x9e   :  { %v165_v41 = vpop.permute.xlu1 %164 }
  0x9f   :  { %v179_v42 = vsel %vm176_vm1, %v163_v10, %v165_v41  ;;  %v628_v43 = vld [vmem:[#allocation3 + $0x88] sm:$0xff]  ;;  %v4446_v44 = vpop.permute.xlu0 %166 }
  0xa0   :  { %195 = vst [vmem:[#allocation3 + $0x10] sm:$0xf0] %v179_v42  ;;  %690 = vmatprep.subr.bf16.mxu0 %v628_v43  ;;  %v180_v45 = vsel %vm176_vm1, %v165_v41, %v4446_v44  ;;  %v627_v46 = vld [vmem:[#allocation3 + $0x80] sm:$0xff] }
  0xa1   :  { %196 = vst [vmem:[#allocation3 + $0x18] sm:$0xf0] %v180_v45  ;;  %691 = vmatpush1.bf16.msra.mxu0 %v627_v46 }
  0xa2   :  { %v439_v47 = vpop.permute.xlu1 %438 }
  0xa3   :  { %v4450_v48 = vpop.permute.xlu0 %440 }
  0xa4   :  { %v456_v49 = vsel %vm454_vm5, %v439_v47, %v4450_v48 }
  0xa5   :  { %472 = vst [vmem:[#allocation3 + $0xc8] sm:$0xf] %v456_v49 }
  0xa6   :  { %v509_v50 = vpop.permute.xlu1 %508 }
  0xa7   :  { %v4454_v51 = vpop.permute.xlu0 %510  ;;  %v613_v55 = vld [vmem:[#allocation3 + $0x10] sm:$0xff] }
  0xa8   :  { %v526_v52 = vsel %vm5772_vm6, %v509_v50, %v4454_v51  ;;  %v614_v53 = vld [vmem:[#allocation3 + $0x18] sm:$0xff] }
  0xa9   :  { %542 = vst [vmem:[#allocation3 + $0xc8] sm:$0xf0] %v526_v52  ;;  %727 = vmatprep.subr.bf16.mxu1 %v614_v53 }
  0xaa   :  { %v437_v54 = vpop.permute.xlu1 %436  ;;  %728 = vmatpush1.bf16.msra.mxu1 %v613_v55 }
  0xab   :  { %v455_v56 = vsel %vm454_vm5, %v437_v54, %v439_v47  ;;  %v507_v57 = vpop.permute.xlu0 %506 }
  0xac   :  { %471 = vst [vmem:[#allocation3 + $0xc0] sm:$0xf] %v455_v56  ;;  %v525_v58 = vsel %vm5772_vm6, %v507_v57, %v509_v50 }
  0xad   :  { %541 = vst [vmem:[#allocation3 + $0xc0] sm:$0xf0] %v525_v58 }
  0xae   :  { %v226_v59 = vpop.permute.xlu1 %225 }
  0xaf   :  { %v240_v61 = vsel %vm237_vm2, %v4403_v60, %v226_v59  ;;  %v4462_v62 = vpop.permute.xlu0 %227 }
  0xb0   :  { %256 = vst [vmem:[#allocation3 + $0x50] sm:$0xf] %v240_v61  ;;  %v241_v63 = vsel %vm237_vm2, %v226_v59, %v4462_v62  ;;  %v636_v1 = vld [vmem:[#allocation3 + $0xc8] sm:$0xff] }
  0xb1   :  { %257 = vst [vmem:[#allocation3 + $0x58] sm:$0xf] %v241_v63  ;;  %692 = vmatprep.subr.bf16.mxu0 %v636_v1 }
  0xb2   :  { %v296_v2 = vpop.permute.xlu1 %295 }
  0xb3   :  { %v310_v3 = vsel %vm307_vm3, %v4419_v17, %v296_v2  ;;  %v4468_v4 = vpop.permute.xlu0 %297 }
  0xb4   :  { %326 = vst [vmem:[#allocation3 + $0x50] sm:$0xf0] %v310_v3  ;;  %v311_v5 = vsel %vm307_vm3, %v296_v2, %v4468_v4  ;;  %v635_v60 = vld [vmem:[#allocation3 + $0xc0] sm:$0xff] }
  0xb5   :  { %327 = vst [vmem:[#allocation3 + $0x58] sm:$0xf0] %v311_v5  ;;  %693 = vmatpush1.bf16.msra.mxu0 %v635_v60 }
  0xb6   :  { %v568_v6 = vpop.permute.xlu1 %567 }
  0xb7   :  { %v570_v7 = vpop.permute.xlu0 %569 }
  0xb8   :  { %v586_v8 = vsel %vm5771_vm7, %v568_v6, %v570_v7 }
  0xb9   :  { %602 = vst [vmem:[#allocation3 + $0x100] sm:$0xf] %v586_v8 }
  0xba   :  { %v4473_v9 = vpop.permute.xlu1 %571 }
  0xbb   :  { %v587_v10 = vsel %vm5771_vm7, %v570_v7, %v4473_v9  ;;  %v382_v11 = vpop.permute.xlu0 %381  ;;  %v621_v15 = vld [vmem:[#allocation3 + $0x50] sm:$0xff] }
  0xbc   :  { %603 = vst [vmem:[#allocation3 + $0x108] sm:$0xf] %v587_v10  ;;  %v396_v12 = vsel %vm393_vm4, %v4429_v30, %v382_v11  ;;  %v622_v13 = vld [vmem:[#allocation3 + $0x58] sm:$0xff] }
  0xbd   :  { %412 = vst [vmem:[#allocation3 + $0x90] sm:$0xf0] %v396_v12  ;;  %729 = vmatprep.subr.bf16.mxu1 %v622_v13 }
  0xbe   :  { %v4479_v14 = vpop.permute.xlu1 %383  ;;  %730 = vmatpush1.bf16.msra.mxu1 %v621_v15 }
  0xbf   :  { %v397_v16 = vsel %vm393_vm4, %v382_v11, %v4479_v14  ;;  %v99_v17 = vpop.permute.xlu0 %98 }
  0xc0   :  { %413 = vst [vmem:[#allocation3 + $0x98] sm:$0xf0] %v397_v16  ;;  %v111_v18 = vsel %vm106_vm0, %v4441_v39, %v99_v17  ;;  %v643_v19 = vld [vmem:[#allocation3 + $0x100] sm:$0xf] }
  0xc1   :  { %127 = vst [vmem:[#allocation3 + $0x20] sm:$0xf] %v111_v18  ;;  %v663_v24 = vsel %vm661_vm8, %v643_v19, 0 }
  0xc2   :  { %v4485_v20 = vpop.permute.xlu1 %100 }
  0xc3   :  { %v112_v21 = vsel %vm106_vm0, %v99_v17, %v4485_v20  ;;  %v644_v22 = vld [vmem:[#allocation3 + $0x108] sm:$0xf]  ;;  %v169_v23 = vpop.permute.xlu0 %168 }
  0xc4   :  { %128 = vst [vmem:[#allocation3 + $0x28] sm:$0xf] %v112_v21  ;;  %4169 = vmatprep.subr.msk.bf16.mxu0 %vm661_vm8, %v644_v22  ;;  %v181_v25 = vsel %vm176_vm1, %v4446_v44, %v169_v23  ;;  %v629_v31 = vld [vmem:[#allocation3 + $0x90] sm:$0xff] }
  0xc5   :  { %695 = vmatpush1.bf16.msra.mxu0 %v663_v24  ;;  %197 = vst [vmem:[#allocation3 + $0x20] sm:$0xf0] %v181_v25 }
  0xc6   :  { %v4498_v27 = vpop.permute.xlu1 %170 }
  0xc7   :  { %v182_v28 = vsel %vm176_vm1, %v169_v23, %v4498_v27  ;;  %v630_v29 = vld [vmem:[#allocation3 + $0x98] sm:$0xff]  ;;  %v443_v30 = vpop.permute.xlu0 %442 }
  0xc8   :  { %198 = vst [vmem:[#allocation3 + $0x28] sm:$0xf0] %v182_v28  ;;  %731 = vmatprep.subr.bf16.mxu1 %v630_v29  ;;  %4170 = vmatmul.mubr.msk.bf16.vlgmr.msra.gmra.mrb[0].mxu0 %vm657_vm9, %v4496_v26  ;;  %v457_v32 = vsel %vm454_vm5, %v4450_v48, %v443_v30 }
  0xc9   :  { %732 = vmatpush1.bf16.msra.mxu1 %v629_v31  ;;  %800 = vmatprep.mubr.bf16.mxu0 %v4230_v0  ;;  %473 = vst [vmem:[#allocation3 + $0xd0] sm:$0xf] %v457_v32 }
  0xca   :  { %v445_v33 = vpop.permute.xlu1 %444 }
  0xcb   :  { %v458_v34 = vsel %vm454_vm5, %v443_v30, %v445_v33  ;;  %v513_v35 = vpop.permute.xlu0 %512 }
  0xcc   :  { %474 = vst [vmem:[#allocation3 + $0xd8] sm:$0xf] %v458_v34  ;;  %v527_v36 = vsel %vm5772_vm6, %v4454_v51, %v513_v35  ;;  %v615_v41 = vld [vmem:[#allocation3 + $0x20] sm:$0xff] }
  0xcd   :  { %543 = vst [vmem:[#allocation3 + $0xd0] sm:$0xf0] %v527_v36 }
  0xce   :  { %v515_v37 = vpop.permute.xlu1 %514 }
  0xcf   :  { %v528_v38 = vsel %vm5772_vm6, %v513_v35, %v515_v37  ;;  %v616_v39 = vld [vmem:[#allocation3 + $0x28] sm:$0xff]  ;;  %v230_v40 = vpop.permute.xlu0 %229 }
  0xd0   :  { %544 = vst [vmem:[#allocation3 + $0xd8] sm:$0xf0] %v528_v38  ;;  %768 = vmatprep.subr.bf16.mxu0 %v616_v39  ;;  %v242_v42 = vsel %vm237_vm2, %v4462_v62, %v230_v40 }
  0xd1   :  { %769 = vmatpush1.bf16.msra.mxu0 %v615_v41  ;;  %258 = vst [vmem:[#allocation3 + $0x60] sm:$0xf] %v242_v42 }
  0xd2   :  { %v4513_v43 = vpop.permute.xlu1 %231 }
  0xd3   :  { %v243_v44 = vsel %vm237_vm2, %v230_v40, %v4513_v43  ;;  %v300_v45 = vpop.permute.xlu0 %299 }
  0xd4   :  { %259 = vst [vmem:[#allocation3 + $0x68] sm:$0xf] %v243_v44  ;;  %v312_v46 = vsel %vm307_vm3, %v4468_v4, %v300_v45  ;;  %v637_v51 = vld [vmem:[#allocation3 + $0xd0] sm:$0xff] }
  0xd5   :  { %328 = vst [vmem:[#allocation3 + $0x60] sm:$0xf0] %v312_v46 }
  0xd6   :  { %v4519_v47 = vpop.permute.xlu1 %301 }
  0xd7   :  { %v313_v48 = vsel %vm307_vm3, %v300_v45, %v4519_v47  ;;  %v638_v49 = vld [vmem:[#allocation3 + $0xd8] sm:$0xff]  ;;  %v574_v50 = vpop.permute.xlu0 %573 }
  0xd8   :  { %329 = vst [vmem:[#allocation3 + $0x68] sm:$0xf0] %v313_v48  ;;  %733 = vmatprep.subr.bf16.mxu1 %v638_v49  ;;  %v588_v52 = vsel %vm5771_vm7, %v4473_v9, %v574_v50 }
  0xd9   :  { %734 = vmatpush1.bf16.msra.mxu1 %v637_v51  ;;  %604 = vst [vmem:[#allocation3 + $0x110] sm:$0xf] %v588_v52 }
  0xda   :  { %v576_v53 = vpop.permute.xlu1 %575 }
  0xdb   :  { %v589_v54 = vsel %vm5771_vm7, %v574_v50, %v576_v53  ;;  %v386_v55 = vpop.permute.xlu0 %385 }
  0xdc   :  { %605 = vst [vmem:[#allocation3 + $0x118] sm:$0xf] %v589_v54  ;;  %v398_v56 = vsel %vm393_vm4, %v4479_v14, %v386_v55  ;;  %v623_v62 = vld [vmem:[#allocation3 + $0x60] sm:$0xff] }
  0xdd   :  { %414 = vst [vmem:[#allocation3 + $0xa0] sm:$0xf0] %v398_v56 }
  0xde   :  { %v4528_v57 = vpop.permute.xlu1 %387 }
  0xdf   :  { %v399_v58 = vsel %vm393_vm4, %v386_v55, %v4528_v57  ;;  %v624_v59 = vld [vmem:[#allocation3 + $0x68] sm:$0xff]  ;;  %v447_v61 = vpop.permute.xlu0 %446 }
  0xe0   :  { %415 = vst [vmem:[#allocation3 + $0xa8] sm:$0xf0] %v399_v58  ;;  %770 = vmatprep.subr.bf16.mxu0 %v624_v59  ;;  %v459_v63 = vsel %vm454_vm5, %v445_v33, %v447_v61  ;;  %v645_v1 = vld [vmem:[#allocation3 + $0x110] sm:$0xf] }
  0xe1   :  { %771 = vmatpush1.bf16.msra.mxu0 %v623_v62  ;;  %475 = vst [vmem:[#allocation3 + $0xe0] sm:$0xf] %v459_v63  ;;  %v669_v60 = vsel %vm661_vm8, %v645_v1, 0  ;;  %v4581_v1 = vld [vmem:[#allocation2] sm:$0xff] }
  0xe2   :  { %v4533_v2 = vpop.permute.xlu1 %448 }
  0xe3   :  { %v460_v3 = vsel %vm454_vm5, %v447_v61, %v4533_v2  ;;  %v646_v4 = vld [vmem:[#allocation3 + $0x118] sm:$0xf]  ;;  %v517_v5 = vpop.permute.xlu0 %516 }
  0xe4   :  { %476 = vst [vmem:[#allocation3 + $0xe8] sm:$0xf] %v460_v3  ;;  %4171 = vmatprep.subr.msk.bf16.mxu1 %vm661_vm8, %v646_v4  ;;  %v529_v6 = vsel %vm5772_vm6, %v515_v37, %v517_v5  ;;  %v631_v11 = vld [vmem:[#allocation3 + $0xa0] sm:$0xff]  ;;  %v1112_v4 = vld [vmem:[#allocation2] sm:$0xf] }
  0xe5   :  { %736 = vmatpush1.bf16.msra.mxu1 %v669_v60  ;;  %545 = vst [vmem:[#allocation3 + $0xe0] sm:$0xf0] %v529_v6  ;;  %v923_v60 = vld [vmem:[#allocation2] sm:$0xf] }
  0xe6   :  { %v4540_v7 = vpop.permute.xlu1 %518  ;;  %941 = vrot.lane.b32.xlu0 %v923_v60, %s4231_s19  ;;  %v1052_v6 = vld [vmem:[#allocation2] sm:$0xf] }
  0xe7   :  { %v530_v8 = vsel %vm5772_vm6, %v517_v5, %v4540_v7  ;;  %v632_v9 = vld [vmem:[#allocation3 + $0xa8] sm:$0xff]  ;;  %v103_v10 = vpop.permute.xlu0 %102  ;;  %v1130_v5 = vrot.slane %v1112_v4, 4 }
  0xe8   :  { %546 = vst [vmem:[#allocation3 + $0xe8] sm:$0xf0] %v530_v8  ;;  %4172 = vmatmul.mubr.msk.bf16.vlgmr.msra.gmra.mrb[0].mxu1 %vm657_vm9, %v4496_v26  ;;  %772 = vmatprep.subr.bf16.mxu0 %v632_v9  ;;  %v113_v12 = vsel %vm106_vm0, %v4485_v20, %v103_v10  ;;  %v4594_v9 = vld [vmem:[%s5761_s1] sm:$0xff] }
  0xe9   :  { %773 = vmatpush1.bf16.msra.mxu0 %v631_v11  ;;  %841 = vmatprep.mubr.bf16.mxu1 %v4230_v0  ;;  %129 = vst [vmem:[#allocation3 + $0x30] sm:$0xf] %v113_v12 }
  0xea   :  { %v105_v13 = vpop.permute.xlu1 %104  ;;  %1070 = vrot.lane.b32.xlu0 %v1052_v6, %s4233_s0 }
  0xeb   :  { %v114_v14 = vsel %vm106_vm0, %v103_v10, %v105_v13  ;;  %v173_v15 = vpop.permute.xlu0 %172 }
  0xec   :  { %130 = vst [vmem:[#allocation3 + $0x38] sm:$0xf] %v114_v14  ;;  %v183_v16 = vsel %vm176_vm1, %v4498_v27, %v173_v15  ;;  %v639_v21 = vld [vmem:[#allocation3 + $0xe0] sm:$0xff] }
  0xed   :  { %199 = vst [vmem:[#allocation3 + $0x30] sm:$0xf0] %v183_v16 }
  0xee   :  { %v175_v17 = vpop.permute.xlu1 %174 }
  0xef   :  { %v184_v18 = vsel %vm176_vm1, %v173_v15, %v175_v17  ;;  %v640_v19 = vld [vmem:[#allocation3 + $0xe8] sm:$0xff]  ;;  %v578_v20 = vpop.permute.xlu0 %577 }
  0xf0   :  { %200 = vst [vmem:[#allocation3 + $0x38] sm:$0xf0] %v184_v18  ;;  %774 = vmatprep.subr.bf16.mxu0 %v640_v19  ;;  %v590_v22 = vsel %vm5771_vm7, %v576_v53, %v578_v20 }
  0xf1   :  { %775 = vmatpush1.bf16.msra.mxu0 %v639_v21  ;;  %606 = vst [vmem:[#allocation3 + $0x120] sm:$0xf] %v590_v22 }
  0xf2   :  { %v580_v23 = vpop.permute.xlu1 %579 }
  0xf3   :  { %v591_v24 = vsel %vm5771_vm7, %v578_v20, %v580_v23  ;;  %v234_v25 = vpop.permute.xlu0 %233 }
  0xf4   :  { %607 = vst [vmem:[#allocation3 + $0x128] sm:$0xf] %v591_v24  ;;  %v244_v27 = vsel %vm237_vm2, %v4513_v43, %v234_v25  ;;  %v617_v32 = vld [vmem:[#allocation3 + $0x30] sm:$0xff] }
  0xf5   :  { %260 = vst [vmem:[#allocation3 + $0x70] sm:$0xf] %v244_v27 }
  0xf6   :  { %v236_v28 = vpop.permute.xlu1 %235 }
  0xf7   :  { %v245_v29 = vsel %vm237_vm2, %v234_v25, %v236_v28  ;;  %v618_v30 = vld [vmem:[#allocation3 + $0x38] sm:$0xff]  ;;  %v304_v31 = vpop.permute.xlu0 %303 }
  0xf8   :  { %261 = vst [vmem:[#allocation3 + $0x78] sm:$0xf] %v245_v29  ;;  %809 = vmatprep.subr.bf16.mxu1 %v618_v30  ;;  %v314_v33 = vsel %vm307_vm3, %v4519_v47, %v304_v31  ;;  %v647_v34 = vld [vmem:[#allocation3 + $0x120] sm:$0xf] }
  0xf9   :  { %810 = vmatpush1.bf16.msra.mxu1 %v617_v32  ;;  %330 = vst [vmem:[#allocation3 + $0x70] sm:$0xf0] %v314_v33  ;;  %v675_v39 = vsel %vm661_vm8, %v647_v34, 0 }
  0xfa   :  { %v306_v35 = vpop.permute.xlu1 %305 }
  0xfb   :  { %v315_v36 = vsel %vm307_vm3, %v304_v31, %v306_v35  ;;  %v648_v37 = vld [vmem:[#allocation3 + $0x128] sm:$0xf]  ;;  %v390_v38 = vpop.permute.xlu0 %389 }
  0xfc   :  { %331 = vst [vmem:[#allocation3 + $0x78] sm:$0xf0] %v315_v36  ;;  %4173 = vmatprep.subr.msk.bf16.mxu0 %vm661_vm8, %v648_v37  ;;  %v400_v40 = vsel %vm393_vm4, %v4528_v57, %v390_v38 }
  0xfd   :  { %777 = vmatpush1.bf16.msra.mxu0 %v675_v39  ;;  %416 = vst [vmem:[#allocation3 + $0xb0] sm:$0xf0] %v400_v40 }
  0xfe   :  { %v392_v41 = vpop.permute.xlu1 %391 }
  0xff   :  { %v401_v42 = vsel %vm393_vm4, %v390_v38, %v392_v41  ;;  %v451_v43 = vpop.permute.xlu0 %450 }
 0x100   :  { %417 = vst [vmem:[#allocation3 + $0xb8] sm:$0xf0] %v401_v42  ;;  %4174 = vmatmul.mubr.msk.bf16.vlgmr.msra.gmra.mrb[4].mxu0 %vm657_vm9, %v4496_v26  ;;  %v461_v44 = vsel %vm454_vm5, %v4533_v2, %v451_v43  ;;  %v625_v49 = vld [vmem:[#allocation3 + $0x70] sm:$0xff] }
 0x101   :  { %1561 = vmatprep.mubr.bf16.mxu0 %v4230_v0  ;;  %477 = vst [vmem:[#allocation3 + $0xf0] sm:$0xf] %v461_v44  ;;  %v983_v2 = vld [vmem:[#allocation2] sm:$0xf] }
 0x102   :  { %v453_v45 = vpop.permute.xlu1 %452  ;;  %v1001_v3 = vrot.slane %v983_v2, 4 }
 0x103   :  { %v462_v46 = vsel %vm454_vm5, %v451_v43, %v453_v45  ;;  %v626_v47 = vld [vmem:[#allocation3 + $0x78] sm:$0xff]  ;;  %v521_v48 = vpop.permute.xlu0 %520 }
 0x104   :  { %478 = vst [vmem:[#allocation3 + $0xf8] sm:$0xf] %v462_v46  ;;  %811 = vmatprep.subr.bf16.mxu1 %v626_v47  ;;  %v531_v50 = vsel %vm5772_vm6, %v4540_v7, %v521_v48  ;;  %v633_v54 = vld [vmem:[#allocation3 + $0xb0] sm:$0xff]  ;;  %1010 = vrot.lane.b32.xlu1 %v1001_v3, %s4232_s20  ;;  %v859_v7 = vlaneseq }
 0x105   :  { %812 = vmatpush1.bf16.msra.mxu1 %v625_v49  ;;  %547 = vst [vmem:[#allocation3 + $0xf0] sm:$0xf0] %v531_v50 }
 0x106   :  { %v523_v51 = vpop.permute.xlu1 %522 }
 0x107   :  { %v532_v52 = vsel %vm5772_vm6, %v521_v48, %v523_v51  ;;  %v634_v53 = vld [vmem:[#allocation3 + $0xb8] sm:$0xff]  ;;  %v582_v0 = vpop.permute.xlu0 %581 }
 0x108   :  { %548 = vst [vmem:[#allocation3 + $0xf8] sm:$0xf0] %v532_v52  ;;  %813 = vmatprep.subr.bf16.mxu1 %v634_v53  ;;  %v592_v55 = vsel %vm5771_vm7, %v580_v23, %v582_v0  ;;  %1139 = vrot.lane.b32.xlu1 %v1130_v5, %s4234_s21 }
 0x109   :  { %814 = vmatpush1.bf16.msra.mxu1 %v633_v54  ;;  %608 = vst [vmem:[#allocation3 + $0x130] sm:$0xf] %v592_v55 }
 0x10a   :  { %v584_v56 = vpop.permute.xlu1 %583 }
 0x10b   :  { %v593_v57 = vsel %vm5771_vm7, %v582_v0, %v584_v56 }
 0x10c   :  { %609 = vst [vmem:[#allocation3 + $0x138] sm:$0xf] %v593_v57  ;;  %v641_v59 = vld [vmem:[#allocation3 + $0xf0] sm:$0xff] }
 0x10f   :  { %v642_v58 = vld [vmem:[#allocation3 + $0xf8] sm:$0xff] }
 0x110   :  { %815 = vmatprep.subr.bf16.mxu1 %v642_v58  ;;  %v649_v61 = vld [vmem:[#allocation3 + $0x130] sm:$0xf] }
 0x111   :  { %816 = vmatpush1.bf16.msra.mxu1 %v641_v59  ;;  %v681_v63 = vsel %vm661_vm8, %v649_v61, 0 }
 0x113   :  { %v650_v62 = vld [vmem:[#allocation3 + $0x138] sm:$0xf] }
 0x114   :  { %4175 = vmatprep.subr.msk.bf16.mxu1 %vm661_vm8, %v650_v62 }
 0x115   :  { %818 = vmatpush1.bf16.msra.mxu1 %v681_v63 }
 0x118   :  { %4176 = vmatmul.mubr.msk.bf16.vlgmr.msra.gmra.mrb[4].mxu1 %vm657_vm9, %v4496_v26  ;;  %v4588_v26 = vshrl.u32 %v859_v7, 7  ;;  %v4596_v10 = vpop.permute.xlu0 %654 }
 0x119   :  { %1602 = vmatprep.mubr.bf16.mxu1 %v4581_v1 }
 0x11a   :  { %v861_v8 = vsub.s32 0, %v4588_v26  ;;  %v865_v11 = vsub.s32 1, %v4588_v26  ;;  %v869_v31 = vsub.s32 2, %v4588_v26  ;;  %v873_v32 = vsub.s32 3, %v4588_v26 }
 0x11b   :  { %v877_v51 = vsub.s32 4, %v4588_v26  ;;  %v881_v52 = vsub.s32 5, %v4588_v26 }
 0x11c   :  { %v4600_v13 = vrot.slane %v4594_v9, %v861_v8  ;;  %v4605_v17 = vrot.slane %v4594_v9, %v865_v11  ;;  %v4621_v35 = vrot.slane %v4594_v9, %v869_v31  ;;  %v4625_v38 = vrot.slane %v4594_v9, %v873_v32 }
 0x11d   :  { %v4643_v58 = vrot.slane %v4594_v9, %v877_v51  ;;  %v4649_v62 = vrot.slane %v4594_v9, %v881_v52 }
 0x19b   :  { %v720_v12 = vpop.f32.mrb[0].mxu0 }
 0x19c   :  { %v721_v14 = vadd.f32 %v720_v12, %v4596_v10  ;;  %v722_v15 = vpop.f32.mrb[1].mxu0 }
 0x19d   :  { %v723_v16 = vadd.f32 %v722_v15, %v4596_v10  ;;  %v724_v18 = vpop.f32.mrb[2].mxu0 }
 0x19e   :  { %v850_v19 = vmax.f32 %v721_v14, 0.0  ;;  %v725_v20 = vpop.f32.mrb[3].mxu0 }
 0x19f   :  { %v851_v21 = vmax.f32 %v723_v16, 0.0 }
 0x1a0   :  { %v899_v22 = vmul.f32 %v4600_v13, %v850_v19 }
 0x1a1   :  { %v900_v23 = vmul.f32 %v4605_v17, %v851_v21 }
 0x1a2   :  { %v4609_v24 = vpack.c.bf16 %v899_v22, %v899_v22 }
 0x1a3   :  { %v4611_v25 = vpack.c.bf16 %v900_v23, %v900_v23 }
 0x1a4   :  { %915 = vst [vmem:[#allocation2 + $0x8] sm:$0xf] %v4609_v24 }
 0x1a5   :  { %916 = vst [vmem:[#allocation2 + $0x10] sm:$0xf] %v4611_v25 }
 0x1ab   :  { %v924_v27 = vld [vmem:[#allocation2 + $0x8] sm:$0xf] }
 0x1ac   :  { %v1053_v28 = vld [vmem:[#allocation2 + $0x8] sm:$0xf]  ;;  %943 = vrot.lane.b32.xlu1 %v924_v27, %s4231_s19  ;;  %v1182_v29 = vld [vmem:[#allocation2 + $0x10] sm:$0xf] }
 0x1ad   :  { %1072 = vrot.lane.b32.xlu0 %v1053_v28, %s4233_s0  ;;  %1190 = vst [vmem:[#allocation3 + $0x88] sm:$0xf] %v1182_v29  ;;  %v1181_v30 = vld [vmem:[#allocation2 + $0x8] sm:$0xf]  ;;  %v1396_v5 = vld [vmem:[#allocation2 + $0x10] sm:$0xf] }
 0x1ae   :  { %1189 = vst [vmem:[#allocation3 + $0x80] sm:$0xf] %v1181_v30  ;;  %v1266_v50 = vld [vmem:[#allocation2 + $0x8] sm:$0xf]  ;;  %v925_v14 = vld [vmem:[#allocation2 + $0x10] sm:$0xf] }
 0x1af   :  { %v1395_v53 = vld [vmem:[#allocation2 + $0x8] sm:$0xf]  ;;  %v1054_v16 = vld [vmem:[#allocation2 + $0x10] sm:$0xf]  ;;  %v885_v29 = vsub.s32 6, %v4588_v26  ;;  %v889_v30 = vsub.s32 7, %v4588_v26 }
 0x1b0   :  { %v984_v18 = vld [vmem:[#allocation2 + $0x8] sm:$0xf]  ;;  %v1267_v23 = vld [vmem:[#allocation2 + $0x10] sm:$0xf] }
 0x1b1   :  { %v1002_v19 = vrot.slane %v984_v18, 4  ;;  %v1113_v21 = vld [vmem:[#allocation2 + $0x8] sm:$0xf] }
 0x1b2   :  { %v1131_v22 = vrot.slane %v1113_v21, 4 }
 0x1bb   :  { %v761_v33 = vpop.f32.mrb[0].mxu1 }
 0x1bc   :  { %v762_v34 = vadd.f32 %v761_v33, %v4596_v10  ;;  %v763_v36 = vpop.f32.mrb[1].mxu1 }
 0x1bd   :  { %v764_v37 = vadd.f32 %v763_v36, %v4596_v10  ;;  %v765_v39 = vpop.f32.mrb[2].mxu1 }
 0x1be   :  { %v852_v40 = vmax.f32 %v762_v34, 0.0  ;;  %v766_v41 = vpop.f32.mrb[3].mxu1 }
 0x1bf   :  { %v853_v42 = vmax.f32 %v764_v37, 0.0  ;;  %v1197_v37 = vld [vmem:[#allocation2 + $0x8] sm:$0xf]  ;;  %v4673_v41 = vrot.slane %v4594_v9, %v885_v29 }
 0x1c0   :  { %v901_v43 = vmul.f32 %v4621_v35, %v852_v40 }
 0x1c1   :  { %v902_v44 = vmul.f32 %v4625_v38, %v853_v42 }
 0x1c2   :  { %v4629_v45 = vpack.c.bf16 %v901_v43, %v901_v43  ;;  %v4679_v43 = vrot.slane %v4594_v9, %v889_v30  ;;  %v4707_v30 = vpop.permute.xlu1 %1010 }
 0x1c3   :  { %v4631_v46 = vpack.c.bf16 %v902_v44, %v902_v44 }
 0x1c4   :  { %917 = vst [vmem:[#allocation2 + $0x18] sm:$0xf] %v4629_v45 }
 0x1c5   :  { %918 = vst [vmem:[#allocation2 + $0x20] sm:$0xf] %v4631_v46 }
 0x1cb   :  { %v926_v47 = vld [vmem:[#allocation2 + $0x18] sm:$0xf] }
 0x1cc   :  { %v1055_v48 = vld [vmem:[#allocation2 + $0x18] sm:$0xf]  ;;  %947 = vrot.lane.b32.xlu0 %v926_v47, %s4231_s19  ;;  %v1184_v0 = vld [vmem:[#allocation2 + $0x20] sm:$0xf] }
 0x1cd   :  { %1076 = vrot.lane.b32.xlu1 %v1055_v48, %s4233_s0  ;;  %v1268_v49 = vld [vmem:[#allocation2 + $0x18] sm:$0xf]  ;;  %v1056_v55 = vld [vmem:[#allocation2 + $0x20] sm:$0xf]  ;;  %1192 = vst [vmem:[#allocation3 + $0x98] sm:$0xf] %v1184_v0 }
 0x1ce   :  { %v1183_v56 = vld [vmem:[#allocation2 + $0x18] sm:$0xf]  ;;  %v1269_v12 = vld [vmem:[#allocation2 + $0x20] sm:$0xf]  ;;  %v1215_v48 = vrot.slane %v1197_v37, 4 }
 0x1cf   :  { %1191 = vst [vmem:[#allocation3 + $0x90] sm:$0xf] %v1183_v56  ;;  %v1397_v60 = vld [vmem:[#allocation2 + $0x18] sm:$0xf]  ;;  %v1398_v15 = vld [vmem:[#allocation2 + $0x20] sm:$0xf] }
 0x1d0   :  { %1288 = vrot.lane.b32.xlu0 %v1268_v49, %s4236_s23  ;;  %v927_v20 = vld [vmem:[#allocation2 + $0x20] sm:$0xf]  ;;  %v986_v27 = vld [vmem:[#allocation2 + $0x18] sm:$0xf] }
 0x1d1   :  { %1284 = vrot.lane.b32.xlu1 %v1266_v50, %s4236_s23  ;;  %v1199_v28 = vld [vmem:[#allocation2 + $0x18] sm:$0xf]  ;;  %v1004_v32 = vrot.slane %v986_v27, 4 }
 0x1d2   :  { %v1217_v33 = vrot.slane %v1199_v28, 4  ;;  %v1115_v39 = vld [vmem:[#allocation2 + $0x18] sm:$0xf] }
 0x1d3   :  { %v802_v54 = vpop.f32.mrb[4].mxu0  ;;  %v1133_v49 = vrot.slane %v1115_v39, 4  ;;  %v1328_v52 = vld [vmem:[#allocation2 + $0x18] sm:$0xf] }
 0x1d4   :  { %v803_v57 = vadd.f32 %v802_v54, %v4596_v10  ;;  %v804_v59 = vpop.f32.mrb[5].mxu0  ;;  %1078 = vrot.lane.b32.xlu0 %v1056_v55, %s4233_s0  ;;  %v1346_v9 = vrot.slane %v1328_v52, 4 }
 0x1d5   :  { %1413 = vrot.lane.b32.xlu1 %v1395_v53, %s4238_s25  ;;  %v805_v61 = vadd.f32 %v804_v59, %v4596_v10  ;;  %v806_v63 = vpop.f32.mrb[6].mxu0  ;;  %v985_v53 = vld [vmem:[#allocation2 + $0x10] sm:$0xf] }
 0x1d6   :  { %v854_v2 = vmax.f32 %v803_v57, 0.0  ;;  %v807_v3 = vpop.f32.mrb[7].mxu0  ;;  %v1003_v55 = vrot.slane %v985_v53, 4  ;;  %v1326_v57 = vld [vmem:[#allocation2 + $0x8] sm:$0xf] }
 0x1d7   :  { %v855_v4 = vmax.f32 %v805_v61, 0.0  ;;  %v1114_v59 = vld [vmem:[#allocation2 + $0x10] sm:$0xf]  ;;  %v1344_v61 = vrot.slane %v1326_v57, 4  ;;  %v987_v3 = vld [vmem:[#allocation2 + $0x20] sm:$0xf] }
 0x1d8   :  { %v903_v6 = vmul.f32 %v4643_v58, %v854_v2  ;;  %1415 = vrot.lane.b32.xlu0 %v1396_v5, %s4238_s25  ;;  %v1132_v63 = vrot.slane %v1114_v59, 4  ;;  %v1198_v2 = vld [vmem:[#allocation2 + $0x10] sm:$0xf]  ;;  %v1005_v5 = vrot.slane %v987_v3, 4 }
 0x1d9   :  { %1417 = vrot.lane.b32.xlu1 %v1397_v60, %s4238_s25  ;;  %v904_v7 = vmul.f32 %v4649_v62, %v855_v4  ;;  %v1216_v4 = vrot.slane %v1198_v2, 4  ;;  %v1116_v60 = vld [vmem:[#allocation2 + $0x20] sm:$0xf] }
 0x1da   :  { %v4655_v8 = vpack.c.bf16 %v903_v6, %v903_v6  ;;  %v1327_v6 = vld [vmem:[#allocation2 + $0x10] sm:$0xf] }
 0x1db   :  { %v4657_v11 = vpack.c.bf16 %v904_v7, %v904_v7  ;;  %v1134_v7 = vrot.slane %v1116_v60, 4 }
 0x1dc   :  { %919 = vst [vmem:[#allocation2 + $0x28] sm:$0xf] %v4655_v8  ;;  %1290 = vrot.lane.b32.xlu0 %v1269_v12, %s4236_s23  ;;  %v1345_v12 = vrot.slane %v1327_v6, 4 }
 0x1dd   :  { %945 = vrot.lane.b32.xlu1 %v925_v14, %s4231_s19  ;;  %920 = vst [vmem:[#allocation2 + $0x30] sm:$0xf] %v4657_v11  ;;  %v1200_v14 = vld [vmem:[#allocation2 + $0x20] sm:$0xf] }
 0x1e0   :  { %1419 = vrot.lane.b32.xlu0 %v1398_v15, %s4238_s25  ;;  %v1218_v15 = vrot.slane %v1200_v14, 4 }
 0x1e1   :  { %1074 = vrot.lane.b32.xlu1 %v1054_v16, %s4233_s0 }
 0x1e3   :  { %v1185_v34 = vld [vmem:[#allocation2 + $0x28] sm:$0xf] }
 0x1e4   :  { %1012 = vrot.lane.b32.xlu0 %v1002_v19, %s4232_s20  ;;  %v1186_v31 = vld [vmem:[#allocation2 + $0x30] sm:$0xf]  ;;  %1193 = vst [vmem:[#allocation3 + $0xa0] sm:$0xf] %v1185_v34  ;;  %v1270_v19 = vld [vmem:[#allocation2 + $0x28] sm:$0xf] }
 0x1e5   :  { %949 = vrot.lane.b32.xlu1 %v927_v20, %s4231_s19  ;;  %1194 = vst [vmem:[#allocation3 + $0xa8] sm:$0xf] %v1186_v31  ;;  %v1329_v20 = vld [vmem:[#allocation2 + $0x20] sm:$0xf]  ;;  %v1057_v28 = vld [vmem:[#allocation2 + $0x28] sm:$0xf]  ;;  %v942_v31 = vpop.permute.xlu0 %941 }
 0x1e6   :  { %v1347_v21 = vrot.slane %v1329_v20, 4  ;;  %v929_v29 = vld [vmem:[#allocation2 + $0x30] sm:$0xf]  ;;  %v1201_v34 = vld [vmem:[#allocation2 + $0x28] sm:$0xf] }
 0x1e7   :  { %v1400_v37 = vld [vmem:[#allocation2 + $0x30] sm:$0xf]  ;;  %v988_v39 = vld [vmem:[#allocation2 + $0x28] sm:$0xf] }
 0x1e8   :  { %1141 = vrot.lane.b32.xlu0 %v1131_v22, %s4234_s21  ;;  %v1399_v22 = vld [vmem:[#allocation2 + $0x28] sm:$0xf]  ;;  %v1202_v59 = vld [vmem:[#allocation2 + $0x30] sm:$0xf] }
 0x1e9   :  { %1286 = vrot.lane.b32.xlu1 %v1267_v23, %s4236_s23  ;;  %v928_v23 = vld [vmem:[#allocation2 + $0x28] sm:$0xf]  ;;  %v1331_v3 = vld [vmem:[#allocation2 + $0x30] sm:$0xf] }
 0x1eb   :  { %v843_v36 = vpop.f32.mrb[4].mxu1 }
 0x1ec   :  { %v844_v40 = vadd.f32 %v843_v36, %v4596_v10  ;;  %v845_v42 = vpop.f32.mrb[5].mxu1  ;;  %1016 = vrot.lane.b32.xlu0 %v1004_v32, %s4232_s20  ;;  %v1271_v32 = vld [vmem:[#allocation2 + $0x30] sm:$0xf]  ;;  %v1219_v36 = vrot.slane %v1201_v34, 4 }
 0x1ed   :  { %1228 = vrot.lane.b32.xlu1 %v1217_v33, %s4235_s22  ;;  %v846_v26 = vadd.f32 %v845_v42, %v4596_v10  ;;  %v847_v44 = vpop.f32.mrb[6].mxu1  ;;  %v1058_v33 = vld [vmem:[#allocation2 + $0x30] sm:$0xf]  ;;  %v4713_v42 = vpop.permute.xlu1 %1139 }
 0x1ee   :  { %v856_v47 = vmax.f32 %v844_v40, 0.0  ;;  %v848_v50 = vpop.f32.mrb[7].mxu1  ;;  %v1330_v40 = vld [vmem:[#allocation2 + $0x28] sm:$0xf]  ;;  %v1006_v44 = vrot.slane %v988_v39, 4 }
 0x1ef   :  { %v857_v51 = vmax.f32 %v846_v26, 0.0  ;;  %v1071_v26 = vpop.permute.xlu0 %1070 }
 0x1f0   :  { %v905_v0 = vmul.f32 %v4673_v41, %v856_v47  ;;  %1224 = vrot.lane.b32.xlu0 %v1215_v48, %s4235_s22  ;;  %v1348_v47 = vrot.slane %v1330_v40, 4  ;;  %v1117_v48 = vld [vmem:[#allocation2 + $0x28] sm:$0xf] }
 0x1f1   :  { %1145 = vrot.lane.b32.xlu1 %v1133_v49, %s4234_s21  ;;  %v906_v54 = vmul.f32 %v4679_v43, %v857_v51  ;;  %v1135_v50 = vrot.slane %v1117_v48, 4 }
 0x1f2   :  { %v4685_v10 = vpack.c.bf16 %v905_v0, %v905_v0 }
 0x1f3   :  { %v4687_v56 = vpack.c.bf16 %v906_v54, %v906_v54 }
 0x1f4   :  { %921 = vst [vmem:[#allocation2 + $0x38] sm:$0xf] %v4685_v10  ;;  %1357 = vrot.lane.b32.xlu0 %v1346_v9, %s4237_s24 }
 0x1f5   :  { %1014 = vrot.lane.b32.xlu1 %v1003_v55, %s4232_s20  ;;  %922 = vst [vmem:[#allocation2 + $0x40] sm:$0xf] %v4687_v56 }
 0x1f8   :  { %1353 = vrot.lane.b32.xlu0 %v1344_v61, %s4237_s24  ;;  %v989_v61 = vld [vmem:[#allocation2 + $0x30] sm:$0xf] }
 0x1f9   :  { %1143 = vrot.lane.b32.xlu1 %v1132_v63, %s4234_s21  ;;  %v1220_v63 = vrot.slane %v1202_v59, 4  ;;  %v1007_v2 = vrot.slane %v989_v61, 4  ;;  %v1403_v59 = vld [vmem:[#allocation2 + $0x48] sm:$0xf] }
 0x1fb   :  { %v1187_v18 = vld [vmem:[#allocation2 + $0x38] sm:$0xf] }
 0x1fc   :  { %1226 = vrot.lane.b32.xlu0 %v1216_v4, %s4235_s22  ;;  %v1188_v16 = vld [vmem:[#allocation2 + $0x40] sm:$0xf]  ;;  %1195 = vst [vmem:[#allocation3 + $0xb0] sm:$0xf] %v1187_v18  ;;  %v1272_v27 = vld [vmem:[#allocation2 + $0x38] sm:$0xf] }
 0x1fd   :  { %1018 = vrot.lane.b32.xlu1 %v1005_v5, %s4232_s20  ;;  %1196 = vst [vmem:[#allocation3 + $0xb8] sm:$0xf] %v1188_v16  ;;  %v1203_v49 = vld [vmem:[#allocation2 + $0x38] sm:$0xf]  ;;  %v1118_v4 = vld [vmem:[#allocation2 + $0x30] sm:$0xf] }
 0x1fe   :  { %v1221_v51 = vrot.slane %v1203_v49, 4  ;;  %v1332_v0 = vld [vmem:[#allocation2 + $0x38] sm:$0xf]  ;;  %v1349_v5 = vrot.slane %v1331_v3, 4  ;;  %v1136_v60 = vrot.slane %v1118_v4, 4 }
 0x1ff   :  { %v1350_v55 = vrot.slane %v1332_v0, 4  ;;  %v930_v57 = vld [vmem:[#allocation2 + $0x38] sm:$0xf]  ;;  %v1205_v18 = vld [vmem:[#allocation2 + $0x48] sm:$0xf]  ;;  %v1496_v0 = vld [vmem:[%s5762_s5] sm:$0xff] }
 0x200   :  { %1147 = vrot.lane.b32.xlu0 %v1134_v7, %s4234_s21  ;;  %v990_v6 = vld [vmem:[#allocation2 + $0x38] sm:$0xf]  ;;  %v1060_v20 = vld [vmem:[#allocation2 + $0x40] sm:$0xf] }
 0x201   :  { %1355 = vrot.lane.b32.xlu1 %v1345_v12, %s4237_s24  ;;  %v1008_v7 = vrot.slane %v990_v6, 4  ;;  %v1401_v12 = vld [vmem:[#allocation2 + $0x38] sm:$0xf]  ;;  %v1120_v34 = vld [vmem:[#allocation2 + $0x40] sm:$0xf] }
 0x202   :  { %v1059_v14 = vld [vmem:[#allocation2 + $0x38] sm:$0xf]  ;;  %v1138_v40 = vrot.slane %v1120_v34, 4 }
 0x203   :  { %v1119_v16 = vld [vmem:[#allocation2 + $0x38] sm:$0xf] }
 0x204   :  { %1230 = vrot.lane.b32.xlu0 %v1218_v15, %s4235_s22  ;;  %v931_v15 = vld [vmem:[#allocation2 + $0x40] sm:$0xf] }
 0x205   :  { %1292 = vrot.lane.b32.xlu1 %v1270_v19, %s4236_s23  ;;  %v1137_v19 = vrot.slane %v1119_v16, 4 }
 0x208   :  { %1359 = vrot.lane.b32.xlu0 %v1347_v21, %s4237_s24  ;;  %v1223_v21 = vrot.slane %v1205_v18, 4 }
 0x209   :  { %1421 = vrot.lane.b32.xlu1 %v1399_v22, %s4238_s25  ;;  %v1273_v22 = vld [vmem:[#allocation2 + $0x40] sm:$0xf] }
 0x20c   :  { %951 = vrot.lane.b32.xlu0 %v928_v23, %s4231_s19  ;;  %v1204_v23 = vld [vmem:[#allocation2 + $0x40] sm:$0xf] }
 0x20d   :  { %1296 = vrot.lane.b32.xlu1 %v1272_v27, %s4236_s23  ;;  %v991_v27 = vld [vmem:[#allocation2 + $0x40] sm:$0xf] }
 0x210   :  { %1080 = vrot.lane.b32.xlu0 %v1057_v28, %s4233_s0 }
 0x211   :  { %953 = vrot.lane.b32.xlu1 %v929_v29, %s4231_s19 }
 0x214   :  { %1294 = vrot.lane.b32.xlu0 %v1271_v32, %s4236_s23  ;;  %v1009_v32 = vrot.slane %v991_v27, 4 }
 0x215   :  { %1082 = vrot.lane.b32.xlu1 %v1058_v33, %s4233_s0  ;;  %v1333_v33 = vld [vmem:[#allocation2 + $0x40] sm:$0xf] }
 0x216   :  { %v1351_v39 = vrot.slane %v1333_v33, 4 }
 0x218   :  { %1423 = vrot.lane.b32.xlu0 %v1400_v37, %s4238_s25 }
 0x219   :  { %1232 = vrot.lane.b32.xlu1 %v1219_v36, %s4235_s22 }
 0x21c   :  { %1020 = vrot.lane.b32.xlu0 %v1006_v44, %s4232_s20  ;;  %v1334_v44 = vld [vmem:[#allocation2 + $0x48] sm:$0xf] }
 0x21d   :  { %1361 = vrot.lane.b32.xlu1 %v1348_v47, %s4237_s24 }
 0x21e   :  { %v4717_v52 = vpop.permute.xlu1 %943 }
 0x21f   :  { %v4719_v53 = vpop.permute.xlu0 %1072  ;;  %v959_v54 = vsel %vm106_vm0, %v942_v31, %v4717_v52  ;;  %v1222_v31 = vrot.slane %v1204_v23, 4 }
 0x220   :  { %v1088_v9 = vsel %vm237_vm2, %v1071_v26, %v4719_v53  ;;  %1149 = vrot.lane.b32.xlu0 %v1135_v50, %s4234_s21  ;;  %975 = vst [vmem:[#allocation3] sm:$0xf] %v959_v54  ;;  %v1274_v26 = vld [vmem:[#allocation2 + $0x48] sm:$0xf]  ;;  %v1402_v50 = vld [vmem:[#allocation2 + $0x40] sm:$0xf] }
 0x221   :  { %1236 = vrot.lane.b32.xlu1 %v1221_v51, %s4235_s22  ;;  %1104 = vst [vmem:[#allocation3 + $0x40] sm:$0xf] %v1088_v9  ;;  %v1352_v51 = vrot.slane %v1334_v44, 4 }
 0x224   :  { %955 = vrot.lane.b32.xlu0 %v930_v57, %s4231_s19 }
 0x225   :  { %1365 = vrot.lane.b32.xlu1 %v1350_v55, %s4237_s24 }
 0x228   :  { %1234 = vrot.lane.b32.xlu0 %v1220_v63, %s4235_s22 }
 0x229   :  { %1022 = vrot.lane.b32.xlu1 %v1007_v2, %s4232_s20 }
 0x22c   :  { %1363 = vrot.lane.b32.xlu0 %v1349_v5, %s4237_s24 }
 0x22d   :  { %1151 = vrot.lane.b32.xlu1 %v1136_v60, %s4234_s21 }
 0x230   :  { %1024 = vrot.lane.b32.xlu0 %v1008_v7, %s4232_s20 }
 0x231   :  { %1425 = vrot.lane.b32.xlu1 %v1401_v12, %s4238_s25 }
 0x234   :  { %1084 = vrot.lane.b32.xlu0 %v1059_v14, %s4233_s0 }
 0x235   :  { %957 = vrot.lane.b32.xlu1 %v931_v15, %s4231_s19 }
 0x238   :  { %1153 = vrot.lane.b32.xlu0 %v1137_v19, %s4234_s21 }
 0x239   :  { %1086 = vrot.lane.b32.xlu1 %v1060_v20, %s4233_s0 }
 0x23c   :  { %1298 = vrot.lane.b32.xlu0 %v1273_v22, %s4236_s23 }
 0x23d   :  { %1240 = vrot.lane.b32.xlu1 %v1223_v21, %s4235_s22 }
 0x23e   :  { %v948_v29 = vpop.permute.xlu0 %947 }
 0x23f   :  { %v1077_v28 = vpop.permute.xlu1 %1076 }
 0x240   :  { %1238 = vrot.lane.b32.xlu0 %v1222_v31, %s4235_s22 }
 0x241   :  { %1026 = vrot.lane.b32.xlu1 %v1009_v32, %s4232_s20 }
 0x242   :  { %v1289_v37 = vpop.permute.xlu0 %1288 }
 0x243   :  { %v1285_v36 = vpop.permute.xlu1 %1284 }
 0x244   :  { %1367 = vrot.lane.b32.xlu0 %v1351_v39, %s4237_s24 }
 0x245   :  { %1155 = vrot.lane.b32.xlu1 %v1138_v40, %s4234_s21 }
 0x246   :  { %v4745_v48 = vpop.permute.xlu0 %1078 }
 0x247   :  { %v1414_v47 = vpop.permute.xlu1 %1413  ;;  %v1091_v49 = vsel %vm237_vm2, %v1077_v28, %v4745_v48 }
 0x248   :  { %1107 = vst [vmem:[#allocation3 + $0x58] sm:$0xf] %v1091_v49  ;;  %1427 = vrot.lane.b32.xlu0 %v1402_v50, %s4238_s25 }
 0x249   :  { %1300 = vrot.lane.b32.xlu1 %v1274_v26, %s4236_s23 }
 0x24a   :  { %v1416_v9 = vpop.permute.xlu0 %1415 }
 0x24b   :  { %v1418_v54 = vpop.permute.xlu1 %1417  ;;  %v1431_v55 = vsel %vm5771_vm7, %v1414_v47, %v1416_v9 }
 0x24c   :  { %v1432_v57 = vsel %vm5771_vm7, %v1416_v9, %v1418_v54  ;;  %1447 = vst [vmem:[#allocation3 + $0x100] sm:$0xf] %v1431_v55  ;;  %1499 = vperm.xlu0 %4223, %v1496_v0  }
 0x24d   :  { %1448 = vst [vmem:[#allocation3 + $0x108] sm:$0xf] %v1432_v57  ;;  %1369 = vrot.lane.b32.xlu1 %v1352_v51, %s4237_s24 }
 0x24e   :  { %v4757_v63 = vpop.permute.xlu0 %1290 }
 0x24f   :  { %v946_v61 = vpop.permute.xlu1 %945  ;;  %v1304_v4 = vsel %vm454_vm5, %v1289_v37, %v4757_v63 }
 0x250   :  { %v960_v2 = vsel %vm106_vm0, %v4717_v52, %v946_v61  ;;  %v961_v3 = vsel %vm106_vm0, %v946_v61, %v948_v29  ;;  %1320 = vst [vmem:[#allocation3 + $0xd0] sm:$0xf] %v1304_v4 }
 0x251   :  { %976 = vst [vmem:[#allocation3 + $0x8] sm:$0xf] %v960_v2  ;;  %977 = vst [vmem:[#allocation3 + $0x10] sm:$0xf] %v961_v3  ;;  %1429 = vrot.lane.b32.xlu1 %v1403_v59, %s4238_s25 }
 0x252   :  { %v4765_v60 = vpop.permute.xlu0 %1419 }
 0x253   :  { %v1075_v5 = vpop.permute.xlu1 %1074  ;;  %v1433_v52 = vsel %vm5771_vm7, %v1418_v54, %v4765_v60 }
 0x254   :  { %v1089_v6 = vsel %vm237_vm2, %v4719_v53, %v1075_v5  ;;  %v1090_v7 = vsel %vm237_vm2, %v1075_v5, %v1077_v28  ;;  %1449 = vst [vmem:[#allocation3 + $0x110] sm:$0xf] %v1433_v52 }
 0x255   :  { %1105 = vst [vmem:[#allocation3 + $0x48] sm:$0xf] %v1089_v6  ;;  %1106 = vst [vmem:[#allocation3 + $0x50] sm:$0xf] %v1090_v7 }
 0x256   :  { %v1013_v14 = vpop.permute.xlu0 %1012 }
 0x257   :  { %v4772_v12 = vpop.permute.xlu1 %949  ;;  %v1028_v16 = vsel %vm176_vm1, %v4707_v30, %v1013_v14 }
 0x258   :  { %v962_v15 = vsel %vm106_vm0, %v948_v29, %v4772_v12  ;;  %1044 = vst [vmem:[#allocation3] sm:$0xf0] %v1028_v16 }
 0x259   :  { %978 = vst [vmem:[#allocation3 + $0x18] sm:$0xf] %v962_v15 }
 0x25a   :  { %v1142_v18 = vpop.permute.xlu0 %1141 }
 0x25b   :  { %v1287_v53 = vpop.permute.xlu1 %1286  ;;  %v1157_v21 = vsel %vm307_vm3, %v4713_v42, %v1142_v18 }
 0x25c   :  { %v1302_v19 = vsel %vm454_vm5, %v1285_v36, %v1287_v53  ;;  %v1303_v20 = vsel %vm454_vm5, %v1287_v53, %v1289_v37  ;;  %1173 = vst [vmem:[#allocation3 + $0x40] sm:$0xf0] %v1157_v21  ;;  %v1488_v21 = vld [vmem:[#allocation3 + $0x100] sm:$0xf] }
 0x25d   :  { %1318 = vst [vmem:[#allocation3 + $0xc0] sm:$0xf] %v1302_v19  ;;  %1319 = vst [vmem:[#allocation3 + $0xc8] sm:$0xf] %v1303_v20  ;;  %v1489_v20 = vld [vmem:[#allocation3 + $0x108] sm:$0xf] }
 0x25e   :  { %v1017_v23 = vpop.permute.xlu0 %1016 }
 0x25f   :  { %v1229_v22 = vpop.permute.xlu1 %1228  ;;  %v1456_v49 = vld [vmem:[#allocation3] sm:$0xff] }
 0x262   :  { %v1225_v28 = vpop.permute.xlu0 %1224 }
 0x263   :  { %v1146_v27 = vpop.permute.xlu1 %1145  ;;  %v1464_v57 = vld [vmem:[#allocation3 + $0x40] sm:$0xff] }
 0x266   :  { %v1358_v30 = vpop.permute.xlu0 %1357 }
 0x267   :  { %v1015_v29 = vpop.permute.xlu1 %1014 }
 0x268   :  { %v1029_v31 = vsel %vm176_vm1, %v1013_v14, %v1015_v29  ;;  %v1030_v32 = vsel %vm176_vm1, %v1015_v29, %v1017_v23 }
 0x269   :  { %1045 = vst [vmem:[#allocation3 + $0x8] sm:$0xf0] %v1029_v31  ;;  %1046 = vst [vmem:[#allocation3 + $0x10] sm:$0xf0] %v1030_v32 }
 0x26a   :  { %v1354_v34 = vpop.permute.xlu0 %1353 }
 0x26b   :  { %v1144_v33 = vpop.permute.xlu1 %1143 }
 0x26c   :  { %v1158_v36 = vsel %vm307_vm3, %v1142_v18, %v1144_v33  ;;  %v1159_v42 = vsel %vm307_vm3, %v1144_v33, %v1146_v27 }
 0x26d   :  { %1174 = vst [vmem:[#allocation3 + $0x48] sm:$0xf0] %v1158_v36  ;;  %1175 = vst [vmem:[#allocation3 + $0x50] sm:$0xf0] %v1159_v42 }
 0x26e   :  { %v1227_v39 = vpop.permute.xlu0 %1226 }
 0x26f   :  { %v4786_v37 = vpop.permute.xlu1 %1018  ;;  %v1242_v26 = vsel %vm393_vm4, %v1225_v28, %v1227_v39  ;;  %v1243_v44 = vsel %vm393_vm4, %v1227_v39, %v1229_v22  ;;  %v4813_v28 = vld [vmem:[%s5763_s4] sm:$0xf]  ;;  %s4239_s4 = smov 42  }
 0x270   :  { %v1031_v40 = vsel %vm176_vm1, %v1017_v23, %v4786_v37  ;;  %v1457_v47 = vld [vmem:[#allocation3 + $0x8] sm:$0xff]  ;;  %1258 = vst [vmem:[#allocation3 + $0x80] sm:$0xf0] %v1242_v26  ;;  %1259 = vst [vmem:[#allocation3 + $0x88] sm:$0xf0] %v1243_v44  ;;  %v1458_v7 = vld [vmem:[#allocation3 + $0x10] sm:$0xff] }
 0x271   :  { %1047 = vst [vmem:[#allocation3 + $0x18] sm:$0xf0] %v1031_v40  ;;  %1529 = vmatprep.subr.bf16.mxu0 %v1457_v47 }
 0x272   :  { %1530 = vmatpush1.bf16.msra.mxu0 %v1456_v49  ;;  %v4792_v51 = vpop.permute.xlu0 %1147 }
 0x273   :  { %v1356_v50 = vpop.permute.xlu1 %1355  ;;  %v1160_v9 = vsel %vm307_vm3, %v1146_v27, %v4792_v51  ;;  %v1506_v27 = vsel %vm661_vm8, %v1488_v21, 0 }
 0x274   :  { %v1371_v0 = vsel %vm5772_vm6, %v1354_v34, %v1356_v50  ;;  %v1372_v54 = vsel %vm5772_vm6, %v1356_v50, %v1358_v30  ;;  %v1465_v55 = vld [vmem:[#allocation3 + $0x48] sm:$0xff]  ;;  %1176 = vst [vmem:[#allocation3 + $0x58] sm:$0xf0] %v1160_v9  ;;  %v1466_v19 = vld [vmem:[#allocation3 + $0x50] sm:$0xff] }
 0x275   :  { %1387 = vst [vmem:[#allocation3 + $0xc0] sm:$0xf0] %v1371_v0  ;;  %1388 = vst [vmem:[#allocation3 + $0xc8] sm:$0xf0] %v1372_v54  ;;  %1531 = vmatprep.subr.bf16.mxu0 %v1465_v55 }
 0x276   :  { %1532 = vmatpush1.bf16.msra.mxu0 %v1464_v57  ;;  %v1231_v61 = vpop.permute.xlu0 %1230 }
 0x277   :  { %v1293_v59 = vpop.permute.xlu1 %1292  ;;  %v1244_v3 = vsel %vm393_vm4, %v1229_v22, %v1231_v61  ;;  %v1473_v4 = vld [vmem:[#allocation3 + $0x88] sm:$0xff]  ;;  %v1472_v6 = vld [vmem:[#allocation3 + $0x80] sm:$0xff] }
 0x278   :  { %v1305_v2 = vsel %vm454_vm5, %v4757_v63, %v1293_v59  ;;  %v1459_v5 = vld [vmem:[#allocation3 + $0x18] sm:$0xff]  ;;  %1260 = vst [vmem:[#allocation3 + $0x90] sm:$0xf0] %v1244_v3  ;;  %1533 = vmatprep.subr.bf16.mxu0 %v1473_v4 }
 0x279   :  { %1321 = vst [vmem:[#allocation3 + $0xd8] sm:$0xf] %v1305_v2  ;;  %1570 = vmatprep.subr.bf16.mxu1 %v1459_v5  ;;  %v1490_v5 = vld [vmem:[#allocation3 + $0x110] sm:$0xf] }
 0x27a   :  { %1534 = vmatpush1.bf16.msra.mxu0 %v1472_v6  ;;  %1571 = vmatpush1.bf16.msra.mxu1 %v1458_v7  ;;  %v1360_v14 = vpop.permute.xlu0 %1359 }
 0x27b   :  { %v1422_v52 = vpop.permute.xlu1 %1421  ;;  %v1373_v16 = vsel %vm5772_vm6, %v1358_v30, %v1360_v14  ;;  %v1467_v53 = vld [vmem:[#allocation3 + $0x58] sm:$0xff] }
 0x27c   :  { %v1434_v15 = vsel %vm5771_vm7, %v4765_v60, %v1422_v52  ;;  %v1481_v63 = vld [vmem:[#allocation3 + $0xc8] sm:$0xff]  ;;  %v1480_v18 = vld [vmem:[#allocation3 + $0xc0] sm:$0xff]  ;;  %1389 = vst [vmem:[#allocation3 + $0xd0] sm:$0xf0] %v1373_v16  ;;  %1572 = vmatprep.subr.bf16.mxu1 %v1467_v53 }
 0x27d   :  { %1450 = vst [vmem:[#allocation3 + $0x118] sm:$0xf] %v1434_v15  ;;  %1535 = vmatprep.subr.bf16.mxu0 %v1481_v63  ;;  %v1512_v15 = vsel %vm661_vm8, %v1490_v5, 0 }
 0x27e   :  { %1536 = vmatpush1.bf16.msra.mxu0 %v1480_v18  ;;  %1573 = vmatpush1.bf16.msra.mxu1 %v1466_v19  ;;  %v952_v23 = vpop.permute.xlu0 %951 }
 0x27f   :  { %v4804_v22 = vpop.permute.xlu1 %1296  ;;  %4177 = vmatprep.subr.msk.bf16.mxu0 %vm661_vm8, %v1489_v20  ;;  %v963_v60 = vsel %vm106_vm0, %v4772_v12, %v952_v23  ;;  %v1474_v57 = vld [vmem:[#allocation3 + $0x90] sm:$0xff] }
 0x280   :  { %979 = vst [vmem:[#allocation3 + $0x20] sm:$0xf] %v963_v60 }
 0x282   :  { %1538 = vmatpush1.bf16.msra.mxu0 %v1506_v27  ;;  %v1081_v30 = vpop.permute.xlu0 %1080 }
 0x283   :  { %v954_v29 = vpop.permute.xlu1 %953  ;;  %v1092_v32 = vsel %vm237_vm2, %v4745_v48, %v1081_v30 }
 0x284   :  { %v964_v31 = vsel %vm106_vm0, %v952_v23, %v954_v29  ;;  %1108 = vst [vmem:[#allocation3 + $0x60] sm:$0xf] %v1092_v32  ;;  %v1491_v4 = vld [vmem:[#allocation3 + $0x118] sm:$0xf] }
 0x285   :  { %980 = vst [vmem:[#allocation3 + $0x28] sm:$0xf] %v964_v31  ;;  %4178 = vmatmul.mubr.msk.bf16.vlgmr.msra.gmra.mrb[8].mxu0 %vm657_vm9, %v4813_v28 }
 0x286   :  { %1643 = vmatprep.mubr.bf16.mxu0 %v4581_v1  ;;  %v1295_v33 = vpop.permute.xlu0 %1294 }
 0x287   :  { %v4821_v12 = vpop.permute.xlu1 %1082  ;;  %v1306_v36 = vsel %vm454_vm5, %v1293_v59, %v1295_v33  ;;  %v1307_v42 = vsel %vm454_vm5, %v1295_v33, %v4804_v22 }
 0x288   :  { %v1093_v34 = vsel %vm237_vm2, %v1081_v30, %v4821_v12  ;;  %1322 = vst [vmem:[#allocation3 + $0xe0] sm:$0xf] %v1306_v36  ;;  %1323 = vst [vmem:[#allocation3 + $0xe8] sm:$0xf] %v1307_v42 }
 0x289   :  { %1109 = vst [vmem:[#allocation3 + $0x68] sm:$0xf] %v1093_v34 }
 0x28a   :  { %v1424_v39 = vpop.permute.xlu0 %1423 }
 0x28b   :  { %v1233_v48 = vpop.permute.xlu1 %1232  ;;  %v1435_v26 = vsel %vm5771_vm7, %v1422_v52, %v1424_v39 }
 0x28c   :  { %v1245_v40 = vsel %vm393_vm4, %v1231_v61, %v1233_v48  ;;  %1451 = vst [vmem:[#allocation3 + $0x120] sm:$0xf] %v1435_v26 }
 0x28d   :  { %1261 = vst [vmem:[#allocation3 + $0x98] sm:$0xf0] %v1245_v40 }
 0x28e   :  { %v1021_v47 = vpop.permute.xlu0 %1020 }
 0x28f   :  { %v1362_v44 = vpop.permute.xlu1 %1361  ;;  %v1032_v50 = vsel %vm176_vm1, %v4786_v37, %v1021_v47  ;;  %v1482_v37 = vld [vmem:[#allocation3 + $0xd0] sm:$0xff] }
 0x290   :  { %v1374_v49 = vsel %vm5772_vm6, %v1360_v14, %v1362_v44  ;;  %1048 = vst [vmem:[#allocation3 + $0x20] sm:$0xf0] %v1032_v50 }
 0x291   :  { %1390 = vst [vmem:[#allocation3 + $0xd8] sm:$0xf0] %v1374_v49 }
 0x292   :  { %v1150_v54 = vpop.permute.xlu0 %1149 }
 0x293   :  { %v4833_v0 = vpop.permute.xlu1 %1236  ;;  %v1161_v9 = vsel %vm307_vm3, %v4792_v51, %v1150_v54 }
 0x294   :  { %v1475_v55 = vld [vmem:[#allocation3 + $0x98] sm:$0xff]  ;;  %1177 = vst [vmem:[#allocation3 + $0x60] sm:$0xf0] %v1161_v9  ;;  %v1492_v9 = vld [vmem:[#allocation3 + $0x120] sm:$0xf] }
 0x295   :  { %1574 = vmatprep.subr.bf16.mxu1 %v1475_v55 }
 0x296   :  { %1575 = vmatpush1.bf16.msra.mxu1 %v1474_v57  ;;  %v956_v61 = vpop.permute.xlu0 %955 }
 0x297   :  { %v4837_v59 = vpop.permute.xlu1 %1365  ;;  %v965_v2 = vsel %vm106_vm0, %v954_v29, %v956_v61  ;;  %v1460_v29 = vld [vmem:[#allocation3 + $0x20] sm:$0xff] }
 0x298   :  { %v1483_v3 = vld [vmem:[#allocation3 + $0xd8] sm:$0xff]  ;;  %981 = vst [vmem:[#allocation3 + $0x30] sm:$0xf] %v965_v2 }
 0x299   :  { %1576 = vmatprep.subr.bf16.mxu1 %v1483_v3 }
 0x29a   :  { %1577 = vmatpush1.bf16.msra.mxu1 %v1482_v37  ;;  %v1235_v51 = vpop.permute.xlu0 %1234 }
 0x29b   :  { %v1023_v6 = vpop.permute.xlu1 %1022  ;;  %4179 = vmatprep.subr.msk.bf16.mxu1 %vm661_vm8, %v1491_v4  ;;  %v1246_v52 = vsel %vm393_vm4, %v1233_v48, %v1235_v51  ;;  %v1247_v14 = vsel %vm393_vm4, %v1235_v51, %v4833_v0  ;;  %v1468_v34 = vld [vmem:[#allocation3 + $0x60] sm:$0xff] }
 0x29c   :  { %v1033_v7 = vsel %vm176_vm1, %v1021_v47, %v1023_v6  ;;  %1262 = vst [vmem:[#allocation3 + $0xa0] sm:$0xf0] %v1246_v52  ;;  %1263 = vst [vmem:[#allocation3 + $0xa8] sm:$0xf0] %v1247_v14 }
 0x29d   :  { %1049 = vst [vmem:[#allocation3 + $0x28] sm:$0xf0] %v1033_v7 }
 0x29e   :  { %1579 = vmatpush1.bf16.msra.mxu1 %v1512_v15  ;;  %v1364_v63 = vpop.permute.xlu0 %1363 }
 0x29f   :  { %v1152_v16 = vpop.permute.xlu1 %1151  ;;  %v1375_v18 = vsel %vm5772_vm6, %v1362_v44, %v1364_v63  ;;  %v1376_v19 = vsel %vm5772_vm6, %v1364_v63, %v4837_v59 }
 0x2a0   :  { %v1162_v53 = vsel %vm307_vm3, %v1150_v54, %v1152_v16  ;;  %1391 = vst [vmem:[#allocation3 + $0xe0] sm:$0xf0] %v1375_v18  ;;  %1392 = vst [vmem:[#allocation3 + $0xe8] sm:$0xf0] %v1376_v19 }
 0x2a1   :  { %1178 = vst [vmem:[#allocation3 + $0x68] sm:$0xf0] %v1162_v53  ;;  %4180 = vmatmul.mubr.msk.bf16.vlgmr.msra.gmra.mrb[8].mxu1 %vm657_vm9, %v4813_v28 }
 0x2a2   :  { %1684 = vmatprep.mubr.bf16.mxu1 %v4581_v1  ;;  %v1025_v21 = vpop.permute.xlu0 %1024 }
 0x2a3   :  { %v4853_v20 = vpop.permute.xlu1 %1425  ;;  %v1034_v60 = vsel %vm176_vm1, %v1023_v6, %v1025_v21  ;;  %v1477_v36 = vld [vmem:[#allocation3 + $0xa8] sm:$0xff]  ;;  %v1476_v26 = vld [vmem:[#allocation3 + $0xa0] sm:$0xff] }
 0x2a4   :  { %v1436_v23 = vsel %vm5771_vm7, %v1424_v39, %v4853_v20  ;;  %v1461_v27 = vld [vmem:[#allocation3 + $0x28] sm:$0xff]  ;;  %1050 = vst [vmem:[#allocation3 + $0x30] sm:$0xf0] %v1034_v60 }
 0x2a5   :  { %1452 = vst [vmem:[#allocation3 + $0x128] sm:$0xf] %v1436_v23  ;;  %1611 = vmatprep.subr.bf16.mxu0 %v1461_v27 }
 0x2a6   :  { %1612 = vmatpush1.bf16.msra.mxu0 %v1460_v29  ;;  %v1085_v31 = vpop.permute.xlu0 %1084 }
 0x2a7   :  { %v958_v30 = vpop.permute.xlu1 %957  ;;  %v1094_v1 = vsel %vm237_vm2, %v4821_v12, %v1085_v31  ;;  %v1485_v44 = vld [vmem:[#allocation3 + $0xe8] sm:$0xff]  ;;  %v1484_v50 = vld [vmem:[#allocation3 + $0xe0] sm:$0xff] }
 0x2a8   :  { %v966_v32 = vsel %vm106_vm0, %v956_v61, %v958_v30  ;;  %v1469_v33 = vld [vmem:[#allocation3 + $0x68] sm:$0xff]  ;;  %1110 = vst [vmem:[#allocation3 + $0x70] sm:$0xf] %v1094_v1  ;;  %v1917_v1 = vld [vmem:[#allocation2] sm:$0xf] }
 0x2a9   :  { %982 = vst [vmem:[#allocation3 + $0x38] sm:$0xf] %v966_v32  ;;  %1613 = vmatprep.subr.bf16.mxu0 %v1469_v33  ;;  %v1786_v32 = vld [vmem:[#allocation2] sm:$0xf] }
 0x2aa   :  { %1614 = vmatpush1.bf16.msra.mxu0 %v1468_v34  ;;  %v1154_v48 = vpop.permute.xlu0 %1153  ;;  %v1804_v33 = vrot.slane %v1786_v32, 4  ;;  %v1725_v34 = vld [vmem:[#allocation2] sm:$0xf] }
 0x2ab   :  { %v1087_v42 = vpop.permute.xlu1 %1086  ;;  %1615 = vmatprep.subr.bf16.mxu0 %v1477_v36  ;;  %v1163_v40 = vsel %vm307_vm3, %v1152_v16, %v1154_v48  ;;  %1743 = vrot.lane.b32.xlu1 %v1725_v34, %s4239_s4  ;;  %v1935_v36 = vrot.slane %v1917_v1, 4 }
 0x2ac   :  { %v1095_v39 = vsel %vm237_vm2, %v1085_v31, %v1087_v42  ;;  %1179 = vst [vmem:[#allocation3 + $0x70] sm:$0xf0] %v1163_v40  ;;  %v1493_v54 = vld [vmem:[#allocation3 + $0x128] sm:$0xf]  ;;  %1813 = vrot.lane.b32.xlu0 %v1804_v33, %s4240_s14  ;;  %v1856_v42 = vld [vmem:[#allocation2] sm:$0xf] }
 0x2ad   :  { %1111 = vst [vmem:[#allocation3 + $0x78] sm:$0xf] %v1095_v39 }
 0x2ae   :  { %1616 = vmatpush1.bf16.msra.mxu0 %v1476_v26  ;;  %v1299_v47 = vpop.permute.xlu0 %1298 }
 0x2af   :  { %v1241_v12 = vpop.permute.xlu1 %1240  ;;  %1617 = vmatprep.subr.bf16.mxu0 %v1485_v44  ;;  %v1308_v49 = vsel %vm454_vm5, %v4804_v22, %v1299_v47  ;;  %v1518_v22 = vsel %vm661_vm8, %v1492_v9, 0  ;;  %1874 = vrot.lane.b32.xlu1 %v1856_v42, %s4241_s15 }
 0x2b0   :  { %1324 = vst [vmem:[#allocation3 + $0xf0] sm:$0xf] %v1308_v49  ;;  %1944 = vrot.lane.b32.xlu0 %v1935_v36, %s4242_s16 }
 0x2b2   :  { %1618 = vmatpush1.bf16.msra.mxu0 %v1484_v50  ;;  %v1239_v57 = vpop.permute.xlu0 %1238 }
 0x2b3   :  { %v1027_v55 = vpop.permute.xlu1 %1026  ;;  %4181 = vmatprep.subr.msk.bf16.mxu0 %vm661_vm8, %v1493_v54  ;;  %v1248_v2 = vsel %vm393_vm4, %v4833_v0, %v1239_v57  ;;  %v1249_v3 = vsel %vm393_vm4, %v1239_v57, %v1241_v12  ;;  %v4876_v0 = vld [vmem:[#allocation2] sm:$0xff] }
 0x2b4   :  { %v1035_v61 = vsel %vm176_vm1, %v1025_v21, %v1027_v55  ;;  %1264 = vst [vmem:[#allocation3 + $0xb0] sm:$0xf0] %v1248_v2  ;;  %1265 = vst [vmem:[#allocation3 + $0xb8] sm:$0xf0] %v1249_v3  ;;  %v1470_v18 = vld [vmem:[#allocation3 + $0x70] sm:$0xff] }
 0x2b5   :  { %1051 = vst [vmem:[#allocation3 + $0x38] sm:$0xf0] %v1035_v61 }
 0x2b6   :  { %1620 = vmatpush1.bf16.msra.mxu0 %v1518_v22  ;;  %v1368_v4 = vpop.permute.xlu0 %1367 }
 0x2b7   :  { %v1156_v37 = vpop.permute.xlu1 %1155  ;;  %v1377_v6 = vsel %vm5772_vm6, %v4837_v59, %v1368_v4  ;;  %v1462_v59 = vld [vmem:[#allocation3 + $0x30] sm:$0xff] }
 0x2b8   :  { %v1164_v5 = vsel %vm307_vm3, %v1154_v48, %v1156_v37  ;;  %1393 = vst [vmem:[#allocation3 + $0xf0] sm:$0xf0] %v1377_v6  ;;  %v2011_v48 = vld [vmem:[#allocation2 + $0x48] sm:$0xf] }
 0x2b9   :  { %1180 = vst [vmem:[#allocation3 + $0x78] sm:$0xf0] %v1164_v5  ;;  %4182 = vmatmul.mubr.msk.bf16.vlgmr.msra.gmra.mrb[12].mxu0 %vm657_vm9, %v4813_v28 }
 0x2ba   :  { %2371 = vmatprep.mubr.bf16.mxu0 %v4876_v0  ;;  %v1428_v7 = vpop.permute.xlu0 %1427 }
 0x2bb   :  { %v1301_v51 = vpop.permute.xlu1 %1300  ;;  %v1437_v14 = vsel %vm5771_vm7, %v4853_v20, %v1428_v7  ;;  %v1479_v19 = vld [vmem:[#allocation3 + $0xb8] sm:$0xff]  ;;  %v1478_v20 = vld [vmem:[#allocation3 + $0xb0] sm:$0xff] }
 0x2bc   :  { %v1309_v52 = vsel %vm454_vm5, %v1299_v47, %v1301_v51  ;;  %v1463_v15 = vld [vmem:[#allocation3 + $0x38] sm:$0xff]  ;;  %1453 = vst [vmem:[#allocation3 + $0x130] sm:$0xf] %v1437_v14 }
 0x2bd   :  { %1325 = vst [vmem:[#allocation3 + $0xf8] sm:$0xf] %v1309_v52  ;;  %1652 = vmatprep.subr.bf16.mxu1 %v1463_v15 }
 0x2be   :  { %1653 = vmatpush1.bf16.msra.mxu1 %v1462_v59 }
 0x2bf   :  { %v1370_v16 = vpop.permute.xlu1 %1369  ;;  %v1486_v27 = vld [vmem:[#allocation3 + $0xf0] sm:$0xff] }
 0x2c0   :  { %v1378_v63 = vsel %vm5772_vm6, %v1368_v4, %v1370_v16  ;;  %v1471_v53 = vld [vmem:[#allocation3 + $0x78] sm:$0xff]  ;;  %vm2179_vm6 = vcmask 719872  }
 0x2c1   :  { %1394 = vst [vmem:[#allocation3 + $0xf8] sm:$0xf0] %v1378_v63  ;;  %1654 = vmatprep.subr.bf16.mxu1 %v1471_v53 }
 0x2c2   :  { %1655 = vmatpush1.bf16.msra.mxu1 %v1470_v18 }
 0x2c3   :  { %v1430_v21 = vpop.permute.xlu1 %1429  ;;  %1656 = vmatprep.subr.bf16.mxu1 %v1479_v19  ;;  %v1494_v29 = vld [vmem:[#allocation3 + $0x130] sm:$0xf] }
 0x2c4   :  { %v1438_v23 = vsel %vm5771_vm7, %v1428_v7, %v1430_v21  ;;  %v1524_v31 = vsel %vm661_vm8, %v1494_v29, 0  ;;  %vm2048_vm7 = vcmask 1031168  }
 0x2c5   :  { %1454 = vst [vmem:[#allocation3 + $0x138] sm:$0xf] %v1438_v23 }
 0x2c6   :  { %1657 = vmatpush1.bf16.msra.mxu1 %v1478_v20 }
 0x2c8   :  { %v1487_v60 = vld [vmem:[#allocation3 + $0xf8] sm:$0xff] }
 0x2c9   :  { %1658 = vmatprep.subr.bf16.mxu1 %v1487_v60 }
 0x2ca   :  { %1659 = vmatpush1.bf16.msra.mxu1 %v1486_v27 }
 0x2cb   :  { %v4894_v39 = vpop.permute.xlu0 %1499 }
 0x2cc   :  { %v1495_v30 = vld [vmem:[#allocation3 + $0x138] sm:$0xf] }
 0x2cd   :  { %4183 = vmatprep.subr.msk.bf16.mxu1 %vm661_vm8, %v1495_v30 }
 0x2ce   :  { %1661 = vmatpush1.bf16.msra.mxu1 %v1524_v31 }
 0x2d1   :  { %4184 = vmatmul.mubr.msk.bf16.vlgmr.msra.gmra.mrb[12].mxu1 %vm657_vm9, %v4813_v28  ;;  %v2029_v28 = vrot.slane %v2011_v48, 4 }
 0x2d2   :  { %2412 = vmatprep.mubr.bf16.mxu1 %v4876_v0 }
 0x2d3   :  { %2046 = vrot.lane.b32.xlu0 %v2029_v28, %s4243_s17 }
 0x358   :  { %v1563_v40 = vpop.f32.mrb[8].mxu0 }
 0x359   :  { %v1564_v26 = vadd.f32 %v1563_v40, %v4894_v39  ;;  %v1565_v44 = vpop.f32.mrb[9].mxu0 }
 0x35a   :  { %v1566_v12 = vadd.f32 %v1565_v44, %v4894_v39  ;;  %v1567_v47 = vpop.f32.mrb[10].mxu0 }
 0x35b   :  { %v1693_v49 = vmax.f32 %v1564_v26, 0.0  ;;  %v1568_v50 = vpop.f32.mrb[11].mxu0 }
 0x35c   :  { %v1694_v54 = vmax.f32 %v1566_v12, 0.0 }
 0x35d   :  { %v1701_v9 = vmul.f32 %v1693_v49, %v4600_v13 }
 0x35e   :  { %v1702_v55 = vmul.f32 %v1694_v54, %v4605_v17 }
 0x35f   :  { %v1709_v57 = vpack.c.bf16 %v1701_v9, %v1701_v9 }
 0x360   :  { %v1710_v61 = vpack.c.bf16 %v1702_v55, %v1702_v55 }
 0x361   :  { %1717 = vst [vmem:[#allocation2 + $0x8] sm:$0xf] %v1709_v57 }
 0x362   :  { %1718 = vst [vmem:[#allocation2 + $0x10] sm:$0xf] %v1710_v61 }
 0x368   :  { %v2073_v2 = vld [vmem:[#allocation2 + $0x8] sm:$0xf] }
 0x369   :  { %v1726_v3 = vld [vmem:[#allocation2 + $0x8] sm:$0xf]  ;;  %2091 = vrot.lane.b32.xlu0 %v2073_v2, %s4244_s18  ;;  %v1727_v4 = vld [vmem:[#allocation2 + $0x10] sm:$0xf] }
 0x36a   :  { %1745 = vrot.lane.b32.xlu1 %v1726_v3, %s4239_s4  ;;  %v2204_v22 = vld [vmem:[#allocation2 + $0x8] sm:$0xf]  ;;  %v2205_v5 = vld [vmem:[#allocation2 + $0x10] sm:$0xf] }
 0x36b   :  { %v1857_v37 = vld [vmem:[#allocation2 + $0x8] sm:$0xf]  ;;  %v1988_v51 = vld [vmem:[#allocation2 + $0x10] sm:$0xf] }
 0x36c   :  { %v1787_v6 = vld [vmem:[#allocation2 + $0x8] sm:$0xf]  ;;  %1996 = vst [vmem:[#allocation3 + $0x88] sm:$0xf] %v1988_v51  ;;  %v1858_v15 = vld [vmem:[#allocation2 + $0x10] sm:$0xf] }
 0x36d   :  { %2222 = vrot.lane.b32.xlu0 %v2204_v22, %s4245_s26  ;;  %v1987_v7 = vld [vmem:[#allocation2 + $0x8] sm:$0xf]  ;;  %v1805_v52 = vrot.slane %v1787_v6, 4  ;;  %v2074_v23 = vld [vmem:[#allocation2 + $0x10] sm:$0xf] }
 0x36e   :  { %1876 = vrot.lane.b32.xlu1 %v1857_v37, %s4241_s15  ;;  %1995 = vst [vmem:[#allocation3 + $0x80] sm:$0xf] %v1987_v7  ;;  %v1918_v59 = vld [vmem:[#allocation2 + $0x8] sm:$0xf]  ;;  %v1788_v27 = vld [vmem:[#allocation2 + $0x10] sm:$0xf] }
 0x36f   :  { %v1936_v20 = vrot.slane %v1918_v59, 4  ;;  %v2003_v29 = vld [vmem:[#allocation2 + $0x8] sm:$0xf]  ;;  %v1806_v1 = vrot.slane %v1788_v27, 4  ;;  %v1919_v36 = vld [vmem:[#allocation2 + $0x10] sm:$0xf] }
 0x370   :  { %v2021_v33 = vrot.slane %v2003_v29, 4  ;;  %v2134_v42 = vld [vmem:[#allocation2 + $0x8] sm:$0xf]  ;;  %v1937_v48 = vrot.slane %v1919_v36, 4  ;;  %v2135_v40 = vld [vmem:[#allocation2 + $0x10] sm:$0xf] }
 0x371   :  { %1747 = vrot.lane.b32.xlu0 %v1727_v4, %s4239_s4  ;;  %v2152_v28 = vrot.slane %v2134_v42, 4  ;;  %v2004_v26 = vld [vmem:[#allocation2 + $0x10] sm:$0xf]  ;;  %v2153_v44 = vrot.slane %v2135_v40, 4 }
 0x372   :  { %2224 = vrot.lane.b32.xlu1 %v2205_v5, %s4245_s26  ;;  %v2022_v12 = vrot.slane %v2004_v26, 4 }
 0x374   :  { %v1604_v14 = vpop.f32.mrb[8].mxu1 }
 0x375   :  { %v1605_v16 = vadd.f32 %v1604_v14, %v4894_v39  ;;  %v1606_v63 = vpop.f32.mrb[9].mxu1  ;;  %1878 = vrot.lane.b32.xlu0 %v1858_v15, %s4241_s15 }
 0x376   :  { %1815 = vrot.lane.b32.xlu1 %v1805_v52, %s4240_s14  ;;  %v1607_v53 = vadd.f32 %v1606_v63, %v4894_v39  ;;  %v1608_v18 = vpop.f32.mrb[10].mxu1 }
 0x377   :  { %v1695_v19 = vmax.f32 %v1605_v16, 0.0  ;;  %v1609_v21 = vpop.f32.mrb[11].mxu1 }
 0x378   :  { %v1696_v60 = vmax.f32 %v1607_v53, 0.0 }
 0x379   :  { %v1703_v30 = vmul.f32 %v1695_v19, %v4621_v35  ;;  %2093 = vrot.lane.b32.xlu0 %v2074_v23, %s4244_s18 }
 0x37a   :  { %1946 = vrot.lane.b32.xlu1 %v1936_v20, %s4242_s16  ;;  %v1704_v31 = vmul.f32 %v1696_v60, %v4625_v38 }
 0x37b   :  { %v1711_v32 = vpack.c.bf16 %v1703_v30, %v1703_v30 }
 0x37c   :  { %v1712_v34 = vpack.c.bf16 %v1704_v31, %v1704_v31 }
 0x37d   :  { %1719 = vst [vmem:[#allocation2 + $0x18] sm:$0xf] %v1711_v32  ;;  %1817 = vrot.lane.b32.xlu0 %v1806_v1, %s4240_s14 }
 0x37e   :  { %2030 = vrot.lane.b32.xlu1 %v2021_v33, %s4243_s17  ;;  %1720 = vst [vmem:[#allocation2 + $0x20] sm:$0xf] %v1712_v34 }
 0x381   :  { %1948 = vrot.lane.b32.xlu0 %v1937_v48, %s4242_s16 }
 0x382   :  { %2161 = vrot.lane.b32.xlu1 %v2152_v28, %s4246_s27 }
 0x384   :  { %v1728_v47 = vld [vmem:[#allocation2 + $0x18] sm:$0xf] }
 0x385   :  { %2163 = vrot.lane.b32.xlu0 %v2153_v44, %s4246_s27  ;;  %v2075_v49 = vld [vmem:[#allocation2 + $0x18] sm:$0xf]  ;;  %v1990_v50 = vld [vmem:[#allocation2 + $0x20] sm:$0xf] }
 0x386   :  { %2032 = vrot.lane.b32.xlu1 %v2022_v12, %s4243_s17  ;;  %1998 = vst [vmem:[#allocation3 + $0x98] sm:$0xf] %v1990_v50  ;;  %v1989_v54 = vld [vmem:[#allocation2 + $0x18] sm:$0xf]  ;;  %v1860_v5 = vld [vmem:[#allocation2 + $0x20] sm:$0xf] }
 0x387   :  { %v2206_v55 = vld [vmem:[#allocation2 + $0x18] sm:$0xf]  ;;  %1997 = vst [vmem:[#allocation3 + $0x90] sm:$0xf] %v1989_v54  ;;  %v1729_v51 = vld [vmem:[#allocation2 + $0x20] sm:$0xf] }
 0x388   :  { %v1859_v57 = vld [vmem:[#allocation2 + $0x18] sm:$0xf]  ;;  %v2076_v63 = vld [vmem:[#allocation2 + $0x20] sm:$0xf] }
 0x389   :  { %1749 = vrot.lane.b32.xlu0 %v1728_v47, %s4239_s4  ;;  %v2005_v7 = vld [vmem:[#allocation2 + $0x18] sm:$0xf]  ;;  %v2207_v19 = vld [vmem:[#allocation2 + $0x20] sm:$0xf] }
 0x38a   :  { %2095 = vrot.lane.b32.xlu1 %v2075_v49, %s4244_s18  ;;  %v2023_v59 = vrot.slane %v2005_v7, 4  ;;  %v1789_v53 = vld [vmem:[#allocation2 + $0x18] sm:$0xf]  ;;  %v1921_v21 = vld [vmem:[#allocation2 + $0x20] sm:$0xf] }
 0x38b   :  { %v1807_v18 = vrot.slane %v1789_v53, 4  ;;  %v2136_v23 = vld [vmem:[#allocation2 + $0x18] sm:$0xf]  ;;  %v1939_v20 = vrot.slane %v1921_v21, 4  ;;  %v1790_v31 = vld [vmem:[#allocation2 + $0x20] sm:$0xf] }
 0x38c   :  { %v1645_v9 = vpop.f32.mrb[12].mxu0  ;;  %v2154_v60 = vrot.slane %v2136_v23, 4  ;;  %v1920_v27 = vld [vmem:[#allocation2 + $0x18] sm:$0xf]  ;;  %v1808_v32 = vrot.slane %v1790_v31, 4  ;;  %v4962_v31 = vpop.permute.xlu0 %1813 }
 0x38d   :  { %v1646_v61 = vadd.f32 %v1645_v9, %v4894_v39  ;;  %v1647_v2 = vpop.f32.mrb[13].mxu0  ;;  %2226 = vrot.lane.b32.xlu0 %v2206_v55, %s4245_s26  ;;  %v1938_v29 = vrot.slane %v1920_v27, 4  ;;  %v2006_v1 = vld [vmem:[#allocation2 + $0x20] sm:$0xf] }
 0x38e   :  { %1880 = vrot.lane.b32.xlu1 %v1859_v57, %s4241_s15  ;;  %v1648_v3 = vadd.f32 %v1647_v2, %v4894_v39  ;;  %v1649_v22 = vpop.f32.mrb[14].mxu0  ;;  %v2024_v12 = vrot.slane %v2006_v1, 4  ;;  %v2137_v54 = vld [vmem:[#allocation2 + $0x20] sm:$0xf] }
 0x38f   :  { %v1697_v37 = vmax.f32 %v1646_v61, 0.0  ;;  %v1650_v4 = vpop.f32.mrb[15].mxu0  ;;  %v2155_v61 = vrot.slane %v2137_v54, 4 }
 0x390   :  { %v1698_v6 = vmax.f32 %v1648_v3, 0.0 }
 0x391   :  { %v1705_v52 = vmul.f32 %v1697_v37, %v4643_v58  ;;  %1882 = vrot.lane.b32.xlu0 %v1860_v5, %s4241_s15 }
 0x392   :  { %1751 = vrot.lane.b32.xlu1 %v1729_v51, %s4239_s4  ;;  %v1706_v14 = vmul.f32 %v1698_v6, %v4649_v62 }
 0x393   :  { %v1713_v15 = vpack.c.bf16 %v1705_v52, %v1705_v52 }
 0x394   :  { %v1714_v16 = vpack.c.bf16 %v1706_v14, %v1706_v14 }
 0x395   :  { %1721 = vst [vmem:[#allocation2 + $0x28] sm:$0xf] %v1713_v15  ;;  %2034 = vrot.lane.b32.xlu0 %v2023_v59, %s4243_s17 }
 0x396   :  { %2097 = vrot.lane.b32.xlu1 %v2076_v63, %s4244_s18  ;;  %1722 = vst [vmem:[#allocation2 + $0x30] sm:$0xf] %v1714_v16 }
 0x399   :  { %1819 = vrot.lane.b32.xlu0 %v1807_v18, %s4240_s14 }
 0x39a   :  { %2228 = vrot.lane.b32.xlu1 %v2207_v19, %s4245_s26 }
 0x39c   :  { %v2077_v30 = vld [vmem:[#allocation2 + $0x28] sm:$0xf] }
 0x39d   :  { %1952 = vrot.lane.b32.xlu0 %v1939_v20, %s4242_s16  ;;  %v1992_v33 = vld [vmem:[#allocation2 + $0x30] sm:$0xf]  ;;  %v2208_v36 = vld [vmem:[#allocation2 + $0x28] sm:$0xf] }
 0x39e   :  { %2165 = vrot.lane.b32.xlu1 %v2154_v60, %s4246_s27  ;;  %2000 = vst [vmem:[#allocation3 + $0xa8] sm:$0xf] %v1992_v33  ;;  %v1991_v42 = vld [vmem:[#allocation2 + $0x28] sm:$0xf]  ;;  %v1731_v50 = vld [vmem:[#allocation2 + $0x30] sm:$0xf] }
 0x39f   :  { %1999 = vst [vmem:[#allocation3 + $0xa0] sm:$0xf] %v1991_v42  ;;  %v1862_v3 = vld [vmem:[#allocation2 + $0x30] sm:$0xf]  ;;  %v1730_v37 = vld [vmem:[#allocation2 + $0x28] sm:$0xf]  ;;  %v4966_v42 = vpop.permute.xlu0 %1944 }
 0x3a0   :  { %v2138_v4 = vld [vmem:[#allocation2 + $0x28] sm:$0xf]  ;;  %v1792_v51 = vld [vmem:[#allocation2 + $0x30] sm:$0xf] }
 0x3a1   :  { %2099 = vrot.lane.b32.xlu0 %v2077_v30, %s4244_s18  ;;  %v2156_v5 = vrot.slane %v2138_v4, 4  ;;  %v1861_v6 = vld [vmem:[#allocation2 + $0x28] sm:$0xf]  ;;  %v1810_v7 = vrot.slane %v1792_v51, 4  ;;  %v2078_v52 = vld [vmem:[#allocation2 + $0x30] sm:$0xf] }
 0x3a2   :  { %1950 = vrot.lane.b32.xlu1 %v1938_v29, %s4242_s16  ;;  %v1923_v14 = vld [vmem:[#allocation2 + $0x30] sm:$0xf]  ;;  %v1791_v53 = vld [vmem:[#allocation2 + $0x28] sm:$0xf] }
 0x3a3   :  { %v1941_v15 = vrot.slane %v1923_v14, 4  ;;  %v2209_v63 = vld [vmem:[#allocation2 + $0x30] sm:$0xf]  ;;  %v1809_v18 = vrot.slane %v1791_v53, 4  ;;  %v1922_v21 = vld [vmem:[#allocation2 + $0x28] sm:$0xf] }
 0x3a4   :  { %v1686_v34 = vpop.f32.mrb[12].mxu1  ;;  %v1940_v23 = vrot.slane %v1922_v21, 4  ;;  %v2008_v60 = vld [vmem:[#allocation2 + $0x30] sm:$0xf] }
 0x3a5   :  { %v1687_v48 = vadd.f32 %v1686_v34, %v4894_v39  ;;  %v1688_v28 = vpop.f32.mrb[13].mxu1  ;;  %2230 = vrot.lane.b32.xlu0 %v2208_v36, %s4245_s26  ;;  %v2026_v27 = vrot.slane %v2008_v60, 4  ;;  %v2139_v30 = vld [vmem:[#allocation2 + $0x30] sm:$0xf]  ;;  %v1744_v36 = vpop.permute.xlu1 %1743 }
 0x3a6   :  { %1821 = vrot.lane.b32.xlu1 %v1808_v32, %s4240_s14  ;;  %v1689_v40 = vadd.f32 %v1688_v28, %v4894_v39  ;;  %v1690_v26 = vpop.f32.mrb[14].mxu1  ;;  %v2007_v39 = vld [vmem:[#allocation2 + $0x28] sm:$0xf]  ;;  %v2157_v32 = vrot.slane %v2139_v30, 4 }
 0x3a7   :  { %v1699_v44 = vmax.f32 %v1687_v48, 0.0  ;;  %v1691_v47 = vpop.f32.mrb[15].mxu1  ;;  %v2025_v22 = vrot.slane %v2007_v39, 4 }
 0x3a8   :  { %v1700_v49 = vmax.f32 %v1689_v40, 0.0  ;;  %v4972_v47 = vpop.permute.xlu0 %2046 }
 0x3a9   :  { %v1707_v9 = vmul.f32 %v1699_v44, %v4673_v41  ;;  %1755 = vrot.lane.b32.xlu0 %v1731_v50, %s4239_s4 }
 0x3aa   :  { %2036 = vrot.lane.b32.xlu1 %v2024_v12, %s4243_s17  ;;  %v1708_v55 = vmul.f32 %v1700_v49, %v4679_v43  ;;  %v1875_v12 = vpop.permute.xlu1 %1874 }
 0x3ab   :  { %v1715_v57 = vpack.c.bf16 %v1707_v9, %v1707_v9 }
 0x3ac   :  { %v1716_v2 = vpack.c.bf16 %v1708_v55, %v1708_v55 }
 0x3ad   :  { %1723 = vst [vmem:[#allocation2 + $0x38] sm:$0xf] %v1715_v57  ;;  %1886 = vrot.lane.b32.xlu0 %v1862_v3, %s4241_s15 }
 0x3ae   :  { %2167 = vrot.lane.b32.xlu1 %v2155_v61, %s4246_s27  ;;  %1724 = vst [vmem:[#allocation2 + $0x40] sm:$0xf] %v1716_v2 }
 0x3b1   :  { %2038 = vrot.lane.b32.xlu0 %v2025_v22, %s4243_s17  ;;  %v2081_v22 = vld [vmem:[#allocation2 + $0x48] sm:$0xf] }
 0x3b2   :  { %1753 = vrot.lane.b32.xlu1 %v1730_v37, %s4239_s4  ;;  %v2142_v37 = vld [vmem:[#allocation2 + $0x48] sm:$0xf] }
 0x3b4   :  { %v1993_v16 = vld [vmem:[#allocation2 + $0x38] sm:$0xf] }
 0x3b5   :  { %2169 = vrot.lane.b32.xlu0 %v2156_v5, %s4246_s27  ;;  %v1994_v59 = vld [vmem:[#allocation2 + $0x40] sm:$0xf]  ;;  %2001 = vst [vmem:[#allocation3 + $0xb0] sm:$0xf] %v1993_v16  ;;  %v2079_v19 = vld [vmem:[#allocation2 + $0x38] sm:$0xf] }
 0x3b6   :  { %1884 = vrot.lane.b32.xlu1 %v1861_v6, %s4241_s15  ;;  %2002 = vst [vmem:[#allocation3 + $0xb8] sm:$0xf] %v1994_v59  ;;  %v2210_v20 = vld [vmem:[#allocation2 + $0x38] sm:$0xf]  ;;  %v1733_v29 = vld [vmem:[#allocation2 + $0x40] sm:$0xf] }
 0x3b7   :  { %v1864_v1 = vld [vmem:[#allocation2 + $0x40] sm:$0xf]  ;;  %v2009_v33 = vld [vmem:[#allocation2 + $0x38] sm:$0xf] }
 0x3b8   :  { %v2027_v34 = vrot.slane %v2009_v33, 4  ;;  %v1732_v48 = vld [vmem:[#allocation2 + $0x38] sm:$0xf]  ;;  %v1794_v44 = vld [vmem:[#allocation2 + $0x40] sm:$0xf] }
 0x3b9   :  { %1825 = vrot.lane.b32.xlu0 %v1810_v7, %s4240_s14  ;;  %v2140_v28 = vld [vmem:[#allocation2 + $0x38] sm:$0xf]  ;;  %v1812_v49 = vrot.slane %v1794_v44, 4  ;;  %v2080_v50 = vld [vmem:[#allocation2 + $0x40] sm:$0xf] }
 0x3ba   :  { %2101 = vrot.lane.b32.xlu1 %v2078_v52, %s4244_s18  ;;  %v2158_v40 = vrot.slane %v2140_v28, 4  ;;  %v1863_v26 = vld [vmem:[#allocation2 + $0x38] sm:$0xf]  ;;  %v1925_v54 = vld [vmem:[#allocation2 + $0x40] sm:$0xf]  ;;  %v2160_v52 = vrot.slane %v2142_v37, 4 }
 0x3bb   :  { %v1793_v9 = vld [vmem:[#allocation2 + $0x38] sm:$0xf]  ;;  %v1943_v61 = vrot.slane %v1925_v54, 4  ;;  %v2010_v7 = vld [vmem:[#allocation2 + $0x40] sm:$0xf] }
 0x3bc   :  { %v1811_v2 = vrot.slane %v1793_v9, 4  ;;  %v1924_v39 = vld [vmem:[#allocation2 + $0x38] sm:$0xf]  ;;  %v2028_v59 = vrot.slane %v2010_v7, 4  ;;  %v2141_v53 = vld [vmem:[#allocation2 + $0x40] sm:$0xf] }
 0x3bd   :  { %1956 = vrot.lane.b32.xlu0 %v1941_v15, %s4242_s16  ;;  %v1942_v6 = vrot.slane %v1924_v39, 4 }
 0x3be   :  { %2232 = vrot.lane.b32.xlu1 %v2209_v63, %s4245_s26 }
 0x3c1   :  { %2103 = vrot.lane.b32.xlu0 %v2079_v19, %s4244_s18 }
 0x3c2   :  { %1823 = vrot.lane.b32.xlu1 %v1809_v18, %s4240_s14  ;;  %v2212_v18 = vld [vmem:[#allocation2 + $0x48] sm:$0xf] }
 0x3c5   :  { %2234 = vrot.lane.b32.xlu0 %v2210_v20, %s4245_s26 }
 0x3c6   :  { %1954 = vrot.lane.b32.xlu1 %v1940_v23, %s4242_s16  ;;  %v2159_v23 = vrot.slane %v2141_v53, 4 }
 0x3c9   :  { %1759 = vrot.lane.b32.xlu0 %v1733_v29, %s4239_s4 }
 0x3ca   :  { %2040 = vrot.lane.b32.xlu1 %v2026_v27, %s4243_s17 }
 0x3cd   :  { %1890 = vrot.lane.b32.xlu0 %v1864_v1, %s4241_s15  ;;  %v2211_v1 = vld [vmem:[#allocation2 + $0x40] sm:$0xf] }
 0x3ce   :  { %2171 = vrot.lane.b32.xlu1 %v2157_v32, %s4246_s27 }
 0x3d1   :  { %2042 = vrot.lane.b32.xlu0 %v2027_v34, %s4243_s17 }
 0x3d2   :  { %1757 = vrot.lane.b32.xlu1 %v1732_v48, %s4239_s4 }
 0x3d5   :  { %2173 = vrot.lane.b32.xlu0 %v2158_v40, %s4246_s27 }
 0x3d6   :  { %1888 = vrot.lane.b32.xlu1 %v1863_v26, %s4241_s15 }
 0x3d9   :  { %1829 = vrot.lane.b32.xlu0 %v1812_v49, %s4240_s14 }
 0x3da   :  { %2105 = vrot.lane.b32.xlu1 %v2080_v50, %s4244_s18 }
 0x3db   :  { %v2092_v57 = vpop.permute.xlu0 %2091 }
 0x3dc   :  { %v1746_v55 = vpop.permute.xlu1 %1745 }
 0x3dd   :  { %v1762_v3 = vsel %vm1761_vm10, %v1744_v36, %v1746_v55  ;;  %1960 = vrot.lane.b32.xlu0 %v1943_v61, %s4242_s16 }
 0x3de   :  { %1778 = vst [vmem:[#allocation3] sm:$0xf] %v1762_v3  ;;  %1827 = vrot.lane.b32.xlu1 %v1811_v2, %s4240_s14 }
 0x3df   :  { %v2223_v5 = vpop.permute.xlu0 %2222 }
 0x3e0   :  { %v1877_v4 = vpop.permute.xlu1 %1876 }
 0x3e1   :  { %v1893_v51 = vsel %vm1892_vm11, %v1875_v12, %v1877_v4  ;;  %2107 = vrot.lane.b32.xlu0 %v2081_v22, %s4244_s18 }
 0x3e2   :  { %1909 = vst [vmem:[#allocation3 + $0x40] sm:$0xf] %v1893_v51  ;;  %1958 = vrot.lane.b32.xlu1 %v1942_v6, %s4242_s16 }
 0x3e3   :  { %v1748_v15 = vpop.permute.xlu0 %1747 }
 0x3e4   :  { %v4982_v14 = vpop.permute.xlu1 %2224  ;;  %v1763_v63 = vsel %vm1761_vm10, %v1746_v55, %v1748_v15 }
 0x3e5   :  { %v2241_v16 = vsel %vm2240_vm12, %v2223_v5, %v4982_v14  ;;  %1779 = vst [vmem:[#allocation3 + $0x8] sm:$0xf] %v1763_v63  ;;  %2177 = vrot.lane.b32.xlu0 %v2160_v52, %s4246_s27 }
 0x3e6   :  { %2257 = vst [vmem:[#allocation3 + $0x100] sm:$0xf] %v2241_v16  ;;  %2044 = vrot.lane.b32.xlu1 %v2028_v59, %s4243_s17 }
 0x3e7   :  { %v1879_v21 = vpop.permute.xlu0 %1878 }
 0x3e8   :  { %v1816_v19 = vpop.permute.xlu1 %1815  ;;  %v1894_v60 = vsel %vm1892_vm11, %v1877_v4, %v1879_v21 }
 0x3e9   :  { %v1832_v20 = vsel %vm1831_vm13, %v4962_v31, %v1816_v19  ;;  %1910 = vst [vmem:[#allocation3 + $0x48] sm:$0xf] %v1894_v60  ;;  %2238 = vrot.lane.b32.xlu0 %v2212_v18, %s4245_s26  ;;  %v2306_v31 = vld [vmem:[%s5764_s7] sm:$0xff] }
 0x3ea   :  { %1848 = vst [vmem:[#allocation3] sm:$0xf0] %v1832_v20  ;;  %2175 = vrot.lane.b32.xlu1 %v2159_v23, %s4246_s27 }
 0x3eb   :  { %v2094_v29 = vpop.permute.xlu0 %2093 }
 0x3ec   :  { %v1947_v27 = vpop.permute.xlu1 %1946  ;;  %v2110_v32 = vsel %vm2109_vm15, %v2092_v57, %v2094_v29 }
 0x3ed   :  { %v1963_v30 = vsel %vm1962_vm14, %v4966_v42, %v1947_v27  ;;  %2126 = vst [vmem:[#allocation3 + $0xc0] sm:$0xf] %v2110_v32  ;;  %2577 = vrot.lane.b32.xlu0 %v4876_v0, %s4231_s19 }
 0x3ee   :  { %1979 = vst [vmem:[#allocation3 + $0x40] sm:$0xf0] %v1963_v30  ;;  %2236 = vrot.lane.b32.xlu1 %v2211_v1, %s4245_s26 }
 0x3ef   :  { %v1818_v34 = vpop.permute.xlu0 %1817 }
 0x3f0   :  { %v2031_v33 = vpop.permute.xlu1 %2030  ;;  %v1833_v36 = vsel %vm1831_vm13, %v1816_v19, %v1818_v34 }
 0x3f1   :  { %1849 = vst [vmem:[#allocation3 + $0x8] sm:$0xf0] %v1833_v36  ;;  %2697 = vrot.lane.b32.xlu0 %v4876_v0, %s4233_s0  ;;  %v2266_v50 = vld [vmem:[#allocation3] sm:$0xff] }
 0x3f2   :  { %2309 = vperm.xlu1 %4224, %v2306_v31  }
 0x3f3   :  { %v1949_v48 = vpop.permute.xlu0 %1948 }
 0x3f4   :  { %v2162_v42 = vpop.permute.xlu1 %2161  ;;  %v1964_v28 = vsel %vm1962_vm14, %v1947_v27, %v1949_v48 }
 0x3f5   :  { %1980 = vst [vmem:[#allocation3 + $0x48] sm:$0xf0] %v1964_v28  ;;  %v2274_v2 = vld [vmem:[#allocation3 + $0x40] sm:$0xff] }
 0x3f6   :  { %2637 = vrot.lane.b32.xlu1 %v4876_v0, %s4232_s20  ;;  %v2298_v28 = vld [vmem:[#allocation3 + $0x100] sm:$0xf] }
 0x3f7   :  { %v2164_v26 = vpop.permute.xlu0 %2163 }
 0x3f8   :  { %v2033_v40 = vpop.permute.xlu1 %2032  ;;  %v2180_v12 = vsel %vm2179_vm6, %v2162_v42, %v2164_v26  ;;  %v2267_v49 = vld [vmem:[#allocation3 + $0x8] sm:$0xff] }
 0x3f9   :  { %v2049_v44 = vsel %vm2048_vm7, %v2031_v33, %v2033_v40  ;;  %2196 = vst [vmem:[#allocation3 + $0xc0] sm:$0xf0] %v2180_v12  ;;  %2339 = vmatprep.subr.bf16.mxu0 %v2267_v49  ;;  %v2316_v12 = vsel %vm661_vm8, %v2298_v28, 0  ;;  %v5050_v49 = vld [vmem:[%s5765_s6] sm:$0xf] }
 0x3fa   :  { %2065 = vst [vmem:[#allocation3 + $0x80] sm:$0xf0] %v2049_v44  ;;  %2757 = vrot.lane.b32.xlu1 %v4876_v0, %s4234_s21  ;;  %2340 = vmatpush1.bf16.msra.mxu0 %v2266_v50 }
 0x3fb   :  { %v1750_v9 = vpop.permute.xlu0 %1749 }
 0x3fc   :  { %v2096_v54 = vpop.permute.xlu1 %2095  ;;  %v1764_v57 = vsel %vm1761_vm10, %v1748_v15, %v1750_v9  ;;  %v2275_v61 = vld [vmem:[#allocation3 + $0x48] sm:$0xff] }
 0x3fd   :  { %v2111_v55 = vsel %vm2109_vm15, %v2094_v29, %v2096_v54  ;;  %1780 = vst [vmem:[#allocation3 + $0x10] sm:$0xf] %v1764_v57  ;;  %2341 = vmatprep.subr.bf16.mxu0 %v2275_v61 }
 0x3fe   :  { %2127 = vst [vmem:[#allocation3 + $0xc8] sm:$0xf] %v2111_v55  ;;  %2342 = vmatpush1.bf16.msra.mxu0 %v2274_v2 }
 0x3ff   :  { %v2227_v39 = vpop.permute.xlu0 %2226 }
 0x400   :  { %v1881_v3 = vpop.permute.xlu1 %1880  ;;  %v2242_v37 = vsel %vm2240_vm12, %v4982_v14, %v2227_v39  ;;  %v2290_v42 = vld [vmem:[#allocation3 + $0xc0] sm:$0xff] }
 0x401   :  { %v1895_v22 = vsel %vm1892_vm11, %v1879_v21, %v1881_v3  ;;  %2258 = vst [vmem:[#allocation3 + $0x108] sm:$0xf] %v2242_v37  ;;  %v2282_v20 = vld [vmem:[#allocation3 + $0x80] sm:$0xff] }
 0x402   :  { %1911 = vst [vmem:[#allocation3 + $0x50] sm:$0xf] %v1895_v22 }
 0x403   :  { %v5020_v5 = vpop.permute.xlu0 %1882 }
 0x404   :  { %v5018_v4 = vpop.permute.xlu1 %1751  ;;  %v1896_v51 = vsel %vm1892_vm11, %v1881_v3, %v5020_v5 }
 0x405   :  { %v1765_v6 = vsel %vm1761_vm10, %v1750_v9, %v5018_v4  ;;  %1912 = vst [vmem:[#allocation3 + $0x58] sm:$0xf] %v1896_v51 }
 0x406   :  { %1781 = vst [vmem:[#allocation3 + $0x18] sm:$0xf] %v1765_v6 }
 0x407   :  { %v2035_v52 = vpop.permute.xlu0 %2034 }
 0x408   :  { %v2098_v7 = vpop.permute.xlu1 %2097  ;;  %v2050_v14 = vsel %vm2048_vm7, %v2033_v40, %v2035_v52 }
 0x409   :  { %v2112_v15 = vsel %vm2109_vm15, %v2096_v54, %v2098_v7  ;;  %2066 = vst [vmem:[#allocation3 + $0x88] sm:$0xf0] %v2050_v14 }
 0x40a   :  { %2128 = vst [vmem:[#allocation3 + $0xd0] sm:$0xf] %v2112_v15 }
 0x40b   :  { %v1820_v16 = vpop.permute.xlu0 %1819 }
 0x40c   :  { %v2229_v59 = vpop.permute.xlu1 %2228  ;;  %v1834_v53 = vsel %vm1831_vm13, %v1818_v34, %v1820_v16 }
 0x40d   :  { %v2243_v63 = vsel %vm2240_vm12, %v2227_v39, %v2229_v59  ;;  %1850 = vst [vmem:[#allocation3 + $0x10] sm:$0xf0] %v1834_v53 }
 0x40e   :  { %2259 = vst [vmem:[#allocation3 + $0x110] sm:$0xf] %v2243_v63 }
 0x40f   :  { %v5030_v19 = vpop.permute.xlu0 %1952 }
 0x410   :  { %v2166_v18 = vpop.permute.xlu1 %2165  ;;  %v2283_v23 = vld [vmem:[#allocation3 + $0x88] sm:$0xff] }
 0x411   :  { %v2181_v21 = vsel %vm2179_vm6, %v2164_v26, %v2166_v18  ;;  %2343 = vmatprep.subr.bf16.mxu0 %v2283_v23 }
 0x412   :  { %2197 = vst [vmem:[#allocation3 + $0xc8] sm:$0xf0] %v2181_v21  ;;  %2344 = vmatpush1.bf16.msra.mxu0 %v2282_v20 }
 0x413   :  { %v2100_v27 = vpop.permute.xlu0 %2099 }
 0x414   :  { %v1951_v60 = vpop.permute.xlu1 %1950  ;;  %v2113_v32 = vsel %vm2109_vm15, %v2098_v7, %v2100_v27  ;;  %v2268_v57 = vld [vmem:[#allocation3 + $0x10] sm:$0xff] }
 0x415   :  { %v1965_v29 = vsel %vm1962_vm14, %v1949_v48, %v1951_v60  ;;  %v1966_v30 = vsel %vm1962_vm14, %v1951_v60, %v5030_v19  ;;  %2129 = vst [vmem:[#allocation3 + $0xd8] sm:$0xf] %v2113_v32  ;;  %v2299_v48 = vld [vmem:[#allocation3 + $0x108] sm:$0xf] }
 0x416   :  { %1981 = vst [vmem:[#allocation3 + $0x50] sm:$0xf0] %v1965_v29  ;;  %1982 = vst [vmem:[#allocation3 + $0x58] sm:$0xf0] %v1966_v30  ;;  %v2300_v29 = vld [vmem:[#allocation3 + $0x110] sm:$0xf] }
 0x417   :  { %v2231_v31 = vpop.permute.xlu0 %2230 }
 0x418   :  { %v5037_v1 = vpop.permute.xlu1 %1821  ;;  %v2244_v34 = vsel %vm2240_vm12, %v2229_v59, %v2231_v31 }
 0x419   :  { %v1835_v33 = vsel %vm1831_vm13, %v1820_v16, %v5037_v1  ;;  %v2291_v36 = vld [vmem:[#allocation3 + $0xc8] sm:$0xff]  ;;  %2260 = vst [vmem:[#allocation3 + $0x118] sm:$0xf] %v2244_v34 }
 0x41a   :  { %1851 = vst [vmem:[#allocation3 + $0x18] sm:$0xf0] %v1835_v33  ;;  %2345 = vmatprep.subr.bf16.mxu0 %v2291_v36 }
 0x41b   :  { %2346 = vmatpush1.bf16.msra.mxu0 %v2290_v42  ;;  %v5043_v26 = vpop.permute.xlu0 %1755 }
 0x41c   :  { %v2037_v40 = vpop.permute.xlu1 %2036  ;;  %4185 = vmatprep.subr.msk.bf16.mxu0 %vm661_vm8, %v2299_v48 }
 0x41d   :  { %v2051_v44 = vsel %vm2048_vm7, %v2035_v52, %v2037_v40  ;;  %v2277_v61 = vld [vmem:[#allocation3 + $0x58] sm:$0xff]  ;;  %v2276_v6 = vld [vmem:[#allocation3 + $0x50] sm:$0xff] }
 0x41e   :  { %2067 = vst [vmem:[#allocation3 + $0x90] sm:$0xf0] %v2051_v44 }
 0x41f   :  { %2348 = vmatpush1.bf16.msra.mxu0 %v2316_v12  ;;  %v5052_v54 = vpop.permute.xlu0 %1886 }
 0x420   :  { %v2168_v50 = vpop.permute.xlu1 %2167  ;;  %v2301_v60 = vld [vmem:[#allocation3 + $0x118] sm:$0xf] }
 0x421   :  { %v2182_v9 = vsel %vm2179_vm6, %v2166_v18, %v2168_v50  ;;  %v2269_v55 = vld [vmem:[#allocation3 + $0x18] sm:$0xff] }
 0x422   :  { %2198 = vst [vmem:[#allocation3 + $0xd0] sm:$0xf0] %v2182_v9  ;;  %4186 = vmatmul.mubr.msk.bf16.vlgmr.msra.gmra.mrb[16].mxu0 %vm657_vm9, %v5050_v49  ;;  %2380 = vmatprep.subr.bf16.mxu1 %v2269_v55 }
 0x423   :  { %2381 = vmatpush1.bf16.msra.mxu1 %v2268_v57  ;;  %2453 = vmatprep.mubr.bf16.mxu0 %v4876_v0  ;;  %v2039_v3 = vpop.permute.xlu0 %2038 }
 0x424   :  { %v1754_v2 = vpop.permute.xlu1 %1753  ;;  %2382 = vmatprep.subr.bf16.mxu1 %v2277_v61  ;;  %v2052_v37 = vsel %vm2048_vm7, %v2037_v40, %v2039_v3 }
 0x425   :  { %v1766_v39 = vsel %vm1761_vm10, %v5018_v4, %v1754_v2  ;;  %v1767_v22 = vsel %vm1761_vm10, %v1754_v2, %v5043_v26  ;;  %2068 = vst [vmem:[#allocation3 + $0x98] sm:$0xf0] %v2052_v37  ;;  %v2284_v53 = vld [vmem:[#allocation3 + $0x90] sm:$0xff] }
 0x426   :  { %1782 = vst [vmem:[#allocation3 + $0x20] sm:$0xf] %v1766_v39  ;;  %1783 = vst [vmem:[#allocation3 + $0x28] sm:$0xf] %v1767_v22 }
 0x427   :  { %2383 = vmatpush1.bf16.msra.mxu1 %v2276_v6  ;;  %v2170_v7 = vpop.permute.xlu0 %2169 }
 0x428   :  { %v1885_v51 = vpop.permute.xlu1 %1884  ;;  %v2183_v4 = vsel %vm2179_vm6, %v2168_v50, %v2170_v7 }
 0x429   :  { %v1897_v52 = vsel %vm1892_vm11, %v5020_v5, %v1885_v51  ;;  %v1898_v15 = vsel %vm1892_vm11, %v1885_v51, %v5052_v54  ;;  %2199 = vst [vmem:[#allocation3 + $0xd8] sm:$0xf0] %v2183_v4  ;;  %v2292_v20 = vld [vmem:[#allocation3 + $0xd0] sm:$0xff] }
 0x42a   :  { %1913 = vst [vmem:[#allocation3 + $0x60] sm:$0xf] %v1897_v52  ;;  %1914 = vst [vmem:[#allocation3 + $0x68] sm:$0xf] %v1898_v15 }
 0x42b   :  { %v5068_v59 = vpop.permute.xlu0 %1825 }
 0x42c   :  { %v2102_v14 = vpop.permute.xlu1 %2101  ;;  %v2285_v63 = vld [vmem:[#allocation3 + $0x98] sm:$0xff] }
 0x42d   :  { %v2114_v16 = vsel %vm2109_vm15, %v2100_v27, %v2102_v14  ;;  %2384 = vmatprep.subr.bf16.mxu1 %v2285_v63 }
 0x42e   :  { %2130 = vst [vmem:[#allocation3 + $0xe0] sm:$0xf] %v2114_v16  ;;  %2385 = vmatpush1.bf16.msra.mxu1 %v2284_v53 }
 0x42f   :  { %v5071_v5 = vpop.permute.xlu0 %1956 }
 0x430   :  { %v2233_v18 = vpop.permute.xlu1 %2232  ;;  %v2293_v23 = vld [vmem:[#allocation3 + $0xd8] sm:$0xff] }
 0x431   :  { %v2245_v21 = vsel %vm2240_vm12, %v2231_v31, %v2233_v18  ;;  %2386 = vmatprep.subr.bf16.mxu1 %v2293_v23  ;;  %v2322_v31 = vsel %vm661_vm8, %v2300_v29, 0 }
 0x432   :  { %2261 = vst [vmem:[#allocation3 + $0x120] sm:$0xf] %v2245_v21  ;;  %2387 = vmatpush1.bf16.msra.mxu1 %v2292_v20 }
 0x433   :  { %4187 = vmatprep.subr.msk.bf16.mxu1 %vm661_vm8, %v2301_v60  ;;  %v2104_v27 = vpop.permute.xlu0 %2103 }
 0x434   :  { %v1824_v30 = vpop.permute.xlu1 %1823  ;;  %v2115_v34 = vsel %vm2109_vm15, %v2102_v14, %v2104_v27 }
 0x435   :  { %v1836_v32 = vsel %vm1831_vm13, %v5037_v1, %v1824_v30  ;;  %v1837_v33 = vsel %vm1831_vm13, %v1824_v30, %v5068_v59  ;;  %2131 = vst [vmem:[#allocation3 + $0xe8] sm:$0xf] %v2115_v34 }
 0x436   :  { %1852 = vst [vmem:[#allocation3 + $0x20] sm:$0xf0] %v1836_v32  ;;  %1853 = vst [vmem:[#allocation3 + $0x28] sm:$0xf0] %v1837_v33  ;;  %2389 = vmatpush1.bf16.msra.mxu1 %v2322_v31 }
 0x437   :  { %v5081_v42 = vpop.permute.xlu0 %2234 }
 0x438   :  { %v1955_v36 = vpop.permute.xlu1 %1954  ;;  %v2246_v28 = vsel %vm2240_vm12, %v2233_v18, %v5081_v42 }
 0x439   :  { %v1967_v48 = vsel %vm1962_vm14, %v5030_v19, %v1955_v36  ;;  %v1968_v1 = vsel %vm1962_vm14, %v1955_v36, %v5071_v5  ;;  %2262 = vst [vmem:[#allocation3 + $0x128] sm:$0xf] %v2246_v28  ;;  %4188 = vmatmul.mubr.msk.bf16.vlgmr.msra.gmra.mrb[16].mxu1 %vm657_vm9, %v5050_v49  ;;  %v2302_v29 = vld [vmem:[#allocation3 + $0x120] sm:$0xf] }
 0x43a   :  { %1983 = vst [vmem:[#allocation3 + $0x60] sm:$0xf0] %v1967_v48  ;;  %1984 = vst [vmem:[#allocation3 + $0x68] sm:$0xf0] %v1968_v1  ;;  %2494 = vmatprep.mubr.bf16.mxu1 %v4876_v0  ;;  %v2328_v34 = vsel %vm661_vm8, %v2302_v29, 0 }
 0x43b   :  { %v1760_v44 = vpop.permute.xlu0 %1759 }
 0x43c   :  { %v2041_v40 = vpop.permute.xlu1 %2040 }
 0x43d   :  { %v2053_v12 = vsel %vm2048_vm7, %v2039_v3, %v2041_v40  ;;  %v2271_v50 = vld [vmem:[#allocation3 + $0x28] sm:$0xff]  ;;  %v2270_v19 = vld [vmem:[#allocation3 + $0x20] sm:$0xff] }
 0x43e   :  { %2069 = vst [vmem:[#allocation3 + $0xa0] sm:$0xf0] %v2053_v12  ;;  %2421 = vmatprep.subr.bf16.mxu0 %v2271_v50 }
 0x43f   :  { %2422 = vmatpush1.bf16.msra.mxu0 %v2270_v19  ;;  %v1891_v55 = vpop.permute.xlu0 %1890 }
 0x440   :  { %v2172_v9 = vpop.permute.xlu1 %2171  ;;  %v2303_v60 = vld [vmem:[#allocation3 + $0x128] sm:$0xf] }
 0x441   :  { %v2184_v57 = vsel %vm2179_vm6, %v2170_v7, %v2172_v9  ;;  %v2279_v61 = vld [vmem:[#allocation3 + $0x68] sm:$0xff]  ;;  %v2278_v2 = vld [vmem:[#allocation3 + $0x60] sm:$0xff] }
 0x442   :  { %2200 = vst [vmem:[#allocation3 + $0xe0] sm:$0xf0] %v2184_v57  ;;  %2423 = vmatprep.subr.bf16.mxu0 %v2279_v61 }
 0x443   :  { %2424 = vmatpush1.bf16.msra.mxu0 %v2278_v2  ;;  %v2043_v0 = vpop.permute.xlu0 %2042 }
 0x444   :  { %v1758_v39 = vpop.permute.xlu1 %1757  ;;  %v2054_v37 = vsel %vm2048_vm7, %v2041_v40, %v2043_v0 }
 0x445   :  { %v1768_v22 = vsel %vm1761_vm10, %v5043_v26, %v1758_v39  ;;  %v1769_v3 = vsel %vm1761_vm10, %v1758_v39, %v1760_v44  ;;  %2070 = vst [vmem:[#allocation3 + $0xa8] sm:$0xf0] %v2054_v37  ;;  %v2286_v63 = vld [vmem:[#allocation3 + $0xa0] sm:$0xff] }
 0x446   :  { %1784 = vst [vmem:[#allocation3 + $0x30] sm:$0xf] %v1768_v22  ;;  %1785 = vst [vmem:[#allocation3 + $0x38] sm:$0xf] %v1769_v3 }
 0x447   :  { %v2174_v51 = vpop.permute.xlu0 %2173 }
 0x448   :  { %v1889_v6 = vpop.permute.xlu1 %1888  ;;  %v2185_v15 = vsel %vm2179_vm6, %v2172_v9, %v2174_v51 }
 0x449   :  { %v1899_v7 = vsel %vm1892_vm11, %v5052_v54, %v1889_v6  ;;  %v1900_v52 = vsel %vm1892_vm11, %v1889_v6, %v1891_v55  ;;  %2201 = vst [vmem:[#allocation3 + $0xe8] sm:$0xf0] %v2185_v15  ;;  %v2294_v20 = vld [vmem:[#allocation3 + $0xe0] sm:$0xff] }
 0x44a   :  { %1915 = vst [vmem:[#allocation3 + $0x70] sm:$0xf] %v1899_v7  ;;  %1916 = vst [vmem:[#allocation3 + $0x78] sm:$0xf] %v1900_v52 }
 0x44b   :  { %v1830_v4 = vpop.permute.xlu0 %1829 }
 0x44c   :  { %v2106_v26 = vpop.permute.xlu1 %2105  ;;  %v2287_v16 = vld [vmem:[#allocation3 + $0xa8] sm:$0xff] }
 0x44d   :  { %v2116_v14 = vsel %vm2109_vm15, %v2104_v27, %v2106_v26  ;;  %2425 = vmatprep.subr.bf16.mxu0 %v2287_v16 }
 0x44e   :  { %2132 = vst [vmem:[#allocation3 + $0xf0] sm:$0xf] %v2116_v14  ;;  %2426 = vmatpush1.bf16.msra.mxu0 %v2286_v63 }
 0x44f   :  { %v1961_v18 = vpop.permute.xlu0 %1960 }
 0x450   :  { %v1828_v53 = vpop.permute.xlu1 %1827  ;;  %v2295_v23 = vld [vmem:[#allocation3 + $0xe8] sm:$0xff] }
 0x451   :  { %v1838_v54 = vsel %vm1831_vm13, %v5068_v59, %v1828_v53  ;;  %v1839_v21 = vsel %vm1831_vm13, %v1828_v53, %v1830_v4  ;;  %2427 = vmatprep.subr.bf16.mxu0 %v2295_v23 }
 0x452   :  { %1854 = vst [vmem:[#allocation3 + $0x30] sm:$0xf0] %v1838_v54  ;;  %1855 = vst [vmem:[#allocation3 + $0x38] sm:$0xf0] %v1839_v21  ;;  %2428 = vmatpush1.bf16.msra.mxu0 %v2294_v20 }
 0x453   :  { %4189 = vmatprep.subr.msk.bf16.mxu0 %vm661_vm8, %v2303_v60  ;;  %v2108_v27 = vpop.permute.xlu0 %2107 }
 0x454   :  { %v1959_v30 = vpop.permute.xlu1 %1958  ;;  %v2117_v59 = vsel %vm2109_vm15, %v2106_v26, %v2108_v27 }
 0x455   :  { %v1969_v32 = vsel %vm1962_vm14, %v5071_v5, %v1959_v30  ;;  %v1970_v33 = vsel %vm1962_vm14, %v1959_v30, %v1961_v18  ;;  %2133 = vst [vmem:[#allocation3 + $0xf8] sm:$0xf] %v2117_v59 }
 0x456   :  { %1985 = vst [vmem:[#allocation3 + $0x70] sm:$0xf0] %v1969_v32  ;;  %1986 = vst [vmem:[#allocation3 + $0x78] sm:$0xf0] %v1970_v33  ;;  %2430 = vmatpush1.bf16.msra.mxu0 %v2328_v34 }
 0x457   :  { %v2178_v36 = vpop.permute.xlu0 %2177 }
 0x458   :  { %v2045_v31 = vpop.permute.xlu1 %2044 }
 0x459   :  { %v2055_v48 = vsel %vm2048_vm7, %v2043_v0, %v2045_v31  ;;  %v2056_v1 = vsel %vm2048_vm7, %v2045_v31, %v4972_v47  ;;  %v2273_v28 = vld [vmem:[#allocation3 + $0x38] sm:$0xff]  ;;  %v2272_v40 = vld [vmem:[#allocation3 + $0x30] sm:$0xff]  ;;  %4190 = vmatmul.mubr.msk.bf16.vlgmr.msra.gmra.mrb[20].mxu0 %vm657_vm9, %v5050_v49  ;;  %vm5773_vm7 = vcmask 883712  }
 0x45a   :  { %2071 = vst [vmem:[#allocation3 + $0xb0] sm:$0xf0] %v2055_v48  ;;  %2072 = vst [vmem:[#allocation3 + $0xb8] sm:$0xf0] %v2056_v1  ;;  %2462 = vmatprep.subr.bf16.mxu1 %v2273_v28 }
 0x45b   :  { %2463 = vmatpush1.bf16.msra.mxu1 %v2272_v40  ;;  %v2239_v47 = vpop.permute.xlu0 %2238  ;;  %vm5777_vm11 = vmmov %vm5773_vm7 }
 0x45c   :  { %v2176_v5 = vpop.permute.xlu1 %2175  ;;  %vm5781_vm15 = vmmov %vm5773_vm7 }
 0x45d   :  { %v2186_v44 = vsel %vm2179_vm6, %v2174_v51, %v2176_v5  ;;  %v2187_v12 = vsel %vm2179_vm6, %v2176_v5, %v2178_v36  ;;  %v2281_v50 = vld [vmem:[#allocation3 + $0x78] sm:$0xff]  ;;  %v2280_v19 = vld [vmem:[#allocation3 + $0x70] sm:$0xff]  ;;  %vm3140_vm6 = vcmask 130048  }
 0x45e   :  { %2202 = vst [vmem:[#allocation3 + $0xf0] sm:$0xf0] %v2186_v44  ;;  %2203 = vst [vmem:[#allocation3 + $0xf8] sm:$0xf0] %v2187_v12  ;;  %2464 = vmatprep.subr.bf16.mxu1 %v2281_v50 }
 0x45f   :  { %2465 = vmatpush1.bf16.msra.mxu1 %v2280_v19 }
 0x460   :  { %v2237_v9 = vpop.permute.xlu1 %2236 }
 0x461   :  { %v2247_v55 = vsel %vm2240_vm12, %v5081_v42, %v2237_v9  ;;  %v2248_v57 = vsel %vm2240_vm12, %v2237_v9, %v2239_v47  ;;  %v2289_v61 = vld [vmem:[#allocation3 + $0xb8] sm:$0xff]  ;;  %v2288_v2 = vld [vmem:[#allocation3 + $0xb0] sm:$0xff]  ;;  %vm5778_vm12 = vmmov %vm5773_vm7 }
 0x462   :  { %2263 = vst [vmem:[#allocation3 + $0x130] sm:$0xf] %v2247_v55  ;;  %2264 = vst [vmem:[#allocation3 + $0x138] sm:$0xf] %v2248_v57  ;;  %2466 = vmatprep.subr.bf16.mxu1 %v2289_v61  ;;  %v5203_v57 = vld [vmem:[%s5766_s8] sm:$0xff] }
 0x463   :  { %2467 = vmatpush1.bf16.msra.mxu1 %v2288_v2  ;;  %v5207_v2 = vcombine.high %v5203_v57, %v5203_v57 }
 0x465   :  { %v2297_v39 = vld [vmem:[#allocation3 + $0xf8] sm:$0xff]  ;;  %v2296_v0 = vld [vmem:[#allocation3 + $0xf0] sm:$0xff]  ;;  %4195 = vmatprep.mubr.msk.bf16.mxu0 %vm3140_vm6, %v5207_v2 }
 0x466   :  { %2468 = vmatprep.subr.bf16.mxu1 %v2297_v39 }
 0x467   :  { %2469 = vmatpush1.bf16.msra.mxu1 %v2296_v0 }
 0x469   :  { %v2305_v22 = vld [vmem:[#allocation3 + $0x138] sm:$0xf]  ;;  %v2304_v3 = vld [vmem:[#allocation3 + $0x130] sm:$0xf] }
 0x46a   :  { %4191 = vmatprep.subr.msk.bf16.mxu1 %vm661_vm8, %v2305_v22  ;;  %v2334_v37 = vsel %vm661_vm8, %v2304_v3, 0  ;;  %vm5774_vm8 = vmmov %vm5773_vm7 }
 0x46b   :  { %2471 = vmatpush1.bf16.msra.mxu1 %v2334_v37 }
 0x46e   :  { %4192 = vmatmul.mubr.msk.bf16.vlgmr.msra.gmra.mrb[20].mxu1 %vm657_vm9, %v5050_v49  ;;  %vm5775_vm9 = vcmask 875520  }
 0x46f   :  { %4196 = vmatprep.mubr.msk.bf16.mxu1 %vm3140_vm6, %v5207_v2  ;;  %vm5776_vm10 = vmmov %vm5775_vm9 }
 0x470   :  { %vm5779_vm13 = vmmov %vm5775_vm9 }
 0x471   :  { %v5126_v42 = vpop.permute.xlu1 %2309  ;;  %vm5780_vm14 = vmmov %vm5775_vm9 }
 0x4f5   :  { %v2373_v6 = vpop.f32.mrb[16].mxu0 }
 0x4f6   :  { %v2374_v51 = vadd.f32 %v2373_v6, %v5126_v42  ;;  %v2375_v7 = vpop.f32.mrb[17].mxu0 }
 0x4f7   :  { %v2376_v52 = vadd.f32 %v2375_v7, %v5126_v42  ;;  %v2377_v15 = vpop.f32.mrb[18].mxu0 }
 0x4f8   :  { %v2503_v26 = vmax.f32 %v2374_v51, 0.0  ;;  %v2378_v4 = vpop.f32.mrb[19].mxu0 }
 0x4f9   :  { %v2504_v14 = vmax.f32 %v2376_v52, 0.0 }
 0x4fa   :  { %v2511_v16 = vmul.f32 %v2503_v26, %v4600_v13 }
 0x4fb   :  { %v2512_v63 = vmul.f32 %v2504_v14, %v4605_v17 }
 0x4fc   :  { %v2519_v53 = vpack.c.bf16 %v2511_v16, %v2511_v16 }
 0x4fd   :  { %v2520_v18 = vpack.c.bf16 %v2512_v63, %v2512_v63 }
 0x4fe   :  { %v2535_v54 = vrot.slane %v2519_v53, 4 }
 0x4ff   :  { %v2536_v49 = vrot.slane %v2520_v18, 4 }
 0x500   :  { %2551 = vst [vmem:[#allocation2 + $0x8] sm:$0xf0] %v2535_v54 }
 0x501   :  { %2552 = vst [vmem:[#allocation2 + $0x10] sm:$0xf0] %v2536_v49 }
 0x507   :  { %v5132_v21 = vld [vmem:[#allocation2 + $0x8] sm:$0xff] }
 0x508   :  { %v5134_v23 = vld [vmem:[#allocation2 + $0x10] sm:$0xff]  ;;  %2639 = vrot.lane.b32.xlu1 %v5132_v21, %s4232_s20  ;;  %2579 = vrot.lane.b32.xlu0 %v5132_v21, %s4231_s19  ;;  %3324 = vst [vmem:[#allocation2 + $0x8] sm:$0xf] %v4609_v24 }
 0x509   :  { %3325 = vst [vmem:[#allocation2 + $0x10] sm:$0xf] %v4611_v25 }
 0x50c   :  { %2759 = vrot.lane.b32.xlu1 %v5132_v21, %s4234_s21  ;;  %2699 = vrot.lane.b32.xlu0 %v5132_v21, %s4233_s0  ;;  %v2414_v20 = vpop.f32.mrb[16].mxu1 }
 0x50d   :  { %v2415_v60 = vadd.f32 %v2414_v20, %v5126_v42  ;;  %v2416_v29 = vpop.f32.mrb[17].mxu1 }
 0x50e   :  { %v2417_v30 = vadd.f32 %v2416_v29, %v5126_v42  ;;  %v2418_v27 = vpop.f32.mrb[18].mxu1 }
 0x50f   :  { %v2505_v32 = vmax.f32 %v2415_v60, 0.0  ;;  %v2419_v24 = vpop.f32.mrb[19].mxu1  ;;  %v5301_v27 = vld [vmem:[#allocation2] sm:$0xff] }
 0x510   :  { %2893 = vrot.lane.b32.xlu1 %v5132_v21, %s4236_s23  ;;  %2833 = vrot.lane.b32.xlu0 %v5132_v21, %s4235_s22  ;;  %v2506_v25 = vmax.f32 %v2417_v30, 0.0 }
 0x511   :  { %v2513_v33 = vmul.f32 %v2505_v32, %v4621_v35 }
 0x512   :  { %v2514_v59 = vmul.f32 %v2506_v25, %v4625_v38 }
 0x513   :  { %v2521_v34 = vpack.c.bf16 %v2513_v33, %v2513_v33 }
 0x514   :  { %3013 = vrot.lane.b32.xlu1 %v5132_v21, %s4238_s25  ;;  %2953 = vrot.lane.b32.xlu0 %v5132_v21, %s4237_s24  ;;  %v2522_v31 = vpack.c.bf16 %v2514_v59, %v2514_v59 }
 0x515   :  { %v2537_v36 = vrot.slane %v2521_v34, 4 }
 0x516   :  { %v2538_v48 = vrot.slane %v2522_v31, 4 }
 0x517   :  { %2553 = vst [vmem:[#allocation2 + $0x18] sm:$0xf0] %v2537_v36 }
 0x518   :  { %2581 = vrot.lane.b32.xlu1 %v5134_v23, %s4231_s19  ;;  %2641 = vrot.lane.b32.xlu0 %v5134_v23, %s4232_s20  ;;  %2554 = vst [vmem:[#allocation2 + $0x20] sm:$0xf0] %v2538_v48  ;;  %v3128_v48 = vld [vmem:[%s5767_s9] sm:$0xff] }
 0x51c   :  { %2701 = vrot.lane.b32.xlu1 %v5134_v23, %s4233_s0  ;;  %2761 = vrot.lane.b32.xlu0 %v5134_v23, %s4234_s21 }
 0x51e   :  { %v5166_v1 = vld [vmem:[#allocation2 + $0x18] sm:$0xff] }
 0x51f   :  { %v5168_v28 = vld [vmem:[#allocation2 + $0x20] sm:$0xff]  ;;  %3326 = vst [vmem:[#allocation2 + $0x18] sm:$0xf] %v4629_v45 }
 0x520   :  { %2895 = vrot.lane.b32.xlu1 %v5134_v23, %s4236_s23  ;;  %2835 = vrot.lane.b32.xlu0 %v5134_v23, %s4235_s22  ;;  %3327 = vst [vmem:[#allocation2 + $0x20] sm:$0xf] %v4631_v46 }
 0x524   :  { %3015 = vrot.lane.b32.xlu1 %v5134_v23, %s4238_s25  ;;  %2955 = vrot.lane.b32.xlu0 %v5134_v23, %s4237_s24 }
 0x528   :  { %2837 = vrot.lane.b32.xlu1 %v5166_v1, %s4235_s22  ;;  %2583 = vrot.lane.b32.xlu0 %v5166_v1, %s4231_s19 }
 0x52c   :  { %2703 = vrot.lane.b32.xlu1 %v5166_v1, %s4233_s0  ;;  %2643 = vrot.lane.b32.xlu0 %v5166_v1, %s4232_s20  ;;  %v2455_v45 = vpop.f32.mrb[20].mxu0 }
 0x52d   :  { %v2456_v46 = vadd.f32 %v2455_v45, %v5126_v42  ;;  %v2457_v40 = vpop.f32.mrb[21].mxu0 }
 0x52e   :  { %v2458_v5 = vadd.f32 %v2457_v40, %v5126_v42  ;;  %v2459_v44 = vpop.f32.mrb[22].mxu0 }
 0x52f   :  { %v2507_v12 = vmax.f32 %v2456_v46, 0.0  ;;  %v2460_v50 = vpop.f32.mrb[23].mxu0 }
 0x530   :  { %2957 = vrot.lane.b32.xlu1 %v5166_v1, %s4237_s24  ;;  %2897 = vrot.lane.b32.xlu0 %v5166_v1, %s4236_s23  ;;  %v2508_v19 = vmax.f32 %v2458_v5, 0.0 }
 0x531   :  { %v2515_v47 = vmul.f32 %v2507_v12, %v4643_v58 }
 0x532   :  { %v2516_v9 = vmul.f32 %v2508_v19, %v4649_v62 }
 0x533   :  { %v2523_v55 = vpack.c.bf16 %v2515_v47, %v2515_v47 }
 0x534   :  { %2585 = vrot.lane.b32.xlu1 %v5168_v28, %s4231_s19  ;;  %2763 = vrot.lane.b32.xlu0 %v5166_v1, %s4234_s21  ;;  %v2524_v61 = vpack.c.bf16 %v2516_v9, %v2516_v9 }
 0x535   :  { %v2539_v39 = vrot.slane %v2523_v55, 4 }
 0x536   :  { %v2540_v0 = vrot.slane %v2524_v61, 4 }
 0x537   :  { %2555 = vst [vmem:[#allocation2 + $0x28] sm:$0xf0] %v2539_v39 }
 0x538   :  { %2645 = vrot.lane.b32.xlu1 %v5168_v28, %s4232_s20  ;;  %3017 = vrot.lane.b32.xlu0 %v5166_v1, %s4238_s25  ;;  %2556 = vst [vmem:[#allocation2 + $0x30] sm:$0xf0] %v2540_v0 }
 0x53c   :  { %2765 = vrot.lane.b32.xlu1 %v5168_v28, %s4234_s21  ;;  %2705 = vrot.lane.b32.xlu0 %v5168_v28, %s4233_s0 }
 0x53e   :  { %v5221_v22 = vld [vmem:[#allocation2 + $0x28] sm:$0xff] }
 0x53f   :  { %v5223_v3 = vld [vmem:[#allocation2 + $0x30] sm:$0xff]  ;;  %3328 = vst [vmem:[#allocation2 + $0x28] sm:$0xf] %v4655_v8 }
 0x540   :  { %2839 = vrot.lane.b32.xlu0 %v5168_v28, %s4235_s22  ;;  %2841 = vrot.lane.b32.xlu1 %v5221_v22, %s4235_s22  ;;  %3329 = vst [vmem:[#allocation2 + $0x30] sm:$0xf] %v4657_v11 }
 0x541   :  { %v2496_v37 = vpop.f32.mrb[20].mxu1 }
 0x542   :  { %v2497_v6 = vadd.f32 %v2496_v37, %v5126_v42  ;;  %v2498_v51 = vpop.f32.mrb[21].mxu1 }
 0x543   :  { %v2499_v7 = vadd.f32 %v2498_v51, %v5126_v42  ;;  %v2500_v52 = vpop.f32.mrb[22].mxu1 }
 0x544   :  { %v2509_v15 = vmax.f32 %v2497_v6, 0.0  ;;  %2899 = vrot.lane.b32.xlu0 %v5168_v28, %s4236_s23  ;;  %2901 = vrot.lane.b32.xlu1 %v5221_v22, %s4236_s23  ;;  %v2501_v26 = vpop.f32.mrb[23].mxu1 }
 0x545   :  { %v2510_v4 = vmax.f32 %v2499_v7, 0.0 }
 0x546   :  { %v2517_v8 = vmul.f32 %v2509_v15, %v4673_v41 }
 0x547   :  { %v2518_v14 = vmul.f32 %v2510_v4, %v4679_v43 }
 0x548   :  { %v2525_v11 = vpack.c.bf16 %v2517_v8, %v2517_v8  ;;  %2959 = vrot.lane.b32.xlu0 %v5168_v28, %s4237_s24  ;;  %2961 = vrot.lane.b32.xlu1 %v5221_v22, %s4237_s24 }
 0x549   :  { %v2526_v42 = vpack.c.bf16 %v2518_v14, %v2518_v14 }
 0x54a   :  { %v2541_v16 = vrot.slane %v2525_v11, 4 }
 0x54b   :  { %v2542_v63 = vrot.slane %v2526_v42, 4 }
 0x54c   :  { %2557 = vst [vmem:[#allocation2 + $0x38] sm:$0xf0] %v2541_v16  ;;  %3019 = vrot.lane.b32.xlu0 %v5168_v28, %s4238_s25  ;;  %3021 = vrot.lane.b32.xlu1 %v5221_v22, %s4238_s25 }
 0x54d   :  { %2558 = vst [vmem:[#allocation2 + $0x40] sm:$0xf0] %v2542_v63 }
 0x550   :  { %2589 = vrot.lane.b32.xlu1 %v5223_v3, %s4231_s19  ;;  %2587 = vrot.lane.b32.xlu0 %v5221_v22, %s4231_s19 }
 0x553   :  { %v5251_v53 = vld [vmem:[#allocation2 + $0x38] sm:$0xff] }
 0x554   :  { %v5253_v18 = vld [vmem:[#allocation2 + $0x40] sm:$0xff]  ;;  %2649 = vrot.lane.b32.xlu1 %v5223_v3, %s4232_s20  ;;  %2647 = vrot.lane.b32.xlu0 %v5221_v22, %s4232_s20  ;;  %3330 = vst [vmem:[#allocation2 + $0x38] sm:$0xf] %v4685_v10  ;;  %v2638_v10 = vpop.permute.xlu1 %2637 }
 0x555   :  { %3331 = vst [vmem:[#allocation2 + $0x40] sm:$0xf] %v4687_v56  ;;  %v2578_v56 = vpop.permute.xlu0 %2577 }
 0x558   :  { %2709 = vrot.lane.b32.xlu1 %v5223_v3, %s4233_s0  ;;  %2707 = vrot.lane.b32.xlu0 %v5221_v22, %s4233_s0  ;;  %v2758_v54 = vpop.permute.xlu1 %2757 }
 0x559   :  { %v2698_v49 = vpop.permute.xlu0 %2697 }
 0x55c   :  { %2769 = vrot.lane.b32.xlu1 %v5223_v3, %s4234_s21  ;;  %2767 = vrot.lane.b32.xlu0 %v5221_v22, %s4234_s21 }
 0x560   :  { %2843 = vrot.lane.b32.xlu0 %v5223_v3, %s4235_s22  ;;  %2845 = vrot.lane.b32.xlu1 %v5251_v53, %s4235_s22 }
 0x564   :  { %2903 = vrot.lane.b32.xlu0 %v5223_v3, %s4236_s23  ;;  %2905 = vrot.lane.b32.xlu1 %v5251_v53, %s4236_s23 }
 0x568   :  { %2963 = vrot.lane.b32.xlu0 %v5223_v3, %s4237_s24  ;;  %2965 = vrot.lane.b32.xlu1 %v5251_v53, %s4237_s24 }
 0x56c   :  { %2593 = vrot.lane.b32.xlu1 %v5253_v18, %s4231_s19  ;;  %2591 = vrot.lane.b32.xlu0 %v5251_v53, %s4231_s19 }
 0x570   :  { %2653 = vrot.lane.b32.xlu1 %v5253_v18, %s4232_s20  ;;  %2651 = vrot.lane.b32.xlu0 %v5251_v53, %s4232_s20 }
 0x574   :  { %2713 = vrot.lane.b32.xlu1 %v5253_v18, %s4233_s0  ;;  %2711 = vrot.lane.b32.xlu0 %v5251_v53, %s4233_s0 }
 0x578   :  { %2773 = vrot.lane.b32.xlu1 %v5253_v18, %s4234_s21  ;;  %2771 = vrot.lane.b32.xlu0 %v5251_v53, %s4234_s21 }
 0x57a   :  { %v2640_v20 = vpop.permute.xlu1 %2639  ;;  %v2580_v60 = vpop.permute.xlu0 %2579 }
 0x57b   :  { %v2595_v36 = vsel %vm106_vm0, %v2578_v56, %v2580_v60  ;;  %v2655_v5 = vsel %vm176_vm1, %v2638_v10, %v2640_v20 }
 0x57c   :  { %3025 = vrot.lane.b32.xlu1 %v5251_v53, %s4238_s25  ;;  %3023 = vrot.lane.b32.xlu0 %v5223_v3, %s4238_s25 }
 0x57e   :  { %v2760_v29 = vpop.permute.xlu1 %2759  ;;  %v2700_v30 = vpop.permute.xlu0 %2699 }
 0x57f   :  { %v2715_v19 = vsel %vm237_vm2, %v2698_v49, %v2700_v30  ;;  %v2775_v61 = vsel %vm307_vm3, %v2758_v54, %v2760_v29 }
 0x580   :  { %2849 = vrot.lane.b32.xlu1 %v5301_v27, %s4235_s22  ;;  %2847 = vrot.lane.b32.xlu0 %v5253_v18, %s4235_s22 }
 0x582   :  { %v2894_v32 = vpop.permute.xlu1 %2893  ;;  %v2834_v24 = vpop.permute.xlu0 %2833 }
 0x584   :  { %2909 = vrot.lane.b32.xlu1 %v5301_v27, %s4236_s23  ;;  %2907 = vrot.lane.b32.xlu0 %v5253_v18, %s4236_s23 }
 0x586   :  { %v5311_v25 = vpop.permute.xlu1 %3013  ;;  %v2954_v33 = vpop.permute.xlu0 %2953 }
 0x588   :  { %2969 = vrot.lane.b32.xlu1 %v5301_v27, %s4237_s24  ;;  %2967 = vrot.lane.b32.xlu0 %v5253_v18, %s4237_s24 }
 0x58a   :  { %v2582_v59 = vpop.permute.xlu1 %2581  ;;  %v5317_v34 = vpop.permute.xlu0 %2641 }
 0x58b   :  { %v2596_v31 = vsel %vm106_vm0, %v2580_v60, %v2582_v59  ;;  %v2656_v45 = vsel %vm176_vm1, %v2640_v20, %v5317_v34  ;;  %v5372_v20 = vcombine.low %v5203_v57, %v5203_v57 }
 0x58c   :  { %3029 = vrot.lane.b32.xlu1 %v5301_v27, %s4238_s25  ;;  %3027 = vrot.lane.b32.xlu0 %v5253_v18, %s4238_s25 }
 0x58d   :  { %3144 = vmatprep.subr.bf16.mxu0 %v2596_v31 }
 0x58e   :  { %v5330_v46 = vpop.permute.xlu1 %2701  ;;  %v5332_v40 = vpop.permute.xlu0 %2761  ;;  %3145 = vmatpush1.bf16.msra.mxu0 %v2595_v36 }
 0x58f   :  { %3146 = vmatprep.subr.bf16.mxu0 %v2656_v45  ;;  %v2716_v44 = vsel %vm237_vm2, %v2700_v30, %v5330_v46  ;;  %v2776_v47 = vsel %vm307_vm3, %v2760_v29, %v5332_v40 }
 0x590   :  { %3131 = vperm.xlu0 %4223, %v3128_v48   ;;  %3390 = vrot.lane.b32.xlu1 %v5301_v27, %s4231_s19 }
 0x592   :  { %v2896_v12 = vpop.permute.xlu1 %2895  ;;  %v2836_v50 = vpop.permute.xlu0 %2835  ;;  %3147 = vmatpush1.bf16.msra.mxu0 %v2655_v5 }
 0x593   :  { %3148 = vmatprep.subr.bf16.mxu0 %v2716_v44  ;;  %v2851_v7 = vsel %vm393_vm4, %v2834_v24, %v2836_v50 }
 0x594   :  { %3450 = vrot.lane.b32.xlu0 %v5301_v27, %s4232_s20  ;;  %3510 = vrot.lane.b32.xlu1 %v5301_v27, %s4233_s0 }
 0x596   :  { %v3016_v9 = vpop.permute.xlu1 %3015  ;;  %v2956_v55 = vpop.permute.xlu0 %2955  ;;  %3149 = vmatpush1.bf16.msra.mxu0 %v2715_v19 }
 0x597   :  { %3150 = vmatprep.subr.bf16.mxu0 %v2776_v47  ;;  %v2971_v42 = vsel %vm5774_vm8, %v2954_v33, %v2956_v55  ;;  %v3031_v49 = vsel %vm5776_vm10, %v5311_v25, %v3016_v9  ;;  %vm5782_vm8 = vmmov %vm5775_vm9 }
 0x598   :  { %3570 = vrot.lane.b32.xlu0 %v5301_v27, %s4234_s21  ;;  %vm5784_vm10 = vmmov %vm5773_vm7 }
 0x59a   :  { %v2838_v39 = vpop.permute.xlu1 %2837  ;;  %v2584_v0 = vpop.permute.xlu0 %2583  ;;  %3151 = vmatpush1.bf16.msra.mxu0 %v2775_v61 }
 0x59b   :  { %3152 = vmatprep.subr.bf16.mxu0 %v5134_v23  ;;  %v2852_v37 = vsel %vm393_vm4, %v2836_v50, %v2838_v39  ;;  %v2911_v23 = vsel %vm454_vm5, %v2894_v32, %v2896_v12  ;;  %v2597_v11 = vsel %vm106_vm0, %v2582_v59, %v2584_v0 }
 0x59c   :  { %3662 = vrot.lane.b32.xlu0 %v5301_v27, %s4235_s22 }
 0x59e   :  { %v2704_v6 = vpop.permute.xlu1 %2703  ;;  %v2644_v51 = vpop.permute.xlu0 %2643  ;;  %3153 = vmatpush1.bf16.msra.mxu0 %v5132_v21 }
 0x59f   :  { %3154 = vmatprep.subr.bf16.mxu0 %v2852_v37  ;;  %v2657_v54 = vsel %vm176_vm1, %v5317_v34, %v2644_v51  ;;  %v2717_v32 = vsel %vm237_vm2, %v5330_v46, %v2704_v6 }
 0x5a2   :  { %v5355_v52 = vpop.permute.xlu1 %2957  ;;  %v2898_v15 = vpop.permute.xlu0 %2897  ;;  %3155 = vmatpush1.bf16.msra.mxu0 %v2851_v7 }
 0x5a3   :  { %v2912_v26 = vsel %vm454_vm5, %v2896_v12, %v2898_v15  ;;  %v2972_v4 = vsel %vm5773_vm7, %v2956_v55, %v5355_v52 }
 0x5a4   :  { %3156 = vmatprep.subr.bf16.mxu0 %v2912_v26 }
 0x5a6   :  { %v2586_v8 = vpop.permute.xlu1 %2585  ;;  %v2764_v14 = vpop.permute.xlu0 %2763  ;;  %3157 = vmatpush1.bf16.msra.mxu0 %v2911_v23 }
 0x5a7   :  { %v2598_v21 = vsel %vm106_vm0, %v2584_v0, %v2586_v8  ;;  %3158 = vmatprep.subr.bf16.mxu0 %v2972_v4  ;;  %v2777_v57 = vsel %vm307_vm3, %v5332_v40, %v2764_v14 }
 0x5a8   :  { %3185 = vmatprep.subr.bf16.mxu1 %v2598_v21 }
 0x5a9   :  { %3186 = vmatpush1.bf16.msra.mxu1 %v2597_v11 }
 0x5aa   :  { %v2646_v16 = vpop.permute.xlu1 %2645  ;;  %v3018_v63 = vpop.permute.xlu0 %3017  ;;  %3159 = vmatpush1.bf16.msra.mxu0 %v2971_v42 }
 0x5ab   :  { %v2658_v10 = vsel %vm176_vm1, %v2644_v51, %v2646_v16  ;;  %v3032_v56 = vsel %vm5775_vm9, %v3016_v9, %v3018_v63  ;;  %vm5783_vm9 = vmmov %vm5782_vm8 }
 0x5ac   :  { %3160 = vmatprep.subr.bf16.mxu0 %v3032_v56  ;;  %3187 = vmatprep.subr.bf16.mxu1 %v2658_v10 }
 0x5ad   :  { %3188 = vmatpush1.bf16.msra.mxu1 %v2657_v54 }
 0x5ae   :  { %v2766_v60 = vpop.permute.xlu1 %2765  ;;  %v2706_v29 = vpop.permute.xlu0 %2705  ;;  %3161 = vmatpush1.bf16.msra.mxu0 %v3031_v49 }
 0x5af   :  { %v2718_v30 = vsel %vm237_vm2, %v2704_v6, %v2706_v29  ;;  %v2778_v24 = vsel %vm307_vm3, %v2764_v14, %v2766_v60 }
 0x5b0   :  { %3189 = vmatprep.subr.bf16.mxu1 %v2718_v30 }
 0x5b1   :  { %3177 = vmatmul.mubr.bf16.vlgmr.msra.gmra.mrb[24].mxu0 %v5372_v20  ;;  %3190 = vmatpush1.bf16.msra.mxu1 %v2717_v32 }
 0x5b2   :  { %v5379_v25 = vpop.permute.xlu1 %2841  ;;  %v2840_v33 = vpop.permute.xlu0 %2839  ;;  %3191 = vmatprep.subr.bf16.mxu1 %v2778_v24  ;;  %4197 = vmatprep.mubr.msk.bf16.mxu0 %vm3140_vm6, %v5207_v2 }
 0x5b3   :  { %v2854_v31 = vsel %vm393_vm4, %v2840_v33, %v5379_v25  ;;  %v2853_v45 = vsel %vm393_vm4, %v2838_v39, %v2840_v33 }
 0x5b5   :  { %3192 = vmatpush1.bf16.msra.mxu1 %v2777_v57 }
 0x5b6   :  { %v5385_v59 = vpop.permute.xlu1 %2901  ;;  %v2900_v34 = vpop.permute.xlu0 %2899  ;;  %3193 = vmatprep.subr.bf16.mxu1 %v5168_v28 }
 0x5b7   :  { %v2914_v46 = vsel %vm454_vm5, %v2900_v34, %v5385_v59  ;;  %v2913_v28 = vsel %vm454_vm5, %v2898_v15, %v2900_v34 }
 0x5b9   :  { %3194 = vmatpush1.bf16.msra.mxu1 %v5166_v1 }
 0x5ba   :  { %v5391_v36 = vpop.permute.xlu1 %2961  ;;  %v2960_v48 = vpop.permute.xlu0 %2959  ;;  %3195 = vmatprep.subr.bf16.mxu1 %v2854_v31 }
 0x5bb   :  { %v2974_v44 = vsel %vm5777_vm11, %v2960_v48, %v5391_v36  ;;  %v2973_v47 = vsel %vm5778_vm12, %v5355_v52, %v2960_v48  ;;  %vm5785_vm11 = vmmov %vm5773_vm7 }
 0x5bc   :  { %vm5786_vm12 = vmmov %vm5782_vm8 }
 0x5bd   :  { %3196 = vmatpush1.bf16.msra.mxu1 %v2853_v45 }
 0x5be   :  { %v5396_v40 = vpop.permute.xlu1 %3021  ;;  %v3020_v5 = vpop.permute.xlu0 %3019  ;;  %3197 = vmatprep.subr.bf16.mxu1 %v2914_v46 }
 0x5bf   :  { %v3034_v9 = vsel %vm5779_vm13, %v3020_v5, %v5396_v40  ;;  %v3033_v37 = vsel %vm5780_vm14, %v3018_v63, %v3020_v5  ;;  %vm5787_vm13 = vmmov %vm5782_vm8 }
 0x5c0   :  { %vm5788_vm14 = vmmov %vm5773_vm7 }
 0x5c1   :  { %3198 = vmatpush1.bf16.msra.mxu1 %v2913_v28 }
 0x5c2   :  { %v2590_v1 = vpop.permute.xlu1 %2589  ;;  %v2588_v12 = vpop.permute.xlu0 %2587  ;;  %3199 = vmatprep.subr.bf16.mxu1 %v2974_v44 }
 0x5c3   :  { %v2599_v50 = vsel %vm106_vm0, %v2586_v8, %v2588_v12  ;;  %v2600_v19 = vsel %vm106_vm0, %v2588_v12, %v2590_v1 }
 0x5c4   :  { %3226 = vmatprep.subr.bf16.mxu0 %v2600_v19 }
 0x5c5   :  { %3200 = vmatpush1.bf16.msra.mxu1 %v2973_v47  ;;  %3227 = vmatpush1.bf16.msra.mxu0 %v2599_v50 }
 0x5c6   :  { %v2650_v55 = vpop.permute.xlu1 %2649  ;;  %v2648_v61 = vpop.permute.xlu0 %2647  ;;  %3201 = vmatprep.subr.bf16.mxu1 %v3034_v9 }
 0x5c7   :  { %v2659_v39 = vsel %vm176_vm1, %v2646_v16, %v2648_v61  ;;  %v2660_v0 = vsel %vm176_vm1, %v2648_v61, %v2650_v55 }
 0x5c8   :  { %3228 = vmatprep.subr.bf16.mxu0 %v2660_v0 }
 0x5c9   :  { %3202 = vmatpush1.bf16.msra.mxu1 %v3033_v37  ;;  %3229 = vmatpush1.bf16.msra.mxu0 %v2659_v39 }
 0x5ca   :  { %v2710_v6 = vpop.permute.xlu1 %2709  ;;  %v2708_v51 = vpop.permute.xlu0 %2707 }
 0x5cb   :  { %v2719_v7 = vsel %vm237_vm2, %v2706_v29, %v2708_v51  ;;  %v2720_v52 = vsel %vm237_vm2, %v2708_v51, %v2710_v6 }
 0x5cc   :  { %3218 = vmatmul.mubr.bf16.vlgmr.msra.gmra.mrb[24].mxu1 %v5372_v20  ;;  %3230 = vmatprep.subr.bf16.mxu0 %v2720_v52 }
 0x5cd   :  { %3231 = vmatpush1.bf16.msra.mxu0 %v2719_v7  ;;  %4198 = vmatprep.mubr.msk.bf16.mxu1 %vm3140_vm6, %v5207_v2 }
 0x5ce   :  { %v2770_v15 = vpop.permute.xlu1 %2769  ;;  %v2768_v26 = vpop.permute.xlu0 %2767 }
 0x5cf   :  { %v2779_v23 = vsel %vm307_vm3, %v2766_v60, %v2768_v26  ;;  %v2780_v4 = vsel %vm307_vm3, %v2768_v26, %v2770_v15 }
 0x5d0   :  { %3232 = vmatprep.subr.bf16.mxu0 %v2780_v4 }
 0x5d1   :  { %3233 = vmatpush1.bf16.msra.mxu0 %v2779_v23 }
 0x5d2   :  { %v2846_v8 = vpop.permute.xlu1 %2845  ;;  %v2844_v14 = vpop.permute.xlu0 %2843  ;;  %3234 = vmatprep.subr.bf16.mxu0 %v5223_v3 }
 0x5d3   :  { %v2856_v21 = vsel %vm393_vm4, %v2844_v14, %v2846_v8  ;;  %v2855_v2 = vsel %vm393_vm4, %v5379_v25, %v2844_v14 }
 0x5d5   :  { %3235 = vmatpush1.bf16.msra.mxu0 %v5221_v22 }
 0x5d6   :  { %v2906_v11 = vpop.permute.xlu1 %2905  ;;  %v2904_v42 = vpop.permute.xlu0 %2903  ;;  %3236 = vmatprep.subr.bf16.mxu0 %v2856_v21 }
 0x5d7   :  { %v2916_v16 = vsel %vm454_vm5, %v2904_v42, %v2906_v11  ;;  %v2915_v56 = vsel %vm454_vm5, %v5385_v59, %v2904_v42 }
 0x5d9   :  { %3237 = vmatpush1.bf16.msra.mxu0 %v2855_v2 }
 0x5da   :  { %v2966_v63 = vpop.permute.xlu1 %2965  ;;  %v2964_v10 = vpop.permute.xlu0 %2963  ;;  %3238 = vmatprep.subr.bf16.mxu0 %v2916_v16 }
 0x5db   :  { %v2976_v3 = vsel %vm5781_vm15, %v2964_v10, %v2966_v63  ;;  %v2975_v29 = vsel %vm5773_vm7, %v5391_v36, %v2964_v10  ;;  %vm5789_vm15 = vmmov %vm5782_vm8 }
 0x5dc   :  { %vm5790_vm7 = vmmov %vm5782_vm8 }
 0x5dd   :  { %3239 = vmatpush1.bf16.msra.mxu0 %v2915_v56 }
 0x5de   :  { %v2594_v54 = vpop.permute.xlu1 %2593  ;;  %v2592_v22 = vpop.permute.xlu0 %2591  ;;  %3240 = vmatprep.subr.bf16.mxu0 %v2976_v3 }
 0x5df   :  { %v2601_v49 = vsel %vm106_vm0, %v2590_v1, %v2592_v22  ;;  %v2602_v60 = vsel %vm106_vm0, %v2592_v22, %v2594_v54 }
 0x5e0   :  { %3267 = vmatprep.subr.bf16.mxu1 %v2602_v60 }
 0x5e1   :  { %3241 = vmatpush1.bf16.msra.mxu0 %v2975_v29  ;;  %3268 = vmatpush1.bf16.msra.mxu1 %v2601_v49 }
 0x5e2   :  { %v2654_v30 = vpop.permute.xlu1 %2653  ;;  %v2652_v32 = vpop.permute.xlu0 %2651 }
 0x5e3   :  { %v2661_v24 = vsel %vm176_vm1, %v2650_v55, %v2652_v32  ;;  %v2662_v25 = vsel %vm176_vm1, %v2652_v32, %v2654_v30 }
 0x5e4   :  { %3269 = vmatprep.subr.bf16.mxu1 %v2662_v25 }
 0x5e5   :  { %3270 = vmatpush1.bf16.msra.mxu1 %v2661_v24 }
 0x5e6   :  { %v2714_v33 = vpop.permute.xlu1 %2713  ;;  %v2712_v57 = vpop.permute.xlu0 %2711 }
 0x5e7   :  { %v2721_v59 = vsel %vm237_vm2, %v2710_v6, %v2712_v57  ;;  %v2722_v34 = vsel %vm237_vm2, %v2712_v57, %v2714_v33 }
 0x5e8   :  { %3271 = vmatprep.subr.bf16.mxu1 %v2722_v34 }
 0x5e9   :  { %3272 = vmatpush1.bf16.msra.mxu1 %v2721_v59 }
 0x5ea   :  { %v2774_v31 = vpop.permute.xlu1 %2773  ;;  %v2772_v36 = vpop.permute.xlu0 %2771 }
 0x5eb   :  { %v2781_v48 = vsel %vm307_vm3, %v2770_v15, %v2772_v36  ;;  %v2782_v45 = vsel %vm307_vm3, %v2772_v36, %v2774_v31 }
 0x5ec   :  { %3273 = vmatprep.subr.bf16.mxu1 %v2782_v45 }
 0x5ed   :  { %3274 = vmatpush1.bf16.msra.mxu1 %v2781_v48  ;;  %v5524_v48 = vld.sshfl [vmem:[%s5768_s10] sm:$0x33 pattern:$0x76325410] }
 0x5ee   :  { %v3026_v46 = vpop.permute.xlu1 %3025  ;;  %v3024_v5 = vpop.permute.xlu0 %3023  ;;  %3275 = vmatprep.subr.bf16.mxu1 %v5253_v18 }
 0x5ef   :  { %v3035_v28 = vsel %vm5782_vm8, %v5396_v40, %v3024_v5  ;;  %v3036_v44 = vsel %vm5783_vm9, %v3024_v5, %v3026_v46  ;;  %vm5791_vm8 = vmmov %vm5784_vm10 }
 0x5f0   :  { %3242 = vmatprep.subr.bf16.mxu0 %v3036_v44  ;;  %vm5792_vm9 = vmmov %vm5791_vm8 }
 0x5f1   :  { %3243 = vmatpush1.bf16.msra.mxu0 %v3035_v28  ;;  %3276 = vmatpush1.bf16.msra.mxu1 %v5251_v53 }
 0x5f2   :  { %v2850_v1 = vpop.permute.xlu1 %2849  ;;  %v2848_v12 = vpop.permute.xlu0 %2847 }
 0x5f3   :  { %v2857_v50 = vsel %vm393_vm4, %v2846_v8, %v2848_v12  ;;  %v2858_v19 = vsel %vm393_vm4, %v2848_v12, %v2850_v1 }
 0x5f4   :  { %3259 = vmatmul.mubr.bf16.vlgmr.msra.gmra.mrb[28].mxu0 %v5372_v20  ;;  %3277 = vmatprep.subr.bf16.mxu1 %v2858_v19 }
 0x5f5   :  { %3278 = vmatpush1.bf16.msra.mxu1 %v2857_v50 }
 0x5f6   :  { %v2910_v18 = vpop.permute.xlu1 %2909  ;;  %v2908_v47 = vpop.permute.xlu0 %2907 }
 0x5f7   :  { %v2917_v40 = vsel %vm454_vm5, %v2906_v11, %v2908_v47  ;;  %v2918_v9 = vsel %vm454_vm5, %v2908_v47, %v2910_v18 }
 0x5f8   :  { %3279 = vmatprep.subr.bf16.mxu1 %v2918_v9 }
 0x5f9   :  { %3280 = vmatpush1.bf16.msra.mxu1 %v2917_v40 }
 0x5fa   :  { %v2970_v55 = vpop.permute.xlu1 %2969  ;;  %v2968_v53 = vpop.permute.xlu0 %2967 }
 0x5fb   :  { %v2977_v61 = vsel %vm5784_vm10, %v2966_v63, %v2968_v53  ;;  %v2978_v39 = vsel %vm5785_vm11, %v2968_v53, %v2970_v55  ;;  %vm5793_vm10 = vmmov %vm5790_vm7 }
 0x5fc   :  { %3281 = vmatprep.subr.bf16.mxu1 %v2978_v39  ;;  %vm5794_vm11 = vmmov %vm5790_vm7 }
 0x5fd   :  { %3282 = vmatpush1.bf16.msra.mxu1 %v2977_v61 }
 0x5fe   :  { %v3030_v0 = vpop.permute.xlu1 %3029  ;;  %v3028_v37 = vpop.permute.xlu0 %3027 }
 0x5ff   :  { %v3037_v6 = vsel %vm5786_vm12, %v3026_v46, %v3028_v37  ;;  %v3038_v51 = vsel %vm5787_vm13, %v3028_v37, %v3030_v0  ;;  %v5532_v46 = vcombine.high %v5524_v48, %v5524_v48  ;;  %vm5795_vm12 = vmmov %vm5791_vm8 }
 0x600   :  { %3283 = vmatprep.subr.bf16.mxu1 %v3038_v51 }
 0x601   :  { %3284 = vmatpush1.bf16.msra.mxu1 %v3037_v6  ;;  %4200 = vmatprep.mubr.msk.bf16.mxu0 %vm3140_vm6, %v5532_v46 }
 0x604   :  { %3300 = vmatmul.mubr.bf16.vlgmr.msra.gmra.mrb[28].mxu1 %v5372_v20 }
 0x605   :  { %4201 = vmatprep.mubr.msk.bf16.mxu1 %vm3140_vm6, %v5532_v46 }
 0x60f   :  { %v5451_v7 = vpop.permute.xlu0 %3131 }
 0x684   :  { %v3178_v52 = vpop.f32.mrb[24].mxu0 }
 0x685   :  { %v3179_v15 = vadd.f32 %v3178_v52, %v5451_v7  ;;  %v3180_v26 = vpop.f32.mrb[25].mxu0 }
 0x686   :  { %v3181_v23 = vadd.f32 %v3180_v26, %v5451_v7  ;;  %v3182_v4 = vpop.f32.mrb[26].mxu0 }
 0x687   :  { %v3308_v8 = vmax.f32 %v3179_v15, 0.0  ;;  %v3183_v14 = vpop.f32.mrb[27].mxu0 }
 0x688   :  { %v3309_v21 = vmax.f32 %v3181_v23, 0.0 }
 0x689   :  { %v3316_v11 = vmul.f32 %v3308_v8, %v4600_v13 }
 0x68a   :  { %v3317_v42 = vmul.f32 %v3309_v21, %v4605_v17 }
 0x68b   :  { %v3332_v2 = vpack.c.bf16 %v3316_v11, %v3316_v11 }
 0x68c   :  { %v3333_v16 = vpack.c.bf16 %v3317_v42, %v3317_v42 }
 0x68d   :  { %v3348_v63 = vrot.slane %v3332_v2, 4 }
 0x68e   :  { %v3349_v20 = vrot.slane %v3333_v16, 4  ;;  %v3451_v16 = vpop.permute.xlu0 %3450 }
 0x68f   :  { %3364 = vst [vmem:[#allocation2 + $0x8] sm:$0xf0] %v3348_v63  ;;  %v3391_v63 = vpop.permute.xlu1 %3390 }
 0x690   :  { %3365 = vst [vmem:[#allocation2 + $0x10] sm:$0xf0] %v3349_v20 }
 0x692   :  { %v3571_v20 = vpop.permute.xlu0 %3570 }
 0x696   :  { %v5457_v10 = vld [vmem:[#allocation2 + $0x8] sm:$0xff] }
 0x697   :  { %3452 = vrot.lane.b32.xlu0 %v5457_v10, %s4232_s20  ;;  %3392 = vrot.lane.b32.xlu1 %v5457_v10, %s4231_s19  ;;  %v5463_v56 = vld [vmem:[#allocation2 + $0x10] sm:$0xff]  ;;  %3620 = vst [vmem:[#allocation3 + $0x100] sm:$0xff] %v5457_v10 }
 0x698   :  { %3621 = vst [vmem:[#allocation3 + $0x108] sm:$0xff] %v5463_v56 }
 0x69b   :  { %3572 = vrot.lane.b32.xlu0 %v5457_v10, %s4234_s21  ;;  %3512 = vrot.lane.b32.xlu1 %v5457_v10, %s4233_s0 }
 0x69f   :  { %3706 = vrot.lane.b32.xlu0 %v5457_v10, %s4236_s23  ;;  %3646 = vrot.lane.b32.xlu1 %v5457_v10, %s4235_s22  ;;  %v3219_v3 = vpop.f32.mrb[24].mxu1 }
 0x6a0   :  { %v3220_v54 = vadd.f32 %v3219_v3, %v5451_v7  ;;  %v3221_v22 = vpop.f32.mrb[25].mxu1  ;;  %v3511_v3 = vpop.permute.xlu1 %3510 }
 0x6a1   :  { %v3222_v49 = vadd.f32 %v3221_v22, %v5451_v7  ;;  %v3223_v60 = vpop.f32.mrb[26].mxu1 }
 0x6a2   :  { %v3310_v29 = vmax.f32 %v3220_v54, 0.0  ;;  %v3224_v30 = vpop.f32.mrb[27].mxu1  ;;  %v5614_v54 = vpop.permute.xlu0 %3662 }
 0x6a3   :  { %v3311_v32 = vmax.f32 %v3222_v49, 0.0  ;;  %3826 = vrot.lane.b32.xlu0 %v5457_v10, %s4238_s25  ;;  %3766 = vrot.lane.b32.xlu1 %v5457_v10, %s4237_s24 }
 0x6a4   :  { %v3318_v24 = vmul.f32 %v3310_v29, %v4621_v35 }
 0x6a5   :  { %v3319_v25 = vmul.f32 %v3311_v32, %v4625_v38 }
 0x6a6   :  { %v3334_v33 = vpack.c.bf16 %v3318_v24, %v3318_v24 }
 0x6a7   :  { %v3335_v57 = vpack.c.bf16 %v3319_v25, %v3319_v25  ;;  %3394 = vrot.lane.b32.xlu0 %v5463_v56, %s4231_s19  ;;  %3454 = vrot.lane.b32.xlu1 %v5463_v56, %s4232_s20 }
 0x6a8   :  { %v3350_v59 = vrot.slane %v3334_v33, 4 }
 0x6a9   :  { %v3351_v34 = vrot.slane %v3335_v57, 4 }
 0x6aa   :  { %3366 = vst [vmem:[#allocation2 + $0x18] sm:$0xf0] %v3350_v59 }
 0x6ab   :  { %3367 = vst [vmem:[#allocation2 + $0x20] sm:$0xf0] %v3351_v34  ;;  %3514 = vrot.lane.b32.xlu0 %v5463_v56, %s4233_s0  ;;  %3574 = vrot.lane.b32.xlu1 %v5463_v56, %s4234_s21 }
 0x6af   :  { %3708 = vrot.lane.b32.xlu0 %v5463_v56, %s4236_s23  ;;  %3648 = vrot.lane.b32.xlu1 %v5463_v56, %s4235_s22 }
 0x6b1   :  { %v5495_v31 = vld [vmem:[#allocation2 + $0x18] sm:$0xff] }
 0x6b2   :  { %v5497_v36 = vld [vmem:[#allocation2 + $0x20] sm:$0xff]  ;;  %3622 = vst [vmem:[#allocation3 + $0x110] sm:$0xff] %v5495_v31 }
 0x6b3   :  { %3828 = vrot.lane.b32.xlu0 %v5463_v56, %s4238_s25  ;;  %3768 = vrot.lane.b32.xlu1 %v5463_v56, %s4237_s24  ;;  %3623 = vst [vmem:[#allocation3 + $0x118] sm:$0xff] %v5497_v36 }
 0x6b7   :  { %3456 = vrot.lane.b32.xlu0 %v5495_v31, %s4232_s20  ;;  %3396 = vrot.lane.b32.xlu1 %v5495_v31, %s4231_s19 }
 0x6bb   :  { %3576 = vrot.lane.b32.xlu0 %v5495_v31, %s4234_s21  ;;  %3516 = vrot.lane.b32.xlu1 %v5495_v31, %s4233_s0 }
 0x6bf   :  { %3650 = vrot.lane.b32.xlu0 %v5495_v31, %s4235_s22  ;;  %3710 = vrot.lane.b32.xlu1 %v5495_v31, %s4236_s23 }
 0x6c3   :  { %3770 = vrot.lane.b32.xlu0 %v5495_v31, %s4237_s24  ;;  %3830 = vrot.lane.b32.xlu1 %v5495_v31, %s4238_s25 }
 0x6c7   :  { %3398 = vrot.lane.b32.xlu0 %v5497_v36, %s4231_s19  ;;  %3458 = vrot.lane.b32.xlu1 %v5497_v36, %s4232_s20  ;;  %v3260_v45 = vpop.f32.mrb[28].mxu0 }
 0x6c8   :  { %v3261_v5 = vadd.f32 %v3260_v45, %v5451_v7  ;;  %v3262_v28 = vpop.f32.mrb[29].mxu0 }
 0x6c9   :  { %v3263_v44 = vadd.f32 %v3262_v28, %v5451_v7  ;;  %v3264_v1 = vpop.f32.mrb[30].mxu0 }
 0x6ca   :  { %v3312_v12 = vmax.f32 %v3261_v5, 0.0  ;;  %v3265_v50 = vpop.f32.mrb[31].mxu0 }
 0x6cb   :  { %v3313_v19 = vmax.f32 %v3263_v44, 0.0  ;;  %3518 = vrot.lane.b32.xlu0 %v5497_v36, %s4233_s0  ;;  %3578 = vrot.lane.b32.xlu1 %v5497_v36, %s4234_s21 }
 0x6cc   :  { %v3320_v18 = vmul.f32 %v3312_v12, %v4643_v58 }
 0x6cd   :  { %v3321_v47 = vmul.f32 %v3313_v19, %v4649_v62 }
 0x6ce   :  { %v3336_v40 = vpack.c.bf16 %v3320_v18, %v3320_v18 }
 0x6cf   :  { %v3337_v9 = vpack.c.bf16 %v3321_v47, %v3321_v47  ;;  %3712 = vrot.lane.b32.xlu0 %v5497_v36, %s4236_s23  ;;  %3652 = vrot.lane.b32.xlu1 %v5497_v36, %s4235_s22 }
 0x6d0   :  { %v3352_v55 = vrot.slane %v3336_v40, 4 }
 0x6d1   :  { %v3353_v53 = vrot.slane %v3337_v9, 4 }
 0x6d2   :  { %3368 = vst [vmem:[#allocation2 + $0x28] sm:$0xf0] %v3352_v55 }
 0x6d3   :  { %3369 = vst [vmem:[#allocation2 + $0x30] sm:$0xf0] %v3353_v53  ;;  %3832 = vrot.lane.b32.xlu0 %v5497_v36, %s4238_s25  ;;  %3772 = vrot.lane.b32.xlu1 %v5497_v36, %s4237_s24 }
 0x6d7   :  { %v3301_v61 = vpop.f32.mrb[28].mxu1 }
 0x6d8   :  { %v3302_v39 = vadd.f32 %v3301_v61, %v5451_v7  ;;  %v3303_v0 = vpop.f32.mrb[29].mxu1 }
 0x6d9   :  { %v3304_v37 = vadd.f32 %v3303_v0, %v5451_v7  ;;  %v5556_v6 = vld [vmem:[#allocation2 + $0x28] sm:$0xff]  ;;  %v3305_v51 = vpop.f32.mrb[30].mxu1 }
 0x6da   :  { %v3314_v52 = vmax.f32 %v3302_v39, 0.0  ;;  %3654 = vrot.lane.b32.xlu0 %v5556_v6, %s4235_s22  ;;  %3714 = vrot.lane.b32.xlu1 %v5556_v6, %s4236_s23  ;;  %v5562_v15 = vld [vmem:[#allocation2 + $0x30] sm:$0xff]  ;;  %v3306_v26 = vpop.f32.mrb[31].mxu1  ;;  %3624 = vst [vmem:[#allocation3 + $0x120] sm:$0xff] %v5556_v6 }
 0x6db   :  { %v3315_v23 = vmax.f32 %v3304_v37, 0.0  ;;  %3625 = vst [vmem:[#allocation3 + $0x128] sm:$0xff] %v5562_v15 }
 0x6dc   :  { %v3322_v7 = vmul.f32 %v3314_v52, %v4673_v41 }
 0x6dd   :  { %v3323_v4 = vmul.f32 %v3315_v23, %v4679_v43 }
 0x6de   :  { %v3338_v8 = vpack.c.bf16 %v3322_v7, %v3322_v7  ;;  %3774 = vrot.lane.b32.xlu0 %v5556_v6, %s4237_s24  ;;  %3834 = vrot.lane.b32.xlu1 %v5556_v6, %s4238_s25 }
 0x6df   :  { %v3339_v14 = vpack.c.bf16 %v3323_v4, %v3323_v4 }
 0x6e0   :  { %v3354_v21 = vrot.slane %v3338_v8, 4 }
 0x6e1   :  { %v3355_v11 = vrot.slane %v3339_v14, 4 }
 0x6e2   :  { %3370 = vst [vmem:[#allocation2 + $0x38] sm:$0xf0] %v3354_v21  ;;  %3402 = vrot.lane.b32.xlu0 %v5562_v15, %s4231_s19  ;;  %3400 = vrot.lane.b32.xlu1 %v5556_v6, %s4231_s19 }
 0x6e3   :  { %3371 = vst [vmem:[#allocation2 + $0x40] sm:$0xf0] %v3355_v11 }
 0x6e6   :  { %3462 = vrot.lane.b32.xlu0 %v5562_v15, %s4232_s20  ;;  %3460 = vrot.lane.b32.xlu1 %v5556_v6, %s4232_s20 }
 0x6e9   :  { %v5580_v42 = vld [vmem:[#allocation2 + $0x38] sm:$0xff] }
 0x6ea   :  { %3522 = vrot.lane.b32.xlu0 %v5562_v15, %s4233_s0  ;;  %3520 = vrot.lane.b32.xlu1 %v5556_v6, %s4233_s0  ;;  %v5586_v2 = vld [vmem:[#allocation2 + $0x40] sm:$0xff]  ;;  %3626 = vst [vmem:[#allocation3 + $0x130] sm:$0xff] %v5580_v42 }
 0x6eb   :  { %3627 = vst [vmem:[#allocation3 + $0x138] sm:$0xff] %v5586_v2 }
 0x6ee   :  { %3582 = vrot.lane.b32.xlu0 %v5562_v15, %s4234_s21  ;;  %3580 = vrot.lane.b32.xlu1 %v5556_v6, %s4234_s21 }
 0x6f2   :  { %3658 = vrot.lane.b32.xlu0 %v5580_v42, %s4235_s22  ;;  %3656 = vrot.lane.b32.xlu1 %v5562_v15, %s4235_s22 }
 0x6f6   :  { %3718 = vrot.lane.b32.xlu0 %v5580_v42, %s4236_s23  ;;  %3716 = vrot.lane.b32.xlu1 %v5562_v15, %s4236_s23 }
 0x6fa   :  { %3406 = vrot.lane.b32.xlu0 %v5586_v2, %s4231_s19  ;;  %3404 = vrot.lane.b32.xlu1 %v5580_v42, %s4231_s19 }
 0x6fe   :  { %3466 = vrot.lane.b32.xlu0 %v5586_v2, %s4232_s20  ;;  %3464 = vrot.lane.b32.xlu1 %v5580_v42, %s4232_s20 }
 0x702   :  { %3526 = vrot.lane.b32.xlu0 %v5586_v2, %s4233_s0  ;;  %3524 = vrot.lane.b32.xlu1 %v5580_v42, %s4233_s0 }
 0x706   :  { %3586 = vrot.lane.b32.xlu0 %v5586_v2, %s4234_s21  ;;  %3584 = vrot.lane.b32.xlu1 %v5580_v42, %s4234_s21 }
 0x709   :  { %v3393_v22 = vpop.permute.xlu1 %3392  ;;  %v3453_v49 = vpop.permute.xlu0 %3452 }
 0x70a   :  { %v3408_v60 = vsel %vm106_vm0, %v3391_v63, %v3393_v22  ;;  %v3468_v29 = vsel %vm176_vm1, %v3451_v16, %v3453_v49  ;;  %3722 = vrot.lane.b32.xlu0 %v5301_v27, %s4236_s23  ;;  %3776 = vrot.lane.b32.xlu1 %v5562_v15, %s4237_s24 }
 0x70b   :  { %3424 = vst [vmem:[#allocation3] sm:$0xff] %v3408_v60  ;;  %3484 = vst [vmem:[#allocation3 + $0x40] sm:$0xff] %v3468_v29 }
 0x70d   :  { %v3513_v30 = vpop.permute.xlu1 %3512  ;;  %v3573_v32 = vpop.permute.xlu0 %3572 }
 0x70e   :  { %v3528_v24 = vsel %vm237_vm2, %v3511_v3, %v3513_v30  ;;  %v3588_v25 = vsel %vm307_vm3, %v3571_v20, %v3573_v32  ;;  %3778 = vrot.lane.b32.xlu0 %v5580_v42, %s4237_s24  ;;  %3836 = vrot.lane.b32.xlu1 %v5562_v15, %s4238_s25 }
 0x70f   :  { %3544 = vst [vmem:[#allocation3 + $0x80] sm:$0xff] %v3528_v24  ;;  %3604 = vst [vmem:[#allocation3 + $0xc0] sm:$0xff] %v3588_v25 }
 0x711   :  { %v3647_v33 = vpop.permute.xlu1 %3646  ;;  %v3707_v57 = vpop.permute.xlu0 %3706 }
 0x712   :  { %3782 = vrot.lane.b32.xlu0 %v5301_v27, %s4237_s24  ;;  %3660 = vrot.lane.b32.xlu1 %v5586_v2, %s4235_s22 }
 0x715   :  { %v3767_v59 = vpop.permute.xlu1 %3766  ;;  %v3827_v34 = vpop.permute.xlu0 %3826 }
 0x716   :  { %3838 = vrot.lane.b32.xlu0 %v5580_v42, %s4238_s25  ;;  %3720 = vrot.lane.b32.xlu1 %v5586_v2, %s4236_s23 }
 0x719   :  { %v3455_v45 = vpop.permute.xlu1 %3454  ;;  %v3395_v5 = vpop.permute.xlu0 %3394 }
 0x71a   :  { %v3469_v28 = vsel %vm176_vm1, %v3453_v49, %v3455_v45  ;;  %v3409_v44 = vsel %vm106_vm0, %v3393_v22, %v3395_v5  ;;  %3780 = vrot.lane.b32.xlu1 %v5586_v2, %s4237_s24  ;;  %3842 = vrot.lane.b32.xlu0 %v5301_v27, %s4238_s25  ;;  %v3941_v27 = vld [vmem:[%s5769_s11] sm:$0xf] }
 0x71b   :  { %3485 = vst [vmem:[#allocation3 + $0x48] sm:$0xff] %v3469_v28  ;;  %3425 = vst [vmem:[#allocation3 + $0x8] sm:$0xff] %v3409_v44  ;;  %3960 = vmatprep.subr.bf16.mxu0 %v3409_v44 }
 0x71c   :  { %3961 = vmatpush1.bf16.msra.mxu0 %v3408_v60 }
 0x71d   :  { %v3575_v1 = vpop.permute.xlu1 %3574  ;;  %v3515_v12 = vpop.permute.xlu0 %3514  ;;  %3962 = vmatprep.subr.bf16.mxu0 %v3469_v28 }
 0x71e   :  { %v3589_v50 = vsel %vm307_vm3, %v3573_v32, %v3575_v1  ;;  %v3529_v19 = vsel %vm237_vm2, %v3513_v30, %v3515_v12  ;;  %3840 = vrot.lane.b32.xlu1 %v5586_v2, %s4238_s25 }
 0x71f   :  { %3605 = vst [vmem:[#allocation3 + $0xc8] sm:$0xff] %v3589_v50  ;;  %3545 = vst [vmem:[#allocation3 + $0x88] sm:$0xff] %v3529_v19 }
 0x720   :  { %3963 = vmatpush1.bf16.msra.mxu0 %v3468_v29 }
 0x721   :  { %v3649_v18 = vpop.permute.xlu1 %3648  ;;  %v3709_v47 = vpop.permute.xlu0 %3708  ;;  %3964 = vmatprep.subr.bf16.mxu0 %v3529_v19 }
 0x722   :  { %v3664_v40 = vsel %vm393_vm4, %v3647_v33, %v3649_v18  ;;  %v3724_v9 = vsel %vm454_vm5, %v3707_v57, %v3709_v47  ;;  %3944 = vperm.xlu1 %4224, %v3941_v27  }
 0x724   :  { %3965 = vmatpush1.bf16.msra.mxu0 %v3528_v24 }
 0x725   :  { %v3769_v55 = vpop.permute.xlu1 %3768  ;;  %v3829_v53 = vpop.permute.xlu0 %3828  ;;  %3966 = vmatprep.subr.bf16.mxu0 %v3589_v50 }
 0x726   :  { %v3784_v61 = vsel %vm5788_vm14, %v3767_v59, %v3769_v55  ;;  %v3844_v39 = vsel %vm5789_vm15, %v3827_v34, %v3829_v53 }
 0x728   :  { %3967 = vmatpush1.bf16.msra.mxu0 %v3588_v25 }
 0x729   :  { %v3397_v0 = vpop.permute.xlu1 %3396  ;;  %v3457_v37 = vpop.permute.xlu0 %3456  ;;  %3968 = vmatprep.subr.bf16.mxu0 %v5463_v56 }
 0x72a   :  { %v3410_v51 = vsel %vm106_vm0, %v3395_v5, %v3397_v0  ;;  %v3470_v52 = vsel %vm176_vm1, %v3455_v45, %v3457_v37 }
 0x72b   :  { %3426 = vst [vmem:[#allocation3 + $0x10] sm:$0xff] %v3410_v51  ;;  %3486 = vst [vmem:[#allocation3 + $0x50] sm:$0xff] %v3470_v52 }
 0x72c   :  { %3969 = vmatpush1.bf16.msra.mxu0 %v5457_v10 }
 0x72d   :  { %v3517_v26 = vpop.permute.xlu1 %3516  ;;  %v3577_v23 = vpop.permute.xlu0 %3576 }
 0x72e   :  { %v3530_v7 = vsel %vm237_vm2, %v3515_v12, %v3517_v26  ;;  %v3590_v4 = vsel %vm307_vm3, %v3575_v1, %v3577_v23 }
 0x72f   :  { %3546 = vst [vmem:[#allocation3 + $0x90] sm:$0xff] %v3530_v7  ;;  %3606 = vst [vmem:[#allocation3 + $0xd0] sm:$0xff] %v3590_v4 }
 0x731   :  { %v3711_v8 = vpop.permute.xlu1 %3710  ;;  %v3651_v14 = vpop.permute.xlu0 %3650 }
 0x732   :  { %v3725_v56 = vsel %vm454_vm5, %v3709_v47, %v3711_v8  ;;  %v3665_v21 = vsel %vm393_vm4, %v3649_v18, %v3651_v14 }
 0x733   :  { %3970 = vmatprep.subr.bf16.mxu0 %v3665_v21 }
 0x734   :  { %3971 = vmatpush1.bf16.msra.mxu0 %v3664_v40 }
 0x735   :  { %v3831_v11 = vpop.permute.xlu1 %3830  ;;  %v3771_v16 = vpop.permute.xlu0 %3770  ;;  %3972 = vmatprep.subr.bf16.mxu0 %v3725_v56 }
 0x736   :  { %v3845_v10 = vsel %vm5790_vm7, %v3829_v53, %v3831_v11  ;;  %v3785_v63 = vsel %vm5791_vm8, %v3769_v55, %v3771_v16 }
 0x738   :  { %3973 = vmatpush1.bf16.msra.mxu0 %v3724_v9 }
 0x739   :  { %v3459_v20 = vpop.permute.xlu1 %3458  ;;  %v3399_v3 = vpop.permute.xlu0 %3398  ;;  %3974 = vmatprep.subr.bf16.mxu0 %v3785_v63 }
 0x73a   :  { %v3471_v22 = vsel %vm176_vm1, %v3457_v37, %v3459_v20  ;;  %v3411_v49 = vsel %vm106_vm0, %v3397_v0, %v3399_v3 }
 0x73b   :  { %3487 = vst [vmem:[#allocation3 + $0x58] sm:$0xff] %v3471_v22  ;;  %3427 = vst [vmem:[#allocation3 + $0x18] sm:$0xff] %v3411_v49  ;;  %4001 = vmatprep.subr.bf16.mxu1 %v3411_v49 }
 0x73c   :  { %3975 = vmatpush1.bf16.msra.mxu0 %v3784_v61  ;;  %4002 = vmatpush1.bf16.msra.mxu1 %v3410_v51 }
 0x73d   :  { %v5669_v60 = vpop.permute.xlu1 %3578  ;;  %v3519_v29 = vpop.permute.xlu0 %3518  ;;  %3976 = vmatprep.subr.bf16.mxu0 %v3845_v10  ;;  %4003 = vmatprep.subr.bf16.mxu1 %v3471_v22 }
 0x73e   :  { %v3591_v30 = vsel %vm307_vm3, %v3577_v23, %v5669_v60  ;;  %v3531_v32 = vsel %vm237_vm2, %v3517_v26, %v3519_v29 }
 0x73f   :  { %3607 = vst [vmem:[#allocation3 + $0xd8] sm:$0xff] %v3591_v30  ;;  %3547 = vst [vmem:[#allocation3 + $0x98] sm:$0xff] %v3531_v32 }
 0x740   :  { %3977 = vmatpush1.bf16.msra.mxu0 %v3844_v39  ;;  %4004 = vmatpush1.bf16.msra.mxu1 %v3470_v52 }
 0x741   :  { %v3653_v24 = vpop.permute.xlu1 %3652  ;;  %v3713_v25 = vpop.permute.xlu0 %3712  ;;  %4005 = vmatprep.subr.bf16.mxu1 %v3531_v32 }
 0x742   :  { %v3666_v33 = vsel %vm393_vm4, %v3651_v14, %v3653_v24  ;;  %v3726_v57 = vsel %vm454_vm5, %v3711_v8, %v3713_v25 }
 0x743   :  { %3993 = vmatmul.mubr.bf16.vlgmr.msra.gmra.mrb[32].mxu0 %v5524_v48 }
 0x744   :  { %4006 = vmatpush1.bf16.msra.mxu1 %v3530_v7  ;;  %4202 = vmatprep.mubr.msk.bf16.mxu0 %vm3140_vm6, %v5532_v46 }
 0x745   :  { %v3773_v59 = vpop.permute.xlu1 %3772  ;;  %v3833_v34 = vpop.permute.xlu0 %3832  ;;  %4007 = vmatprep.subr.bf16.mxu1 %v3591_v30 }
 0x746   :  { %v3786_v45 = vsel %vm5792_vm9, %v3771_v16, %v3773_v59  ;;  %v3846_v5 = vsel %vm5793_vm10, %v3831_v11, %v3833_v34 }
 0x748   :  { %4008 = vmatpush1.bf16.msra.mxu1 %v3590_v4 }
 0x749   :  { %4009 = vmatprep.subr.bf16.mxu1 %v5497_v36 }
 0x74c   :  { %v3715_v28 = vpop.permute.xlu1 %3714  ;;  %v3655_v44 = vpop.permute.xlu0 %3654  ;;  %4010 = vmatpush1.bf16.msra.mxu1 %v5495_v31 }
 0x74d   :  { %v3727_v1 = vsel %vm454_vm5, %v3713_v25, %v3715_v28  ;;  %v3667_v12 = vsel %vm393_vm4, %v3653_v24, %v3655_v44 }
 0x74e   :  { %4011 = vmatprep.subr.bf16.mxu1 %v3667_v12 }
 0x750   :  { %v5685_v50 = vpop.permute.xlu1 %3834  ;;  %v5687_v19 = vpop.permute.xlu0 %3774  ;;  %4012 = vmatpush1.bf16.msra.mxu1 %v3666_v33 }
 0x751   :  { %v3847_v27 = vsel %vm5794_vm11, %v3833_v34, %v5685_v50  ;;  %v3787_v36 = vsel %vm5795_vm12, %v3773_v59, %v5687_v19  ;;  %4013 = vmatprep.subr.bf16.mxu1 %v3727_v1 }
 0x754   :  { %v3401_v18 = vpop.permute.xlu1 %3400  ;;  %v3403_v47 = vpop.permute.xlu0 %3402  ;;  %4014 = vmatpush1.bf16.msra.mxu1 %v3726_v57 }
 0x755   :  { %v3412_v31 = vsel %vm106_vm0, %v3399_v3, %v3401_v18  ;;  %v3413_v40 = vsel %vm106_vm0, %v3401_v18, %v3403_v47  ;;  %4015 = vmatprep.subr.bf16.mxu1 %v3787_v36 }
 0x756   :  { %3428 = vst [vmem:[#allocation3 + $0x20] sm:$0xff] %v3412_v31  ;;  %3429 = vst [vmem:[#allocation3 + $0x28] sm:$0xff] %v3413_v40  ;;  %4042 = vmatprep.subr.bf16.mxu0 %v3413_v40 }
 0x757   :  { %4043 = vmatpush1.bf16.msra.mxu0 %v3412_v31 }
 0x758   :  { %v3461_v9 = vpop.permute.xlu1 %3460  ;;  %v3463_v55 = vpop.permute.xlu0 %3462  ;;  %4016 = vmatpush1.bf16.msra.mxu1 %v3786_v45 }
 0x759   :  { %v3472_v53 = vsel %vm176_vm1, %v3459_v20, %v3461_v9  ;;  %v3473_v61 = vsel %vm176_vm1, %v3461_v9, %v3463_v55  ;;  %4017 = vmatprep.subr.bf16.mxu1 %v3847_v27 }
 0x75a   :  { %3488 = vst [vmem:[#allocation3 + $0x60] sm:$0xff] %v3472_v53  ;;  %3489 = vst [vmem:[#allocation3 + $0x68] sm:$0xff] %v3473_v61  ;;  %4044 = vmatprep.subr.bf16.mxu0 %v3473_v61 }
 0x75b   :  { %4045 = vmatpush1.bf16.msra.mxu0 %v3472_v53 }
 0x75c   :  { %v3521_v39 = vpop.permute.xlu1 %3520  ;;  %v3523_v0 = vpop.permute.xlu0 %3522  ;;  %4018 = vmatpush1.bf16.msra.mxu1 %v3846_v5 }
 0x75d   :  { %v3532_v37 = vsel %vm237_vm2, %v3519_v29, %v3521_v39  ;;  %v3533_v51 = vsel %vm237_vm2, %v3521_v39, %v3523_v0 }
 0x75e   :  { %3548 = vst [vmem:[#allocation3 + $0xa0] sm:$0xff] %v3532_v37  ;;  %3549 = vst [vmem:[#allocation3 + $0xa8] sm:$0xff] %v3533_v51  ;;  %4046 = vmatprep.subr.bf16.mxu0 %v3533_v51 }
 0x75f   :  { %4034 = vmatmul.mubr.bf16.vlgmr.msra.gmra.mrb[32].mxu1 %v5524_v48  ;;  %4047 = vmatpush1.bf16.msra.mxu0 %v3532_v37 }
 0x760   :  { %v3581_v52 = vpop.permute.xlu1 %3580  ;;  %v3583_v26 = vpop.permute.xlu0 %3582  ;;  %4203 = vmatprep.mubr.msk.bf16.mxu1 %vm3140_vm6, %v5532_v46 }
 0x761   :  { %v3592_v23 = vsel %vm307_vm3, %v5669_v60, %v3581_v52  ;;  %v3593_v7 = vsel %vm307_vm3, %v3581_v52, %v3583_v26 }
 0x762   :  { %3608 = vst [vmem:[#allocation3 + $0xe0] sm:$0xff] %v3592_v23  ;;  %3609 = vst [vmem:[#allocation3 + $0xe8] sm:$0xff] %v3593_v7  ;;  %4048 = vmatprep.subr.bf16.mxu0 %v3593_v7 }
 0x763   :  { %4049 = vmatpush1.bf16.msra.mxu0 %v3592_v23 }
 0x764   :  { %v3657_v4 = vpop.permute.xlu1 %3656  ;;  %v3659_v8 = vpop.permute.xlu0 %3658  ;;  %4050 = vmatprep.subr.bf16.mxu0 %v5562_v15 }
 0x765   :  { %v3668_v14 = vsel %vm393_vm4, %v3655_v44, %v3657_v4  ;;  %v3669_v56 = vsel %vm393_vm4, %v3657_v4, %v3659_v8 }
 0x767   :  { %4051 = vmatpush1.bf16.msra.mxu0 %v5556_v6 }
 0x768   :  { %v3717_v46 = vpop.permute.xlu1 %3716  ;;  %v3719_v21 = vpop.permute.xlu0 %3718  ;;  %4052 = vmatprep.subr.bf16.mxu0 %v3669_v56 }
 0x769   :  { %v3728_v11 = vsel %vm454_vm5, %v3715_v28, %v3717_v46  ;;  %v3729_v16 = vsel %vm454_vm5, %v3717_v46, %v3719_v21 }
 0x76b   :  { %4053 = vmatpush1.bf16.msra.mxu0 %v3668_v14 }
 0x76c   :  { %v3405_v10 = vpop.permute.xlu1 %3404  ;;  %v3407_v63 = vpop.permute.xlu0 %3406  ;;  %4054 = vmatprep.subr.bf16.mxu0 %v3729_v16 }
 0x76d   :  { %v3414_v20 = vsel %vm106_vm0, %v3403_v47, %v3405_v10  ;;  %v3415_v15 = vsel %vm106_vm0, %v3405_v10, %v3407_v63  ;;  %vm5796_vm0 = vmmov %vm5791_vm8 }
 0x76e   :  { %3430 = vst [vmem:[#allocation3 + $0x30] sm:$0xff] %v3414_v20  ;;  %3431 = vst [vmem:[#allocation3 + $0x38] sm:$0xff] %v3415_v15  ;;  %4083 = vmatprep.subr.bf16.mxu1 %v3415_v15 }
 0x76f   :  { %4055 = vmatpush1.bf16.msra.mxu0 %v3728_v11  ;;  %4084 = vmatpush1.bf16.msra.mxu1 %v3414_v20  ;;  %vm5800_vm6 = vmmov %vm5796_vm0 }
 0x770   :  { %v3465_v6 = vpop.permute.xlu1 %3464  ;;  %v3467_v3 = vpop.permute.xlu0 %3466  ;;  %vm5801_vm13 = vmmov %vm5796_vm0 }
 0x771   :  { %v3474_v22 = vsel %vm176_vm1, %v3463_v55, %v3465_v6  ;;  %v3475_v49 = vsel %vm176_vm1, %v3465_v6, %v3467_v3  ;;  %vm5797_vm1 = vmmov %vm5790_vm7 }
 0x772   :  { %3490 = vst [vmem:[#allocation3 + $0x70] sm:$0xff] %v3474_v22  ;;  %3491 = vst [vmem:[#allocation3 + $0x78] sm:$0xff] %v3475_v49  ;;  %4085 = vmatprep.subr.bf16.mxu1 %v3475_v49 }
 0x773   :  { %4086 = vmatpush1.bf16.msra.mxu1 %v3474_v22 }
 0x774   :  { %v3525_v60 = vpop.permute.xlu1 %3524  ;;  %v3527_v29 = vpop.permute.xlu0 %3526 }
 0x775   :  { %v3534_v30 = vsel %vm237_vm2, %v3523_v0, %v3525_v60  ;;  %v3535_v32 = vsel %vm237_vm2, %v3525_v60, %v3527_v29  ;;  %vm5798_vm2 = vmmov %vm5796_vm0 }
 0x776   :  { %3550 = vst [vmem:[#allocation3 + $0xb0] sm:$0xff] %v3534_v30  ;;  %3551 = vst [vmem:[#allocation3 + $0xb8] sm:$0xff] %v3535_v32  ;;  %4087 = vmatprep.subr.bf16.mxu1 %v3535_v32 }
 0x777   :  { %4088 = vmatpush1.bf16.msra.mxu1 %v3534_v30 }
 0x778   :  { %v3585_v24 = vpop.permute.xlu1 %3584  ;;  %v3587_v25 = vpop.permute.xlu0 %3586 }
 0x779   :  { %v3594_v33 = vsel %vm307_vm3, %v3583_v26, %v3585_v24  ;;  %v3595_v57 = vsel %vm307_vm3, %v3585_v24, %v3587_v25  ;;  %vm5799_vm3 = vmmov %vm5797_vm1 }
 0x77a   :  { %3610 = vst [vmem:[#allocation3 + $0xf0] sm:$0xff] %v3594_v33  ;;  %3611 = vst [vmem:[#allocation3 + $0xf8] sm:$0xff] %v3595_v57  ;;  %4089 = vmatprep.subr.bf16.mxu1 %v3595_v57 }
 0x77b   :  { %4090 = vmatpush1.bf16.msra.mxu1 %v3594_v33 }
 0x77c   :  { %v3777_v59 = vpop.permute.xlu1 %3776  ;;  %v3723_v34 = vpop.permute.xlu0 %3722  ;;  %4091 = vmatprep.subr.bf16.mxu1 %v5586_v2 }
 0x77d   :  { %v3788_v45 = vsel %vm5796_vm0, %v5687_v19, %v3777_v59 }
 0x77f   :  { %4092 = vmatpush1.bf16.msra.mxu1 %v5580_v42 }
 0x780   :  { %v3837_v5 = vpop.permute.xlu1 %3836  ;;  %v3779_v28 = vpop.permute.xlu0 %3778 }
 0x781   :  { %v3848_v44 = vsel %vm5797_vm1, %v5685_v50, %v3837_v5  ;;  %v3789_v1 = vsel %vm5798_vm2, %v3777_v59, %v3779_v28 }
 0x782   :  { %4056 = vmatprep.subr.bf16.mxu0 %v3789_v1 }
 0x783   :  { %4057 = vmatpush1.bf16.msra.mxu0 %v3788_v45 }
 0x784   :  { %v3661_v12 = vpop.permute.xlu1 %3660  ;;  %v3783_v27 = vpop.permute.xlu0 %3782 }
 0x785   :  { %v3670_v36 = vsel %vm393_vm4, %v3659_v8, %v3661_v12  ;;  %v3671_v2 = vsel %vm393_vm4, %v3661_v12, %v5614_v54  ;;  %vm5802_vm4 = vmmov %vm5797_vm1 }
 0x786   :  { %4093 = vmatprep.subr.bf16.mxu1 %v3671_v2 }
 0x787   :  { %4094 = vmatpush1.bf16.msra.mxu1 %v3670_v36 }
 0x788   :  { %v3721_v19 = vpop.permute.xlu1 %3720  ;;  %v3839_v42 = vpop.permute.xlu0 %3838 }
 0x789   :  { %v3730_v18 = vsel %vm454_vm5, %v3719_v21, %v3721_v19  ;;  %v3731_v47 = vsel %vm454_vm5, %v3721_v19, %v3723_v34  ;;  %v3849_v50 = vsel %vm5799_vm3, %v3837_v5, %v3839_v42  ;;  %vm5803_vm5 = vmmov %vm5797_vm1 }
 0x78a   :  { %4058 = vmatprep.subr.bf16.mxu0 %v3849_v50  ;;  %4095 = vmatprep.subr.bf16.mxu1 %v3731_v47 }
 0x78b   :  { %4059 = vmatpush1.bf16.msra.mxu0 %v3848_v44  ;;  %4096 = vmatpush1.bf16.msra.mxu1 %v3730_v18 }
 0x78c   :  { %v3781_v31 = vpop.permute.xlu1 %3780  ;;  %v3843_v54 = vpop.permute.xlu0 %3842 }
 0x78d   :  { %v3790_v40 = vsel %vm5800_vm6, %v3779_v28, %v3781_v31  ;;  %v3791_v9 = vsel %vm5801_vm13, %v3781_v31, %v3783_v27 }
 0x78e   :  { %4075 = vmatmul.mubr.bf16.vlgmr.msra.gmra.mrb[36].mxu0 %v5524_v48  ;;  %4097 = vmatprep.subr.bf16.mxu1 %v3791_v9 }
 0x78f   :  { %4098 = vmatpush1.bf16.msra.mxu1 %v3790_v40 }
 0x790   :  { %v3841_v55 = vpop.permute.xlu1 %3840 }
 0x791   :  { %v3850_v53 = vsel %vm5802_vm4, %v3839_v42, %v3841_v55  ;;  %v3851_v61 = vsel %vm5803_vm5, %v3841_v55, %v3843_v54 }
 0x792   :  { %4099 = vmatprep.subr.bf16.mxu1 %v3851_v61 }
 0x793   :  { %4100 = vmatpush1.bf16.msra.mxu1 %v3850_v53 }
 0x796   :  { %4116 = vmatmul.mubr.bf16.vlgmr.msra.gmra.mrb[36].mxu1 %v5524_v48 }
 0x7a1   :  { %v3945_v39 = vpop.permute.xlu1 %3944 }
 0x816   :  { %v3994_v0 = vpop.f32.mrb[32].mxu0 }
 0x817   :  { %v3995_v37 = vadd.f32 %v3994_v0, %v3945_v39  ;;  %v3996_v51 = vpop.f32.mrb[33].mxu0 }
 0x818   :  { %v3997_v52 = vadd.f32 %v3996_v51, %v3945_v39  ;;  %v3998_v26 = vpop.f32.mrb[34].mxu0 }
 0x819   :  { %v4124_v23 = vmax.f32 %v3995_v37, 0.0  ;;  %v3999_v7 = vpop.f32.mrb[35].mxu0 }
 0x81a   :  { %v4125_v4 = vmax.f32 %v3997_v52, 0.0 }
 0x81b   :  { %v4132_v8 = vmul.f32 %v4124_v23, %v4600_v13 }
 0x81c   :  { %v4133_v14 = vmul.f32 %v4125_v4, %v4605_v17 }
 0x81e   :  { %v4144_v56 = vcombine.low %v4132_v8, %v4133_v14 }
 0x820   :  { %4148 = vst [vmem:[%s5770_s12] sm:$0xff] %v4144_v56 }
 0x832   :  { %v4035_v46 = vpop.f32.mrb[32].mxu1 }
 0x833   :  { %v4036_v48 = vadd.f32 %v4035_v46, %v3945_v39  ;;  %v4037_v21 = vpop.f32.mrb[33].mxu1 }
 0x834   :  { %v4038_v11 = vadd.f32 %v4037_v21, %v3945_v39  ;;  %v4039_v16 = vpop.f32.mrb[34].mxu1 }
 0x835   :  { %v4126_v10 = vmax.f32 %v4036_v48, 0.0  ;;  %v4040_v63 = vpop.f32.mrb[35].mxu1 }
 0x836   :  { %v4127_v20 = vmax.f32 %v4038_v11, 0.0 }
 0x837   :  { %v4134_v15 = vmul.f32 %v4126_v10, %v4621_v35 }
 0x838   :  { %v4135_v6 = vmul.f32 %v4127_v20, %v4625_v38 }
 0x83a   :  { %v4145_v13 = vcombine.low %v4134_v15, %v4135_v6 }
 0x83c   :  { %4149 = vst [vmem:[%s5770_s12 + $0x8] sm:$0xff] %v4145_v13 }
 0x861   :  { %v4076_v17 = vpop.f32.mrb[36].mxu0 }
 0x862   :  { %v4077_v3 = vadd.f32 %v4076_v17, %v3945_v39  ;;  %v4078_v22 = vpop.f32.mrb[37].mxu0 }
 0x863   :  { %v4079_v49 = vadd.f32 %v4078_v22, %v3945_v39  ;;  %v4080_v60 = vpop.f32.mrb[38].mxu0 }
 0x864   :  { %v4128_v29 = vmax.f32 %v4077_v3, 0.0  ;;  %v4081_v30 = vpop.f32.mrb[39].mxu0 }
 0x865   :  { %v4129_v32 = vmax.f32 %v4079_v49, 0.0 }
 0x866   :  { %v4136_v24 = vmul.f32 %v4128_v29, %v4643_v58 }
 0x867   :  { %v4137_v25 = vmul.f32 %v4129_v32, %v4649_v62 }
 0x869   :  { %v4154_v35 = vcombine.low %v4136_v24, %v4137_v25  ;;  %v4117_v33 = vpop.f32.mrb[36].mxu1 }
 0x86a   :  { %v4118_v38 = vadd.f32 %v4117_v33, %v3945_v39  ;;  %v4119_v57 = vpop.f32.mrb[37].mxu1 }
 0x86b   :  { %4204 = vst [vmem:[%s5770_s12 + $0x10] sm:$0xff] %v4154_v35  ;;  %v4120_v59 = vadd.f32 %v4119_v57, %v3945_v39  ;;  %v4121_v34 = vpop.f32.mrb[38].mxu1 }
 0x86c   :  { %v4130_v45 = vmax.f32 %v4118_v38, 0.0  ;;  %v4122_v5 = vpop.f32.mrb[39].mxu1 }
 0x86d   :  { %v4131_v28 = vmax.f32 %v4120_v59, 0.0 }
 0x86e   :  { %v4138_v44 = vmul.f32 %v4130_v45, %v4673_v41 }
 0x86f   :  { %v4139_v1 = vmul.f32 %v4131_v28, %v4679_v43 }
 0x871   :  { %v4155_v58 = vcombine.low %v4138_v44, %v4139_v1 }
 0x873   :  { %4205 = vst [vmem:[%s5770_s12 + $0x18] sm:$0xff] %v4155_v58 }

</bundles_post_ra>
